<compile_context>
chip_gen: v6e
topology: v6e:2x2x1
jax: 0.10.0
libtpu: 0.0.40
codegen_flags: <defaults>
</compile_context>

<pallas_src>
import jax
import jax.numpy as jnp
from jax.experimental import pallas as pl
from jax.experimental.pallas import tpu as pltpu

CIN = 3
CIN_PAD = 8          # pad input channels 3 -> 8 (zero rows in W1) for clean tiling
BN_EPS = 1e-5


# --------------------------------- kernel ------------------------------------

def pointnet_kernel(x_ref, w1_ref, b1_ref, w2_ref, b2_ref, w3_ref, b3_ref,
                    wf1_ref, bf1_ref, wf2_ref, bf2_ref, wt_ref, bt_ref,
                    out_ref, max_sc):
    """One (batch, point-chunk) step of conv1/2/3 + running max; fused head at
    the last chunk.  Grid = (B, num_chunks), chunk axis 'arbitrary'."""
    c = pl.program_id(1)
    x = x_ref[0]                                               # (n_chunk, CIN_PAD) bf16

    # conv1 + BN + ReLU
    h = jnp.dot(x, w1_ref[...], preferred_element_type=jnp.float32) + b1_ref[...]
    h = jnp.maximum(h, 0.0)                                    # (n_chunk, 64)
    # conv2 + BN + ReLU
    h = jnp.dot(h.astype(jnp.bfloat16), w2_ref[...],
                preferred_element_type=jnp.float32) + b2_ref[...]
    h = jnp.maximum(h, 0.0)                                    # (n_chunk, 128)
    # conv3 (BN scale folded in W3'; bias b3' deferred until after the max)
    h = jnp.dot(h.astype(jnp.bfloat16), w3_ref[...],
                preferred_element_type=jnp.float32)            # (n_chunk, 1024)

    # Pure-VPU partial max: collapse groups of 8 rows into an (8, 1024) slab.
    # (n_chunk is a multiple of 128, so this reshape is layout-trivial.)
    group_max = jnp.max(h.reshape(-1, 8, 1024), axis=0)        # (8, 1024)

    @pl.when(c == 0)
    def _():
        max_sc[...] = group_max

    @pl.when(c > 0)
    def _():
        max_sc[...] = jnp.maximum(max_sc[...], group_max)

    # Fused classification head on the final chunk of this batch element.
    @pl.when(c == pl.num_programs(1) - 1)
    def _():
        pooled = jnp.max(max_sc[...], axis=0, keepdims=True) + b3_ref[...]   # (1, 1024)
        g = pooled.astype(jnp.bfloat16)
        hh = jnp.dot(g, wf1_ref[...], preferred_element_type=jnp.float32) + bf1_ref[...]
        hh = jnp.maximum(hh, 0.0)                              # (1, 512)
        # dropout(p=0.3) in eval mode is the identity.
        hh = jnp.dot(hh.astype(jnp.bfloat16), wf2_ref[...],
                     preferred_element_type=jnp.float32) + bf2_ref[...]
        hh = jnp.maximum(hh, 0.0)                              # (1, 256)
        out_ref[0] = jnp.dot(hh.astype(jnp.bfloat16), wt_ref[...],
                             preferred_element_type=jnp.float32) + bt_ref[...]
    # TODO(synk): self.fc3 / network_output_to_R are dead code in the PyTorch
    # forward (early return of xtrivial.view(...)); intentionally not implemented.


# ----------------------------- host-side prep ---------------------------------

def _fold_bn(w, b, scale, shift):
    """Fold eval-mode BN (y = (x@w + b)*scale + shift) into bf16 w' and f32 b'."""
    w_f = (w * scale).astype(jnp.bfloat16)
    b_f = (b * scale + shift).astype(jnp.float32)
    return w_f, b_f


def prepare_params(params):
    (w1, b1, s1, h1, w2, b2, s2, h2, w3, b3, s3, h3,
     wf1, bf1, sf1, hf1, wf2, bf2, sf2, hf2, wt, bt) = params
    return (*_fold_bn(w1, b1, s1, h1),
            *_fold_bn(w2, b2, s2, h2),
            *_fold_bn(w3, b3, s3, h3),
            *_fold_bn(wf1, bf1, sf1, hf1),
            *_fold_bn(wf2, bf2, sf2, hf2),
            wt.astype(jnp.bfloat16), bt.astype(jnp.float32))


def pointnet_cls_forward(x_bcn, params, *, n_chunk=1024):
    """x_bcn: (B, 3, N) float32, PyTorch Conv1d layout.  Returns (B, 4, 4).

    n_chunk: points per grid step.  Default 1024 amortizes per-step overhead and
    conv3 RHS re-pushes; v5e/v6e (128 MiB VMEM) can use 2048, keep <=1024 on v7x.
    """
    B, C, N = x_bcn.shape
    assert C == CIN
    all_p = prepare_params(params)

    # Chunk size: multiple of 128 (fills MXU rows), capped at padded N.
    n_chunk = max(128, (n_chunk // 128) * 128)
    n_chunk = min(n_chunk, pl.cdiv(N, 128) * 128)
    num_chunks = pl.cdiv(N, n_chunk)
    n_pad = num_chunks * n_chunk

    # (B, N, 3): pad the point axis with copies of the last real point (exact
    # for a global max -> no in-kernel masking), channels with zeros (exact
    # because W1's padded rows are zero).
    x = jnp.transpose(x_bcn, (0, 2, 1))
    if n_pad > N:
        x = jnp.pad(x, ((0, 0), (0, n_pad - N), (0, 0)), mode="edge")
    x = jnp.pad(x, ((0, 0), (0, 0), (0, CIN_PAD - CIN)))
    x = x.astype(jnp.bfloat16)
    # TODO(synk): optional host-side repack to (B, n_pad/16, 128) bf16 would make
    # the input DMA lane-dense; input traffic is <1% of compute, so skipped.

    in_specs = [pl.BlockSpec((1, n_chunk, CIN_PAD), lambda b, c: (b, c, 0))]
    # Grid-invariant (folded) weights/biases: constant index_map -> fetched once.
    in_specs += [pl.BlockSpec(p.shape, lambda b, c: (0, 0)) for p in all_p]

    vmem_limit = (48 if n_chunk <= 1024 else 64) * 1024 * 1024

    out16 = pl.pallas_call(
        pointnet_kernel,
        out_shape=jax.ShapeDtypeStruct((B, 1, 16), jnp.float32),
        grid=(B, num_chunks),
        in_specs=in_specs,
        out_specs=pl.BlockSpec((1, 1, 16), lambda b, c: (b, 0, 0)),
        scratch_shapes=[pltpu.VMEM((8, 1024), jnp.float32)],   # running max slab
        compiler_params=pltpu.CompilerParams(
            dimension_semantics=("parallel", "arbitrary"),
            vmem_limit_bytes=vmem_limit,
        ),
    )(x, *all_p)
    # TODO(synk): for v7x small-batch inference, a split chunk axis with a
    # (2, B, 1024) partial-max output would keep both TensorCores busy.
    return out16.reshape(B, 4, 4)


# ----------------------- deterministic parameter setup -----------------------

def _linear(key, fan_in, fan_out):
    kw, kb = jax.random.split(key)
    bound = 1.0 / float(fan_in) ** 0.5
    w = jax.random.uniform(kw, (fan_in, fan_out), jnp.float32, -bound, bound)
    b = jax.random.uniform(kb, (1, fan_out), jnp.float32, -bound, bound)
    return w, b


def _bn_scale_shift(key, c):
    k1, k2, k3, k4 = jax.random.split(key, 4)
    gamma = jax.random.uniform(k1, (1, c), jnp.float32, 0.5, 1.5)
    beta = 0.1 * jax.random.normal(k2, (1, c), jnp.float32)
    mean = 0.1 * jax.random.normal(k3, (1, c), jnp.float32)
    var = jax.random.uniform(k4, (1, c), jnp.float32, 0.5, 1.5)
    scale = gamma / jnp.sqrt(var + BN_EPS)
    shift = beta - mean * scale
    return scale, shift


def init_params(key):
    ks = jax.random.split(key, 11)
    w1, b1 = _linear(ks[0], CIN, 64)
    w1 = jnp.pad(w1, ((0, CIN_PAD - CIN), (0, 0)))            # zero rows: exact padding
    s1, h1 = _bn_scale_shift(ks[1], 64)
    w2, b2 = _linear(ks[2], 64, 128)
    s2, h2 = _bn_scale_shift(ks[3], 128)
    w3, b3 = _linear(ks[4], 128, 1024)
    s3, h3 = _bn_scale_shift(ks[5], 1024)
    wf1, bf1 = _linear(ks[6], 1024, 512)
    sf1, hf1 = _bn_scale_shift(ks[7], 512)
    wf2, bf2 = _linear(ks[8], 512, 256)
    sf2, hf2 = _bn_scale_shift(ks[9], 256)
    wt, bt = _linear(ks[10], 256, 16)
    return (w1, b1, s1, h1, w2, b2, s2, h2, w3, b3, s3, h3,
            wf1, bf1, sf1, hf1, wf2, bf2, sf2, hf2, wt, bt)


# ------------------------------ pure-JAX reference ---------------------------

def reference(x_bcn, params):
    (w1, b1, s1, h1, w2, b2, s2, h2, w3, b3, s3, h3,
     wf1, bf1, sf1, hf1, wf2, bf2, sf2, hf2, wt, bt) = params
    x = jnp.transpose(x_bcn, (0, 2, 1))
    x = jnp.pad(x, ((0, 0), (0, 0), (0, CIN_PAD - CIN)))

    def lin_bn(h, w, bias, scale, shift, relu):
        y = (h @ w + bias) * scale + shift
        return jnp.maximum(y, 0.0) if relu else y

    h = lin_bn(x, w1, b1, s1, h1, True)
    h = lin_bn(h, w2, b2, s2, h2, True)
    h = lin_bn(h, w3, b3, s3, h3, False)
    g = jnp.max(h, axis=1)                                    # (B, 1024)
    h = lin_bn(g, wf1, bf1, sf1, hf1, True)
    h = lin_bn(h, wf2, bf2, sf2, hf2, True)
    t = h @ wt + bt
    return t.reshape(-1, 4, 4)


if __name__ == "__main__":
    key = jax.random.PRNGKey(0)
    kx, kx2, kp = jax.random.split(key, 3)
    params = init_params(kp)

    # Main check: B=2, N=512 points (PyTorch layout (B, C, N)), default chunking
    # (single 512-point chunk per batch element).
    B, N = 2, 512
    x = jax.random.normal(kx, (B, CIN, N), jnp.float32)
    out = jax.block_until_ready(pointnet_cls_forward(x, params))
    ref = reference(x, params)
    assert out.shape == (B, 4, 4), out.shape
    assert bool(jnp.all(jnp.isfinite(out)))
    err = float(jnp.max(jnp.abs(out - ref)))
    # bf16 MXU operands with f32 accumulation -> looser tolerance than pure f32.
    assert bool(jnp.allclose(out, ref, atol=5e-2, rtol=5e-2)), err

    # Correctness-only check of the multi-chunk running-max path and the ragged-N
    # edge padding (N=500 -> 2 chunks of 256).  Perf configs keep the default chunk.
    N2 = 500
    x2 = jax.random.normal(kx2, (B, CIN, N2), jnp.float32)
    out2 = jax.block_until_ready(pointnet_cls_forward(x2, params, n_chunk=256))
    ref2 = reference(x2, params)
    err2 = float(jnp.max(jnp.abs(out2 - ref2)))
    assert bool(jnp.allclose(out2, ref2, atol=5e-2, rtol=5e-2)), err2

    print("KERNEL_OK")
</pallas_src>

<mosaic_0001>
module attributes {stable_mosaic.version = 11 : i64} {
  func.func @pointnet_kernel(%arg0: i32, %arg1: i32, %arg2: memref<1x512x8xbf16, #tpu.memory_space<vmem>>, %arg3: memref<8x64xbf16, #tpu.memory_space<vmem>>, %arg4: memref<1x64xf32, #tpu.memory_space<vmem>>, %arg5: memref<64x128xbf16, #tpu.memory_space<vmem>>, %arg6: memref<1x128xf32, #tpu.memory_space<vmem>>, %arg7: memref<128x1024xbf16, #tpu.memory_space<vmem>>, %arg8: memref<1x1024xf32, #tpu.memory_space<vmem>>, %arg9: memref<1024x512xbf16, #tpu.memory_space<vmem>>, %arg10: memref<1x512xf32, #tpu.memory_space<vmem>>, %arg11: memref<512x256xbf16, #tpu.memory_space<vmem>>, %arg12: memref<1x256xf32, #tpu.memory_space<vmem>>, %arg13: memref<256x16xbf16, #tpu.memory_space<vmem>>, %arg14: memref<1x16xf32, #tpu.memory_space<vmem>>, %arg15: memref<1x1x16xf32, #tpu.memory_space<vmem>>, %arg16: memref<8x1024xf32, #tpu.memory_space<vmem>>) attributes {dimension_semantics = [#tpu.dimension_semantics<parallel>, #tpu.dimension_semantics<arbitrary>], iteration_bounds = array<i64: 2, 1>, scalar_prefetch = 0 : i64, scratch_operands = 1 : i64, tpu.core_type = #tpu.core_type<tc>, window_params = [{transform_indices = @transform_0, window_bounds = array<i64: 1, 512, 8>}, {pipeline_mode = #tpu.pipeline_mode<synchronous>, transform_indices = @transform_1, window_bounds = array<i64: 8, 64>}, {pipeline_mode = #tpu.pipeline_mode<synchronous>, transform_indices = @transform_2, window_bounds = array<i64: 1, 64>}, {pipeline_mode = #tpu.pipeline_mode<synchronous>, transform_indices = @transform_3, window_bounds = array<i64: 64, 128>}, {pipeline_mode = #tpu.pipeline_mode<synchronous>, transform_indices = @transform_4, window_bounds = array<i64: 1, 128>}, {pipeline_mode = #tpu.pipeline_mode<synchronous>, transform_indices = @transform_5, window_bounds = array<i64: 128, 1024>}, {pipeline_mode = #tpu.pipeline_mode<synchronous>, transform_indices = @transform_6, window_bounds = array<i64: 1, 1024>}, {pipeline_mode = #tpu.pipeline_mode<synchronous>, transform_indices = @transform_7, window_bounds = array<i64: 1024, 512>}, {pipeline_mode = #tpu.pipeline_mode<synchronous>, transform_indices = @transform_8, window_bounds = array<i64: 1, 512>}, {pipeline_mode = #tpu.pipeline_mode<synchronous>, transform_indices = @transform_9, window_bounds = array<i64: 512, 256>}, {pipeline_mode = #tpu.pipeline_mode<synchronous>, transform_indices = @transform_10, window_bounds = array<i64: 1, 256>}, {pipeline_mode = #tpu.pipeline_mode<synchronous>, transform_indices = @transform_11, window_bounds = array<i64: 256, 16>}, {pipeline_mode = #tpu.pipeline_mode<synchronous>, transform_indices = @transform_12, window_bounds = array<i64: 1, 16>}, {transform_indices = @transform_13, window_bounds = array<i64: 1, 1, 16>}]} {
    %c0 = arith.constant 0 : index
    %c0_0 = arith.constant 0 : index
    %c0_1 = arith.constant 0 : index
    %0 = vector.load %arg2[%c0, %c0_0, %c0_1] : memref<1x512x8xbf16, #tpu.memory_space<vmem>>, vector<1x512x8xbf16>
    %1 = vector.shape_cast %0 : vector<1x512x8xbf16> to vector<512x8xbf16>
    %c0_2 = arith.constant 0 : index
    %c0_3 = arith.constant 0 : index
    %2 = vector.load %arg3[%c0_2, %c0_3] : memref<8x64xbf16, #tpu.memory_space<vmem>>, vector<8x64xbf16>
    %cst = arith.constant dense<0.000000e+00> : vector<512x64xf32>
    %3 = tpu.matmul %1, %2, %cst {dimension_numbers = #tpu.dot_dimension_numbers<[1], [0], [0], [1], [0, 0, 1, 1], [], []>} : vector<512x8xbf16>, vector<8x64xbf16>, vector<512x64xf32> -> vector<512x64xf32>
    %c0_4 = arith.constant 0 : index
    %c0_5 = arith.constant 0 : index
    %4 = vector.load %arg4[%c0_4, %c0_5] : memref<1x64xf32, #tpu.memory_space<vmem>>, vector<1x64xf32>
    %5 = vector.broadcast %4 : vector<1x64xf32> to vector<512x64xf32>
    %6 = arith.addf %3, %5 : vector<512x64xf32>
    %cst_6 = arith.constant 0.000000e+00 : f32
    %7 = vector.broadcast %cst_6 : f32 to vector<512x64xf32>
    %8 = arith.maximumf %6, %7 : vector<512x64xf32>
    %9 = arith.truncf %8 : vector<512x64xf32> to vector<512x64xbf16>
    %c0_7 = arith.constant 0 : index
    %c0_8 = arith.constant 0 : index
    %10 = vector.load %arg5[%c0_7, %c0_8] : memref<64x128xbf16, #tpu.memory_space<vmem>>, vector<64x128xbf16>
    %cst_9 = arith.constant dense<0.000000e+00> : vector<512x128xf32>
    %11 = tpu.matmul %9, %10, %cst_9 {dimension_numbers = #tpu.dot_dimension_numbers<[1], [0], [0], [1], [0, 0, 1, 1], [], []>} : vector<512x64xbf16>, vector<64x128xbf16>, vector<512x128xf32> -> vector<512x128xf32>
    %c0_10 = arith.constant 0 : index
    %c0_11 = arith.constant 0 : index
    %12 = vector.load %arg6[%c0_10, %c0_11] : memref<1x128xf32, #tpu.memory_space<vmem>>, vector<1x128xf32>
    %13 = vector.broadcast %12 : vector<1x128xf32> to vector<512x128xf32>
    %14 = arith.addf %11, %13 : vector<512x128xf32>
    %cst_12 = arith.constant 0.000000e+00 : f32
    %15 = vector.broadcast %cst_12 : f32 to vector<512x128xf32>
    %16 = arith.maximumf %14, %15 : vector<512x128xf32>
    %17 = arith.truncf %16 : vector<512x128xf32> to vector<512x128xbf16>
    %c0_13 = arith.constant 0 : index
    %c0_14 = arith.constant 0 : index
    %18 = vector.load %arg7[%c0_13, %c0_14] : memref<128x1024xbf16, #tpu.memory_space<vmem>>, vector<128x1024xbf16>
    %cst_15 = arith.constant dense<0.000000e+00> : vector<512x1024xf32>
    %19 = tpu.matmul %17, %18, %cst_15 {dimension_numbers = #tpu.dot_dimension_numbers<[1], [0], [0], [1], [0, 0, 1, 1], [], []>} : vector<512x128xbf16>, vector<128x1024xbf16>, vector<512x1024xf32> -> vector<512x1024xf32>
    %20 = vector.shape_cast %19 : vector<512x1024xf32> to vector<64x8x1024xf32>
    %cst_16 = arith.constant dense<0xFF800000> : vector<8x1024xf32>
    %21 = vector.multi_reduction <maximumf>, %20, %cst_16 [0] : vector<64x8x1024xf32> to vector<8x1024xf32>
    %c0_i32 = arith.constant 0 : i32
    %22 = arith.cmpi eq, %arg1, %c0_i32 : i32
    %23 = arith.extui %22 : i1 to i32
    %c0_i32_17 = arith.constant 0 : i32
    %24 = arith.cmpi ne, %23, %c0_i32_17 : i32
    scf.if %24 {
      %c0_22 = arith.constant 0 : index
      %c0_23 = arith.constant 0 : index
      %31 = vector.load %arg16[%c0_22, %c0_23] : memref<8x1024xf32, #tpu.memory_space<vmem>>, vector<8x1024xf32>
      tpu.vector_store %arg16[%c0_22, %c0_23], %21 {strides = array<i32>} : memref<8x1024xf32, #tpu.memory_space<vmem>>, vector<8x1024xf32>,
    } else {
    }
    %c0_i32_18 = arith.constant 0 : i32
    %25 = arith.cmpi sgt, %arg1, %c0_i32_18 : i32
    %26 = arith.extui %25 : i1 to i32
    %c0_i32_19 = arith.constant 0 : i32
    %27 = arith.cmpi ne, %26, %c0_i32_19 : i32
    scf.if %27 {
      %c0_22 = arith.constant 0 : index
      %c0_23 = arith.constant 0 : index
      %31 = vector.load %arg16[%c0_22, %c0_23] : memref<8x1024xf32, #tpu.memory_space<vmem>>, vector<8x1024xf32>
      %32 = arith.maximumf %31, %21 : vector<8x1024xf32>
      %c0_24 = arith.constant 0 : index
      %c0_25 = arith.constant 0 : index
      %33 = vector.load %arg16[%c0_24, %c0_25] : memref<8x1024xf32, #tpu.memory_space<vmem>>, vector<8x1024xf32>
      tpu.vector_store %arg16[%c0_24, %c0_25], %32 {strides = array<i32>} : memref<8x1024xf32, #tpu.memory_space<vmem>>, vector<8x1024xf32>,
    } else {
    }
    %c0_i32_20 = arith.constant 0 : i32
    %28 = arith.cmpi eq, %arg1, %c0_i32_20 : i32
    %29 = arith.extui %28 : i1 to i32
    %c0_i32_21 = arith.constant 0 : i32
    %30 = arith.cmpi ne, %29, %c0_i32_21 : i32
    scf.if %30 {
      %c0_22 = arith.constant 0 : index
      %c0_23 = arith.constant 0 : index
      %31 = vector.load %arg16[%c0_22, %c0_23] : memref<8x1024xf32, #tpu.memory_space<vmem>>, vector<8x1024xf32>
      %cst_24 = arith.constant dense<0xFF800000> : vector<1024xf32>
      %32 = vector.multi_reduction <maximumf>, %31, %cst_24 [0] : vector<8x1024xf32> to vector<1024xf32>
      %33 = vector.shape_cast %32 : vector<1024xf32> to vector<1x1024xf32>
      %c0_25 = arith.constant 0 : index
      %c0_26 = arith.constant 0 : index
      %34 = vector.load %arg8[%c0_25, %c0_26] : memref<1x1024xf32, #tpu.memory_space<vmem>>, vector<1x1024xf32>
      %35 = arith.addf %33, %34 : vector<1x1024xf32>
      %36 = arith.truncf %35 : vector<1x1024xf32> to vector<1x1024xbf16>
      %c0_27 = arith.constant 0 : index
      %c0_28 = arith.constant 0 : index
      %37 = vector.load %arg9[%c0_27, %c0_28] : memref<1024x512xbf16, #tpu.memory_space<vmem>>, vector<1024x512xbf16>
      %cst_29 = arith.constant dense<0.000000e+00> : vector<1x512xf32>
      %38 = tpu.matmul %36, %37, %cst_29 {dimension_numbers = #tpu.dot_dimension_numbers<[1], [0], [0], [1], [0, 0, 1, 1], [], []>} : vector<1x1024xbf16>, vector<1024x512xbf16>, vector<1x512xf32> -> vector<1x512xf32>
      %c0_30 = arith.constant 0 : index
      %c0_31 = arith.constant 0 : index
      %39 = vector.load %arg10[%c0_30, %c0_31] : memref<1x512xf32, #tpu.memory_space<vmem>>, vector<1x512xf32>
      %40 = arith.addf %38, %39 : vector<1x512xf32>
      %cst_32 = arith.constant 0.000000e+00 : f32
      %41 = vector.broadcast %cst_32 : f32 to vector<1x512xf32>
      %42 = arith.maximumf %40, %41 : vector<1x512xf32>
      %43 = arith.truncf %42 : vector<1x512xf32> to vector<1x512xbf16>
      %c0_33 = arith.constant 0 : index
      %c0_34 = arith.constant 0 : index
      %44 = vector.load %arg11[%c0_33, %c0_34] : memref<512x256xbf16, #tpu.memory_space<vmem>>, vector<512x256xbf16>
      %cst_35 = arith.constant dense<0.000000e+00> : vector<1x256xf32>
      %45 = tpu.matmul %43, %44, %cst_35 {dimension_numbers = #tpu.dot_dimension_numbers<[1], [0], [0], [1], [0, 0, 1, 1], [], []>} : vector<1x512xbf16>, vector<512x256xbf16>, vector<1x256xf32> -> vector<1x256xf32>
      %c0_36 = arith.constant 0 : index
      %c0_37 = arith.constant 0 : index
      %46 = vector.load %arg12[%c0_36, %c0_37] : memref<1x256xf32, #tpu.memory_space<vmem>>, vector<1x256xf32>
      %47 = arith.addf %45, %46 : vector<1x256xf32>
      %cst_38 = arith.constant 0.000000e+00 : f32
      %48 = vector.broadcast %cst_38 : f32 to vector<1x256xf32>
      %49 = arith.maximumf %47, %48 : vector<1x256xf32>
      %50 = arith.truncf %49 : vector<1x256xf32> to vector<1x256xbf16>
      %c0_39 = arith.constant 0 : index
      %c0_40 = arith.constant 0 : index
      %51 = vector.load %arg13[%c0_39, %c0_40] : memref<256x16xbf16, #tpu.memory_space<vmem>>, vector<256x16xbf16>
      %cst_41 = arith.constant dense<0.000000e+00> : vector<1x16xf32>
      %52 = tpu.matmul %50, %51, %cst_41 {dimension_numbers = #tpu.dot_dimension_numbers<[1], [0], [0], [1], [0, 0, 1, 1], [], []>} : vector<1x256xbf16>, vector<256x16xbf16>, vector<1x16xf32> -> vector<1x16xf32>
      %c0_42 = arith.constant 0 : index
      %c0_43 = arith.constant 0 : index
      %53 = vector.load %arg14[%c0_42, %c0_43] : memref<1x16xf32, #tpu.memory_space<vmem>>, vector<1x16xf32>
      %54 = arith.addf %52, %53 : vector<1x16xf32>
      %c0_44 = arith.constant 0 : index
      %c0_45 = arith.constant 0 : index
      %c0_46 = arith.constant 0 : index
      %55 = vector.load %arg15[%c0_44, %c0_45, %c0_46] : memref<1x1x16xf32, #tpu.memory_space<vmem>>, vector<1x1x16xf32>
      %56 = vector.shape_cast %55 : vector<1x1x16xf32> to vector<1x16xf32>
      %57 = vector.shape_cast %54 : vector<1x16xf32> to vector<1x1x16xf32>
      tpu.vector_store %arg15[%c0_44, %c0_45, %c0_46], %57 {strides = array<i32>} : memref<1x1x16xf32, #tpu.memory_space<vmem>>, vector<1x1x16xf32>,
    } else {
    }
    return
  }
  func.func @transform_0(%arg0: i32, %arg1: i32) -> (i32, i32, i32) {
    %c0_i32 = arith.constant 0 : i32
    %c0_i32_0 = arith.constant 0 : i32
    return %arg0, %arg1, %c0_i32 : i32, i32, i32
  }
  func.func @transform_1(%arg0: i32, %arg1: i32) -> (i32, i32) {
    %c0_i32 = arith.constant 0 : i32
    %c0_i32_0 = arith.constant 0 : i32
    %c0_i32_1 = arith.constant 0 : i32
    return %c0_i32, %c0_i32_0 : i32, i32
  }
  func.func @transform_2(%arg0: i32, %arg1: i32) -> (i32, i32) {
    %c0_i32 = arith.constant 0 : i32
    %c0_i32_0 = arith.constant 0 : i32
    %c0_i32_1 = arith.constant 0 : i32
    return %c0_i32, %c0_i32_0 : i32, i32
  }
  func.func @transform_3(%arg0: i32, %arg1: i32) -> (i32, i32) {
    %c0_i32 = arith.constant 0 : i32
    %c0_i32_0 = arith.constant 0 : i32
    %c0_i32_1 = arith.constant 0 : i32
    return %c0_i32, %c0_i32_0 : i32, i32
  }
  func.func @transform_4(%arg0: i32, %arg1: i32) -> (i32, i32) {
    %c0_i32 = arith.constant 0 : i32
    %c0_i32_0 = arith.constant 0 : i32
    %c0_i32_1 = arith.constant 0 : i32
    return %c0_i32, %c0_i32_0 : i32, i32
  }
  func.func @transform_5(%arg0: i32, %arg1: i32) -> (i32, i32) {
    %c0_i32 = arith.constant 0 : i32
    %c0_i32_0 = arith.constant 0 : i32
    %c0_i32_1 = arith.constant 0 : i32
    return %c0_i32, %c0_i32_0 : i32, i32
  }
  func.func @transform_6(%arg0: i32, %arg1: i32) -> (i32, i32) {
    %c0_i32 = arith.constant 0 : i32
    %c0_i32_0 = arith.constant 0 : i32
    %c0_i32_1 = arith.constant 0 : i32
    return %c0_i32, %c0_i32_0 : i32, i32
  }
  func.func @transform_7(%arg0: i32, %arg1: i32) -> (i32, i32) {
    %c0_i32 = arith.constant 0 : i32
    %c0_i32_0 = arith.constant 0 : i32
    %c0_i32_1 = arith.constant 0 : i32
    return %c0_i32, %c0_i32_0 : i32, i32
  }
  func.func @transform_8(%arg0: i32, %arg1: i32) -> (i32, i32) {
    %c0_i32 = arith.constant 0 : i32
    %c0_i32_0 = arith.constant 0 : i32
    %c0_i32_1 = arith.constant 0 : i32
    return %c0_i32, %c0_i32_0 : i32, i32
  }
  func.func @transform_9(%arg0: i32, %arg1: i32) -> (i32, i32) {
    %c0_i32 = arith.constant 0 : i32
    %c0_i32_0 = arith.constant 0 : i32
    %c0_i32_1 = arith.constant 0 : i32
    return %c0_i32, %c0_i32_0 : i32, i32
  }
  func.func @transform_10(%arg0: i32, %arg1: i32) -> (i32, i32) {
    %c0_i32 = arith.constant 0 : i32
    %c0_i32_0 = arith.constant 0 : i32
    %c0_i32_1 = arith.constant 0 : i32
    return %c0_i32, %c0_i32_0 : i32, i32
  }
  func.func @transform_11(%arg0: i32, %arg1: i32) -> (i32, i32) {
    %c0_i32 = arith.constant 0 : i32
    %c0_i32_0 = arith.constant 0 : i32
    %c0_i32_1 = arith.constant 0 : i32
    return %c0_i32, %c0_i32_0 : i32, i32
  }
  func.func @transform_12(%arg0: i32, %arg1: i32) -> (i32, i32) {
    %c0_i32 = arith.constant 0 : i32
    %c0_i32_0 = arith.constant 0 : i32
    %c0_i32_1 = arith.constant 0 : i32
    return %c0_i32, %c0_i32_0 : i32, i32
  }
  func.func @transform_13(%arg0: i32, %arg1: i32) -> (i32, i32, i32) {
    %c0_i32 = arith.constant 0 : i32
    %c0_i32_0 = arith.constant 0 : i32
    %c0_i32_1 = arith.constant 0 : i32
    return %arg0, %c0_i32, %c0_i32_0 : i32, i32, i32
  }
}

</mosaic_0001>

<bundles_post_ra>
// kernel: tpu_custom_call.1
= control target key start
LH: loop header
LB: loop body
LE: loop exit
PB: predicated region body
PF: predicated region fallthrough
CT: control target
= control target key end

     0   :  { %18 = vsyncpa [#allocation4], 0  ;;  %s10074_s0 = inlined_call_operand.vmem [shape: bf16[2,512,8], index: 0, kind: input, shape index: {}]   ;;  %s10075_s1 = inlined_call_operand.vmem [shape: bf16[8,64], index: 1, kind: input, shape index: {}]   ;;  %s10076_s2 = inlined_call_operand.vmem [shape: f32[1,64], index: 2, kind: input, shape index: {}]   ;;  %s10077_s3 = inlined_call_operand.vmem [shape: bf16[64,128], index: 3, kind: input, shape index: {}]   ;;  %s10078_s4 = inlined_call_operand.vmem [shape: f32[1,128], index: 4, kind: input, shape index: {}]   ;;  %s10079_s5 = inlined_call_operand.vmem [shape: bf16[128,1024], index: 5, kind: input, shape index: {}]   ;;  %s10080_s6 = inlined_call_operand.vmem [shape: f32[1,1024], index: 6, kind: input, shape index: {}]   ;;  %s10081_s7 = inlined_call_operand.hbm [shape: bf16[1024,512], index: 7, kind: input, shape index: {}]   ;;  %s10082_s8 = inlined_call_operand.vmem [shape: f32[1,512], index: 8, kind: input, shape index: {}]   ;;  %s10083_s9 = inlined_call_operand.hbm [shape: bf16[512,256], index: 9, kind: input, shape index: {}]   ;;  %s10084_s10 = inlined_call_operand.vmem [shape: f32[1,256], index: 10, kind: input, shape index: {}]   ;;  %s10085_s11 = inlined_call_operand.vmem [shape: bf16[256,16], index: 11, kind: input, shape index: {}]   ;;  %s10086_s12 = inlined_call_operand.vmem [shape: f32[1,16], index: 12, kind: input, shape index: {}]   ;;  %s10087_s13 = inlined_call_operand.hbm [shape: f32[2,1,16], index: 13, kind: output, shape index: {}]  }
   0x1   :  { %19 = vsyncpa [#allocation7], 0 }
   0x2   :  { %20 = vsyncpa [#allocation5], 0 }
   0x3   :  { %22 = vsyncpa [#allocation5 + $0x1], 0  ;;  %s8425_s25 = smov 0   ;;  %s8427_s26 = smov 0  }
   0x4   :  { %s8429_s27 = smov 0   ;;  %s8431_s28 = smov 0  }
   0x5   :  { %s8433_s29 = smov 0   ;;  %s8435_s30 = smov 0  }
   0x6 LB: > { %10118 = sst [smem:[#allocation12_spill]] %s8325_s25  ;;  %s6844_s14 = sadd.s32 4294967295, %s8345_s30   ;;  %s8345_s30 = sphi %s8435_s30, %s28_s30   ;;  %s8341_s29 = sphi %s8433_s29, %s10199_s29   ;;  %s8337_s28 = sphi %s8431_s28, %s10198_s28   ;;  %s8333_s27 = sphi %s8429_s27, %s10197_s27   ;;  %s8329_s26 = sphi %s8427_s26, %s10201_s26   ;;  %s8325_s25 = sphi %s8425_s25, %s10200_s25  }
   0x7   : > { %10119 = sst [smem:[#allocation13_spill]] %s8333_s27  ;;  %s6845_s15 = sadd.s32 4294967294, %s8345_s30  }
   0x8   : > { %10120 = sst [smem:[#allocation14_spill]] %s8341_s29  ;;  %s40_s16 = sadd.s32 1, %s8341_s29 }
   0x9   : > { %10121 = sst [smem:[#allocation15_spill]] %s8345_s30  ;;  %s327_s17 = sadd.s32 1, %s8333_s27 }
   0xa   : > { %p42_p0 = scmp.ge.s32.totalorder %s40_s16, 2  ;;  %p337_p1 = scmp.ne.s32.totalorder %s8333_s27, %s8329_s26 }
   0xb   : > { %p338_p2 = scmp.eq.s32.totalorder %s6844_s14, 1  ;;  %p343_p3 = scmp.ne.s32.totalorder %s8329_s26, %s8325_s25 }
   0xc   : > { %s10203_s16 = smov (%p42_p0, %s40_s16), 0  ;;  %p344_p5 = scmp.eq.s32.totalorder %s6845_s15, 1 }
   0xd   : > { %10122 = sst [smem:[#allocation16_spill]] %s10203_s16  ;;  %p8465_p4 = por %p338_p2, %p337_p1 }
   0xe   : > { %s324_s19 = ssub.s32 %s8341_s29, %s10203_s16  ;;  %p6846_p6 = scmp.ge.s32.totalorder %s8345_s30, 1 }
   0xf   : > { %s10123_s18 = scalar_select %p8465_p4, 1, 0 }
  0x10   : > { %p325_p7 = scmp.eq.s32.totalorder %s324_s19, 0  ;;  %p8472_p8 = por %p344_p5, %p343_p3 }
  0x11   : > { %p351_p9 = scmp.lt.s32.totalorder %s8345_s30, 3  ;;  %p8484_p11 = scmp.eq.s32.totalorder %s6844_s14, 0 }
  0x12   : > { %s10124_s20 = scalar_select %p8472_p8, 1, 0 }
  0x13   : > { %s8478_s21 = scalar_select %p325_p7, %s8333_s27, %s327_s17  }
  0x14   : > { %10125 = sst [smem:[#allocation17_spill]] %s10124_s20  ;;  %p8480_p10 = pnand %p6846_p6, %p351_p9 }
  0x15   : > { %10126 = sst [smem:[#allocation18_spill]] %s8478_s21  ;;  %s8347_s24 = smov [#allocation3]  }
  0x16   : > { %p7604_p12 = pneg %p8480_p10  ;;  %s381_s15 = sshll.u32 %s8347_s24, 4  ;;  %s382_s15 = int_to_ptr.vmem [resolvable:$true] %s381_s15 }
  0x17   : > { %s8348_s17 = smov [#allocation6]   ;;  %s8220_s14 = scalar_lea.vmem %s382_s15, 32768 }
  0x18   : > { %p8492_p13 = pnand %p8484_p11, %p7604_p12  ;;  %s397_s16 = sshll.u32 %s8348_s17, 4  ;;  %s398_s16 = int_to_ptr.vmem [resolvable:$true] %s397_s16 }
  0x19   : > { %p8221_p1 = scmp.ne.s32.totalorder %s382_s15, %s8220_s14  ;;  %p8228_p5 = scmp.lt.s32.totalorder %s382_s15, %s382_s15 }
  0x1a   : > { %p8211_p0 = pneg %p8492_p13  ;;  %p8229_p6 = scmp.lt.s32.totalorder %s8220_s14, %s8220_s14 }
  0x1c   : > { %p8223_p2 = pnand %p8221_p1, %p8211_p0  ;;  %p8230_p7 = por %p8229_p6, %p8228_p5 }
  0x1e   : > { %p8224_p3 = pneg %p8223_p2 }
  0x20   : > { %p8231_p9 = pnand %p8230_p7, %p8224_p3 }
  0x22   : > { %8234 = shalt.err (!%p8231_p9)
}
  0x23   : > { %s8349_s24 = smov 256   ;;  %s8350_s29 = smov 16  }
  0x24   : > { %7607 = dma.hbm_to_vmem [thread:$0]  (!%p8492_p13), %s10081_s7, 32768, %s382_s15, [#allocation4], %s8349_s24, %s8349_s24, %s8350_s29  }
  0x25   : > { %s8246_s27 = scalar_lea.vmem %s398_s16, 8192  ;;  %p8254_p8 = scmp.lt.s32.totalorder %s398_s16, %s398_s16 }
  0x26   : > { %p8247_p12 = scmp.ne.s32.totalorder %s398_s16, %s8246_s27  ;;  %p8255_p4 = scmp.lt.s32.totalorder %s8246_s27, %s8246_s27 }
  0x28   : > { %p8249_p1 = pnand %p8247_p12, %p8211_p0  ;;  %p8256_p5 = por %p8255_p4, %p8254_p8 }
  0x2a   : > { %p8250_p2 = pneg %p8249_p1 }
  0x2c   : > { %p8257_p3 = pnand %p8256_p5, %p8250_p2 }
  0x2e   : > { %8260 = shalt.err (!%p8257_p3)
}
  0x2f   : > { %s8351_s14 = smov 128   ;;  %s8352_s20 = smov 8  }
  0x30   : > { %7610 = dma.hbm_to_vmem [thread:$0]  (!%p8492_p13), %s10083_s9, 8192, %s398_s16, [#allocation7], %s8351_s14, %s8351_s14, %s8352_s20  }
  0x31   : > { %435 = sbr.rel (%p8480_p10) target bundleno = 1944 (0x798), region = 72 }
  0x36   : > { %8312 = dma.done.wait (%p8484_p11), [#allocation4], 32768  }
  0x37   : > { %8314 = vsyncadd (%p8484_p11), [#allocation4], 4294934528 }
  0x38   : > { %8316 = dma.done.wait (%p8484_p11), [#allocation7], 8192  }
  0x39   : > { %8318 = vsyncadd (%p8484_p11), [#allocation7], 4294959104  ;;  %p487_p4 = scmp.lt.s32.totalorder %s8337_s28, 1  ;;  %vm826_vm0 = vcmask 1043456   ;;  %vm729_vm1 = vcmask 64512   ;;  %v7707_v16 = vld [vmem:[%s10077_s3 + $0x18] sm:$0xff]  }
  0x3a   : > { %v561_v0 = vld [vmem:[%s10075_s1] sm:$0xf]  ;;  %v7708_v26 = vld [vmem:[%s10077_s3 + $0x10] sm:$0xff]   ;;  %v7709_v29 = vld [vmem:[%s10077_s3 + $0x8] sm:$0xff]   ;;  %vm1254_vm2 = vcmask 523264   ;;  %s484_s22 = sand.u32 1, %s8329_s26  }
  0x3b   : > { %s488_s25 = scalar_select %p487_p4, %s8337_s28, 1  ;;  %7592 = vmatprep.subr.msk.bf16.mxu0 %vm826_vm0, %v561_v0  ;;  %v828_v1 = vsel %vm826_vm0, %v561_v0, 0  ;;  %7593 = vmatprep.subr.msk.bf16.mxu1 %vm826_vm0, %v561_v0  ;;  %v7710_v30 = vld [vmem:[%s10077_s3] sm:$0xff]   ;;  %v8613_v38 = vld [vmem:[%s10079_s5 + $0x1c8] sm:$0xff]  ;;  %vm6738_vm3 = vcmask 122880  }
  0x3c   : > { %7453 = vmatpush3.bf16.msra.mxu0 %v828_v1  ;;  %7591 = vmatpush3.bf16.msra.mxu1 %v828_v1  ;;  %v8618_v39 = vld [vmem:[%s10079_s5 + $0x1e8] sm:$0xff]  ;;  %v1792_v42 = vld [vmem:[%s10079_s5 + $0x1c0] sm:$0xff]  ;;  %s7357_s19 = sshll.u32 %s8337_s28, 4  ;;  %s485_s24 = scalar_lea.vmem [#allocation8], %s484_s22 }
  0x3d   : > { %s7360_s27 = sshll.u32 %s488_s25, 8  ;;  %7518 = vmatprep.subr.bf16.mxu1 %v7707_v16  ;;  %v7015_v40 = vcombine.low %v8613_v38, %v8618_v39  ;;  %v7016_v41 = vcombine.high %v8613_v38, %v8618_v39  ;;  %v1796_v43 = vld [vmem:[%s10079_s5 + $0x1e0] sm:$0xff]  ;;  %s6753_s17 = sshll.u32 %s485_s24, 4  ;;  %s6754_s17 = int_to_ptr.vmem [resolvable:$true] %s6753_s17 }
  0x3e   : > { %s8529_s16 = scalar_lea.vmem %s10074_s0, %s7360_s27  ;;  %v7013_v44 = vcombine.low %v1792_v42, %v1796_v43  ;;  %v7014_v45 = vcombine.high %v1792_v42, %v1796_v43  ;;  %v1784_v46 = vld [vmem:[%s10079_s5 + $0x180] sm:$0xff]  ;;  %s10034_s27 = scalar_lea.hbm %s10087_s13, %s7357_s19 }
  0x3f   : > { %v7675_v2 = vld [vmem:[%s8529_s16] sm:$0xff]   ;;  %v7676_v3 = vld [vmem:[%s8529_s16 + $0x8] sm:$0xff]   ;;  %v7677_v4 = vld [vmem:[%s8529_s16 + $0x10] sm:$0xff]   ;;  %s6741_s29 = scalar_lea.sflag [#allocation5], %s484_s22  ;;  %s8261_s30 = scalar_lea.vmem %s6754_s17, 16 }
  0x40   : > { %7454 = vmatprep.mubr.msk.bf16.mxu0 %vm729_vm1, %v7675_v2  ;;  %v7678_v5 = vld [vmem:[%s8529_s16 + $0x18] sm:$0xff]   ;;  %v7679_v6 = vld [vmem:[%s8529_s16 + $0x20] sm:$0xff]   ;;  %v7680_v7 = vld [vmem:[%s8529_s16 + $0x28] sm:$0xff]   ;;  %2120 = vmatprep.subr.bf16.mxu0 %v7014_v45  ;;  %p8262_p8 = scmp.ne.s32.totalorder %s6754_s17, %s8261_s30  ;;  %p10191_p10 = scmp.ne.s32.totalorder %s10123_s18, 0 }
  0x41   : > { %7455 = vmatmul.mubr.msk.bf16.vlgmr.msra.gmra.mxu0 %vm729_vm1, %v7676_v3  ;;  %v7681_v8 = vld [vmem:[%s8529_s16 + $0x30] sm:$0xff]   ;;  %v7682_v9 = vld [vmem:[%s8529_s16 + $0x38] sm:$0xff]   ;;  %v7683_v10 = vld [vmem:[%s8529_s16 + $0x40] sm:$0xff]   ;;  %s8354_s28 = smov [#allocation8]  }
  0x42   : > { %7458 = vmatprep.mubr.msk.bf16.mxu0 %vm729_vm1, %v7677_v4  ;;  %v7703_v11 = vld [vmem:[%s8529_s16 + $0xe0] sm:$0xff]   ;;  %v7704_v12 = vld [vmem:[%s8529_s16 + $0xe8] sm:$0xff]   ;;  %v7705_v14 = vld [vmem:[%s8529_s16 + $0xf0] sm:$0xff]   ;;  %2121 = vmatpush1.bf16.msra.mxu0 %v7013_v44  ;;  %p8263_p11 = pnand %p8262_p8, %p10191_p10  ;;  %s8265_s20 = sshll.u32 %s8354_s28, 4  ;;  %s8266_s20 = int_to_ptr.vmem [resolvable:$false] %s8265_s20 }
  0x43   : > { %v7684_v13 = vld [vmem:[%s8529_s16 + $0x48] sm:$0xff]   ;;  %7510 = vmatprep.mubr.msk.bf16.mxu1 %vm729_vm1, %v7703_v11  ;;  %v7685_v15 = vld [vmem:[%s8529_s16 + $0x50] sm:$0xff]   ;;  %v7706_v17 = vld [vmem:[%s8529_s16 + $0xf8] sm:$0xff]   ;;  %p8268_p0 = scmp.lt.s32.totalorder %s6754_s17, %s8266_s20 }
  0x44   : > { %7511 = vmatmul.mubr.msk.bf16.vlgmr.msra.gmra.mxu1 %vm729_vm1, %v7704_v12  ;;  %v7686_v18 = vld [vmem:[%s8529_s16 + $0x58] sm:$0xff]   ;;  %v7687_v19 = vld [vmem:[%s8529_s16 + $0x60] sm:$0xff]   ;;  %v7688_v20 = vld [vmem:[%s8529_s16 + $0x68] sm:$0xff]   ;;  %p8264_p13 = pneg %p8263_p11 }
  0x45   : > { %7514 = vmatprep.mubr.msk.bf16.mxu1 %vm729_vm1, %v7705_v14  ;;  %7519 = vmatpush3.bf16.msra.mxu1 %v7707_v16  ;;  %v7689_v21 = vld [vmem:[%s8529_s16 + $0x70] sm:$0xff]   ;;  %v7690_v22 = vld [vmem:[%s8529_s16 + $0x78] sm:$0xff]   ;;  %v7691_v23 = vld [vmem:[%s8529_s16 + $0x80] sm:$0xff]  }
  0x46   : > { %v7692_v24 = vld [vmem:[%s8529_s16 + $0x88] sm:$0xff]   ;;  %v7693_v25 = vld [vmem:[%s8529_s16 + $0x90] sm:$0xff]   ;;  %v7694_v27 = vld [vmem:[%s8529_s16 + $0x98] sm:$0xff]   ;;  %7520 = vmatprep.subr.bf16.mxu1 %v7708_v26 }
  0x47   : > { %v7695_v28 = vld [vmem:[%s8529_s16 + $0xa0] sm:$0xff]   ;;  %v7696_v31 = vld [vmem:[%s8529_s16 + $0xa8] sm:$0xff]   ;;  %v7697_v32 = vld [vmem:[%s8529_s16 + $0xb0] sm:$0xff]  }
  0x48   : > { %v7698_v33 = vld [vmem:[%s8529_s16 + $0xb8] sm:$0xff]   ;;  %v7699_v34 = vld [vmem:[%s8529_s16 + $0xc0] sm:$0xff]   ;;  %v7700_v35 = vld [vmem:[%s8529_s16 + $0xc8] sm:$0xff]  }
  0x49   : > { %7459 = vmatmul.mubr.msk.bf16.gmra.mxu0 %vm729_vm1, %v7678_v5  ;;  %7521 = vmatpush3.bf16.msra.mxu1 %v7708_v26  ;;  %v7701_v36 = vld [vmem:[%s8529_s16 + $0xd0] sm:$0xff]   ;;  %v7702_v37 = vld [vmem:[%s8529_s16 + $0xd8] sm:$0xff]   ;;  %v1788_v47 = vld [vmem:[%s10079_s5 + $0x1a0] sm:$0xff]  ;;  %s8267_s16 = scalar_lea.vmem %s8266_s20, 32 }
  0x4a   : > { %7462 = vmatprep.mubr.msk.bf16.mxu0 %vm729_vm1, %v7679_v6  ;;  %7522 = vmatprep.subr.bf16.mxu1 %v7709_v29  ;;  %v7005_v48 = vcombine.low %v1784_v46, %v1788_v47  ;;  %v7006_v49 = vcombine.high %v1784_v46, %v1788_v47  ;;  %v1776_v50 = vld [vmem:[%s10079_s5 + $0x140] sm:$0xff]  ;;  %p8269_p6 = scmp.lt.s32.totalorder %s8267_s16, %s8261_s30 }
  0x4b   : > { %v1780_v51 = vld [vmem:[%s10079_s5 + $0x160] sm:$0xff] }
  0x4c   : > { %7515 = vmatmul.mubr.msk.bf16.gmra.mxu1 %vm729_vm1, %v7706_v17  ;;  %2122 = vmatprep.subr.bf16.mxu0 %v7006_v49  ;;  %v6997_v52 = vcombine.low %v1776_v50, %v1780_v51  ;;  %v6998_v53 = vcombine.high %v1776_v50, %v1780_v51  ;;  %v1768_v54 = vld [vmem:[%s10079_s5 + $0x100] sm:$0xff]  ;;  %v1773_v49 = vld [vmem:[%s10079_s5 + $0x128] sm:$0xff]  ;;  %p8270_p7 = por %p8269_p6, %p8268_p0 }
  0x4d   : > { %7523 = vmatpush3.bf16.msra.mxu1 %v7709_v29  ;;  %2123 = vmatpush1.bf16.msra.mxu0 %v7005_v48  ;;  %v1772_v55 = vld [vmem:[%s10079_s5 + $0x120] sm:$0xff]  ;;  %v1769_v48 = vld [vmem:[%s10079_s5 + $0x108] sm:$0xff] }
  0x4e   : > { %7524 = vmatprep.subr.bf16.mxu1 %v7710_v30  ;;  %2124 = vmatprep.subr.bf16.mxu0 %v6998_v53  ;;  %v6989_v56 = vcombine.low %v1768_v54, %v1772_v55  ;;  %v6990_v57 = vcombine.high %v1768_v54, %v1772_v55  ;;  %v1760_v58 = vld [vmem:[%s10079_s5 + $0xc0] sm:$0xff]  ;;  %v6992_v54 = vcombine.high %v1769_v48, %v1773_v49  ;;  %p8271_p9 = pnand %p8270_p7, %p8264_p13 }
  0x4f   : > { %v1764_v59 = vld [vmem:[%s10079_s5 + $0xe0] sm:$0xff] }
  0x50   : > { %v6981_v60 = vcombine.low %v1760_v58, %v1764_v59  ;;  %v6982_v61 = vcombine.high %v1760_v58, %v1764_v59  ;;  %v1752_v62 = vld [vmem:[%s10079_s5 + $0x80] sm:$0xff] }
  0x51   : > { %7463 = vmatmul.mubr.msk.bf16.gmra.mxu0 %vm729_vm1, %v7680_v7  ;;  %7525 = vmatpush3.bf16.msra.mxu1 %v7710_v30  ;;  %v1756_v63 = vld [vmem:[%s10079_s5 + $0xa0] sm:$0xff] }
  0x52   : > { %7466 = vmatprep.mubr.msk.bf16.mxu0 %vm729_vm1, %v7681_v8  ;;  %2473 = vmatprep.subr.bf16.mxu1 %v7016_v41  ;;  %v6973_v0 = vcombine.low %v1752_v62, %v1756_v63  ;;  %v6974_v1 = vcombine.high %v1752_v62, %v1756_v63  ;;  %v1744_v2 = vld [vmem:[%s10079_s5 + $0x40] sm:$0xff]  ;;  %v6991_v63 = vcombine.low %v1769_v48, %v1773_v49 }
  0x53   : > { %2125 = vmatpush1.bf16.msra.mxu0 %v6997_v52  ;;  %v1748_v3 = vld [vmem:[%s10079_s5 + $0x60] sm:$0xff] }
  0x54   : > { %2126 = vmatprep.subr.bf16.mxu0 %v6990_v57  ;;  %v6965_v4 = vcombine.low %v1744_v2, %v1748_v3  ;;  %v6966_v5 = vcombine.high %v1744_v2, %v1748_v3  ;;  %v8669_v8 = vld [vmem:[%s10076_s2] ss:$0 sm:$0xff]  ;;  %v1765_v57 = vld [vmem:[%s10079_s5 + $0xe8] sm:$0xff] }
  0x55   : > { %v1736_v14 = vld [vmem:[%s10079_s5] sm:$0xff]  ;;  %v1753_v3 = vld [vmem:[%s10079_s5 + $0x88] sm:$0xff] }
  0x57   : > { %2127 = vmatpush1.bf16.msra.mxu0 %v6989_v56  ;;  %v1761_v56 = vld [vmem:[%s10079_s5 + $0xc8] sm:$0xff] }
  0x58   : > { %2128 = vmatprep.subr.bf16.mxu0 %v6982_v61 }
  0x59   : > { %7467 = vmatmul.mubr.msk.bf16.gmra.mxu0 %vm729_vm1, %v7682_v9 }
  0x5a   : > { %7470 = vmatprep.mubr.msk.bf16.mxu0 %vm729_vm1, %v7683_v10 }
  0x5b   : > { %2129 = vmatpush1.bf16.msra.mxu0 %v6981_v60 }
  0x5c   : > { %2130 = vmatprep.subr.bf16.mxu0 %v6974_v1  ;;  %v6984_v1 = vcombine.high %v1761_v56, %v1765_v57 }
  0x5f   : > { %2131 = vmatpush1.bf16.msra.mxu0 %v6973_v0 }
  0x60   : > { %2132 = vmatprep.subr.bf16.mxu0 %v6966_v5 }
  0x61   : > { %7471 = vmatmul.mubr.msk.bf16.gmra.mxu0 %vm729_vm1, %v7684_v13 }
  0x62   : > { %7474 = vmatprep.mubr.msk.bf16.mxu0 %vm729_vm1, %v7685_v15  ;;  %v1740_v15 = vld [vmem:[%s10079_s5 + $0x20] sm:$0xff] }
  0x63   : > { %2133 = vmatpush1.bf16.msra.mxu0 %v6965_v4  ;;  %v6957_v17 = vcombine.low %v1736_v14, %v1740_v15  ;;  %v1757_v4 = vld [vmem:[%s10079_s5 + $0xa8] sm:$0xff] }
  0x69   : > { %7475 = vmatmul.mubr.msk.bf16.gmra.mxu0 %vm729_vm1, %v7686_v18  ;;  %v6958_v18 = vcombine.high %v1736_v14, %v1740_v15  ;;  %v1745_v15 = vld [vmem:[%s10079_s5 + $0x48] sm:$0xff] }
  0x6a   : > { %7478 = vmatprep.mubr.msk.bf16.mxu0 %vm729_vm1, %v7687_v19 }
  0x6b   : > { %2134 = vmatprep.subr.bf16.mxu0 %v6958_v18 }
  0x6c   : > { %2135 = vmatpush1.bf16.msra.mxu0 %v6957_v17 }
  0x71   : > { %7479 = vmatmul.mubr.msk.bf16.gmra.mxu0 %vm729_vm1, %v7688_v20 }
  0x72   : > { %7482 = vmatprep.mubr.msk.bf16.mxu0 %vm729_vm1, %v7689_v21 }
  0x79   : > { %7483 = vmatmul.mubr.msk.bf16.gmra.mxu0 %vm729_vm1, %v7690_v22 }
  0x7a   : > { %7486 = vmatprep.mubr.msk.bf16.mxu0 %vm729_vm1, %v7691_v23  ;;  %v1785_v23 = vld [vmem:[%s10079_s5 + $0x188] sm:$0xff] }
  0x81   : > { %7487 = vmatmul.mubr.msk.bf16.gmra.mxu0 %vm729_vm1, %v7692_v24  ;;  %v1789_v24 = vld [vmem:[%s10079_s5 + $0x1a8] sm:$0xff] }
  0x82   : > { %7490 = vmatprep.mubr.msk.bf16.mxu0 %vm729_vm1, %v7693_v25  ;;  %v7007_v44 = vcombine.low %v1785_v23, %v1789_v24 }
  0x89   : > { %7491 = vmatmul.mubr.msk.bf16.gmra.mxu0 %vm729_vm1, %v7694_v27 }
  0x8a   : > { %7494 = vmatprep.mubr.msk.bf16.mxu0 %vm729_vm1, %v7695_v28 }
  0x91   : > { %7495 = vmatmul.mubr.msk.bf16.gmra.mxu0 %vm729_vm1, %v7696_v31 }
  0x92   : > { %7498 = vmatprep.mubr.msk.bf16.mxu0 %vm729_vm1, %v7697_v32  ;;  %v7008_v32 = vcombine.high %v1785_v23, %v1789_v24 }
  0x99   : > { %7499 = vmatmul.mubr.msk.bf16.gmra.mxu0 %vm729_vm1, %v7698_v33 }
  0x9a   : > { %7502 = vmatprep.mubr.msk.bf16.mxu0 %vm729_vm1, %v7699_v34  ;;  %v1777_v34 = vld [vmem:[%s10079_s5 + $0x148] sm:$0xff] }
  0xa1   : > { %7503 = vmatmul.mubr.msk.bf16.gmra.mxu0 %vm729_vm1, %v7700_v35  ;;  %v1781_v35 = vld [vmem:[%s10079_s5 + $0x168] sm:$0xff] }
  0xa2   : > { %7506 = vmatprep.mubr.msk.bf16.mxu0 %vm729_vm1, %v7701_v36  ;;  %v7000_v46 = vcombine.high %v1777_v34, %v1781_v35  ;;  %v6999_v39 = vcombine.low %v1777_v34, %v1781_v35 }
  0xa9   : > { %7507 = vmatmul.mubr.msk.bf16.gmra.mxu0 %vm729_vm1, %v7702_v37 }
 0x101   : > { %v7456_v6 = vpop.f32.mrf.mxu0 }
 0x102   : > { %v873_v12 = vadd.f32 %v7456_v6, %v8669_v8 }
 0x103   : > { %v864_v7 = vpop.f32.mrf.mxu0 }
 0x104   : > { %v865_v10 = vadd.f32 %v8669_v8, %v864_v7  ;;  %v1121_v25 = vmax.f32 %v873_v12, 0.0 }
 0x105   : > { %v7457_v9 = vpop.f32.mrf.mxu0 }
 0x106   : > { %v876_v11 = vadd.f32 %v7457_v9, %v8669_v8  ;;  %v1119_v21 = vmax.f32 %v865_v10, 0.0 }
 0x107   : > { %v867_v13 = vpop.f32.mrf.mxu0 }
 0x108   : > { %v868_v16 = vadd.f32 %v8669_v8, %v867_v13  ;;  %v1122_v19 = vmax.f32 %v876_v11, 0.0  ;;  %v6983_v11 = vcombine.low %v1761_v56, %v1765_v57  ;;  %v6976_v13 = vcombine.high %v1753_v3, %v1757_v4 }
 0x109   : > { %v7460_v20 = vpop.f32.mrf.mxu0 }
 0x10a   : > { %v1120_v22 = vmax.f32 %v868_v16, 0.0  ;;  %v889_v26 = vadd.f32 %v7460_v20, %v8669_v8  ;;  %v1184_v30 = vpack.c.bf16 %v1122_v19, %v1121_v25  ;;  %v1749_v16 = vld [vmem:[%s10079_s5 + $0x68] sm:$0xff] }
 0x10b   : > { %v880_v27 = vpop.f32.mrf.mxu0  ;;  %v6968_v24 = vcombine.high %v1745_v15, %v1749_v16 }
 0x10c   : > { %v1183_v28 = vpack.c.bf16 %v1120_v22, %v1119_v21  ;;  %v881_v29 = vadd.f32 %v8669_v8, %v880_v27  ;;  %v1125_v36 = vmax.f32 %v889_v26, 0.0  ;;  %v6975_v22 = vcombine.low %v1753_v3, %v1757_v4  ;;  %v1737_v26 = vld [vmem:[%s10079_s5 + $0x8] sm:$0xff] }
 0x10d   : > { %v7461_v31 = vpop.f32.mrf.mxu0  ;;  %v1741_v27 = vld [vmem:[%s10079_s5 + $0x28] sm:$0xff] }
 0x10e   : > { %v892_v33 = vadd.f32 %v7461_v31, %v8669_v8  ;;  %7526 = vmatprep.mubr.msk.bf16.mxu1 %vm1254_vm2, %v1183_v28  ;;  %v1123_v41 = vmax.f32 %v881_v29, 0.0  ;;  %v6960_v35 = vcombine.high %v1737_v26, %v1741_v27 }
 0x10f   : > { %v883_v37 = vpop.f32.mrf.mxu0  ;;  %7527 = vmatmul.mubr.msk.bf16.vlgmr.msra.gmra.mxu1 %vm1254_vm2, %v1184_v30 }
 0x110   : > { %v1126_v42 = vmax.f32 %v892_v33, 0.0  ;;  %v884_v43 = vadd.f32 %v8669_v8, %v883_v37  ;;  %2474 = vmatpush1.bf16.msra.mxu1 %v7015_v40  ;;  %v6967_v33 = vcombine.low %v1745_v15, %v1749_v16 }
 0x111   : > { %v7464_v45 = vpop.f32.mrf.mxu0  ;;  %2475 = vmatprep.subr.bf16.mxu1 %v7008_v32 }
 0x112   : > { %v1124_v47 = vmax.f32 %v884_v43, 0.0  ;;  %v1186_v50 = vpack.c.bf16 %v1126_v42, %v1125_v36  ;;  %v905_v51 = vadd.f32 %v7464_v45, %v8669_v8  ;;  %v6959_v45 = vcombine.low %v1737_v26, %v1741_v27 }
 0x113   : > { %v896_v52 = vpop.f32.mrf.mxu0 }
 0x114   : > { %v1185_v53 = vpack.c.bf16 %v1124_v47, %v1123_v41  ;;  %v897_v38 = vadd.f32 %v8669_v8, %v896_v52  ;;  %2476 = vmatpush1.bf16.msra.mxu1 %v7007_v44  ;;  %v1129_v58 = vmax.f32 %v905_v51, 0.0 }
 0x115   : > { %v7465_v40 = vpop.f32.mrf.mxu0  ;;  %2477 = vmatprep.subr.bf16.mxu1 %v7000_v46 }
 0x116   : > { %7530 = vmatprep.mubr.msk.bf16.mxu1 %vm1254_vm2, %v1185_v53  ;;  %v908_v55 = vadd.f32 %v7465_v40, %v8669_v8  ;;  %v1127_v60 = vmax.f32 %v897_v38, 0.0 }
 0x117   : > { %7531 = vmatmul.mubr.msk.bf16.gmra.mxu1 %vm1254_vm2, %v1186_v50  ;;  %v899_v59 = vpop.f32.mrf.mxu0 }
 0x118   : > { %v1130_v61 = vmax.f32 %v908_v55, 0.0  ;;  %v900_v62 = vadd.f32 %v8669_v8, %v899_v59  ;;  %2478 = vmatpush1.bf16.msra.mxu1 %v6999_v39 }
 0x119   : > { %v7468_v0 = vpop.f32.mrf.mxu0  ;;  %2479 = vmatprep.subr.bf16.mxu1 %v6992_v54 }
 0x11a   : > { %v1128_v2 = vmax.f32 %v900_v62, 0.0  ;;  %v1188_v5 = vpack.c.bf16 %v1130_v61, %v1129_v58  ;;  %v921_v6 = vadd.f32 %v7468_v0, %v8669_v8 }
 0x11b   : > { %v912_v7 = vpop.f32.mrf.mxu0 }
 0x11c   : > { %v1187_v9 = vpack.c.bf16 %v1128_v2, %v1127_v60  ;;  %v913_v10 = vadd.f32 %v8669_v8, %v912_v7  ;;  %2480 = vmatpush1.bf16.msra.mxu1 %v6991_v63  ;;  %v1133_v17 = vmax.f32 %v921_v6, 0.0 }
 0x11d   : > { %v7469_v12 = vpop.f32.mrf.mxu0  ;;  %2481 = vmatprep.subr.bf16.mxu1 %v6984_v1 }
 0x11e   : > { %7534 = vmatprep.mubr.msk.bf16.mxu1 %vm1254_vm2, %v1187_v9  ;;  %v924_v14 = vadd.f32 %v7469_v12, %v8669_v8  ;;  %v1131_v19 = vmax.f32 %v913_v10, 0.0 }
 0x11f   : > { %7535 = vmatmul.mubr.msk.bf16.gmra.mxu1 %vm1254_vm2, %v1188_v5  ;;  %v915_v18 = vpop.f32.mrf.mxu0 }
 0x120   : > { %v1134_v20 = vmax.f32 %v924_v14, 0.0  ;;  %v916_v21 = vadd.f32 %v8669_v8, %v915_v18  ;;  %2482 = vmatpush1.bf16.msra.mxu1 %v6983_v11 }
 0x121   : > { %v7472_v23 = vpop.f32.mrf.mxu0  ;;  %2483 = vmatprep.subr.bf16.mxu1 %v6976_v13 }
 0x122   : > { %v1132_v25 = vmax.f32 %v916_v21, 0.0  ;;  %v1190_v28 = vpack.c.bf16 %v1134_v20, %v1133_v17  ;;  %v937_v29 = vadd.f32 %v7472_v23, %v8669_v8 }
 0x123   : > { %v928_v30 = vpop.f32.mrf.mxu0 }
 0x124   : > { %v1189_v31 = vpack.c.bf16 %v1132_v25, %v1131_v19  ;;  %v929_v32 = vadd.f32 %v8669_v8, %v928_v30  ;;  %2484 = vmatpush1.bf16.msra.mxu1 %v6975_v22  ;;  %v1137_v37 = vmax.f32 %v937_v29, 0.0 }
 0x125   : > { %v7473_v34 = vpop.f32.mrf.mxu0  ;;  %2485 = vmatprep.subr.bf16.mxu1 %v6968_v24 }
 0x126   : > { %7538 = vmatprep.mubr.msk.bf16.mxu1 %vm1254_vm2, %v1189_v31  ;;  %v940_v36 = vadd.f32 %v7473_v34, %v8669_v8  ;;  %v1135_v42 = vmax.f32 %v929_v32, 0.0 }
 0x127   : > { %7539 = vmatmul.mubr.msk.bf16.gmra.mxu1 %vm1254_vm2, %v1190_v28  ;;  %v931_v41 = vpop.f32.mrf.mxu0 }
 0x128   : > { %v1138_v43 = vmax.f32 %v940_v36, 0.0  ;;  %v932_v44 = vadd.f32 %v8669_v8, %v931_v41  ;;  %2486 = vmatpush1.bf16.msra.mxu1 %v6967_v33 }
 0x129   : > { %v7476_v46 = vpop.f32.mrf.mxu0  ;;  %2487 = vmatprep.subr.bf16.mxu1 %v6960_v35 }
 0x12a   : > { %v1136_v47 = vmax.f32 %v932_v44, 0.0  ;;  %v1192_v48 = vpack.c.bf16 %v1138_v43, %v1137_v37  ;;  %v953_v49 = vadd.f32 %v7476_v46, %v8669_v8 }
 0x12b   : > { %v944_v50 = vpop.f32.mrf.mxu0 }
 0x12c   : > { %v1191_v51 = vpack.c.bf16 %v1136_v47, %v1135_v42  ;;  %v945_v52 = vadd.f32 %v8669_v8, %v944_v50  ;;  %2488 = vmatpush1.bf16.msra.mxu1 %v6959_v45  ;;  %v1141_v39 = vmax.f32 %v953_v49, 0.0 }
 0x12d   : > { %v7477_v53 = vpop.f32.mrf.mxu0 }
 0x12e   : > { %7542 = vmatprep.mubr.msk.bf16.mxu1 %vm1254_vm2, %v1191_v51  ;;  %v956_v38 = vadd.f32 %v7477_v53, %v8669_v8  ;;  %v1139_v54 = vmax.f32 %v945_v52, 0.0 }
 0x12f   : > { %7543 = vmatmul.mubr.msk.bf16.gmra.mxu1 %vm1254_vm2, %v1192_v48  ;;  %v947_v40 = vpop.f32.mrf.mxu0 }
 0x130   : > { %v1142_v55 = vmax.f32 %v956_v38, 0.0  ;;  %v948_v56 = vadd.f32 %v8669_v8, %v947_v40 }
 0x131   : > { %v7480_v57 = vpop.f32.mrf.mxu0 }
 0x132   : > { %v1140_v58 = vmax.f32 %v948_v56, 0.0  ;;  %v1194_v59 = vpack.c.bf16 %v1142_v55, %v1141_v39  ;;  %v969_v60 = vadd.f32 %v7480_v57, %v8669_v8 }
 0x133   : > { %v960_v61 = vpop.f32.mrf.mxu0 }
 0x134   : > { %v1193_v62 = vpack.c.bf16 %v1140_v58, %v1139_v54  ;;  %v961_v63 = vadd.f32 %v8669_v8, %v960_v61  ;;  %v1145_v2 = vmax.f32 %v969_v60, 0.0  ;;  %v8782_v58 = vpop.f32.mrf.mxu1 }
 0x135   : > { %v7481_v0 = vpop.f32.mrf.mxu0 }
 0x136   : > { %7546 = vmatprep.mubr.msk.bf16.mxu1 %vm1254_vm2, %v1193_v62  ;;  %v972_v1 = vadd.f32 %v7481_v0, %v8669_v8  ;;  %v1143_v4 = vmax.f32 %v961_v63, 0.0 }
 0x137   : > { %7547 = vmatmul.mubr.msk.bf16.gmra.mxu1 %vm1254_vm2, %v1194_v59  ;;  %v963_v3 = vpop.f32.mrf.mxu0 }
 0x138   : > { %v1146_v5 = vmax.f32 %v972_v1, 0.0  ;;  %v964_v6 = vadd.f32 %v8669_v8, %v963_v3 }
 0x139   : > { %v7484_v7 = vpop.f32.mrf.mxu0 }
 0x13a   : > { %v1144_v9 = vmax.f32 %v964_v6, 0.0  ;;  %v1196_v10 = vpack.c.bf16 %v1146_v5, %v1145_v2  ;;  %v985_v11 = vadd.f32 %v7484_v7, %v8669_v8  ;;  %v1088_v2 = vpop.f32.mrf.mxu1  ;;  %v10102_v7 = vmov 0  }
 0x13b   : > { %v976_v12 = vpop.f32.mrf.mxu0  ;;  %2152 = vmatprep.mubr.bf16.mxu0 %v10102_v7 }
 0x13c   : > { %v1195_v13 = vpack.c.bf16 %v1144_v9, %v1143_v4  ;;  %v977_v14 = vadd.f32 %v8669_v8, %v976_v12  ;;  %v1149_v17 = vmax.f32 %v985_v11, 0.0  ;;  %v8791_v12 = vpop.f32.mrf.mxu1 }
 0x13d   : > { %v7485_v15 = vpop.f32.mrf.mxu0 }
 0x13e   : > { %7550 = vmatprep.mubr.msk.bf16.mxu1 %vm1254_vm2, %v1195_v13  ;;  %v988_v16 = vadd.f32 %v7485_v15, %v8669_v8  ;;  %v1147_v19 = vmax.f32 %v977_v14, 0.0 }
 0x13f   : > { %7551 = vmatmul.mubr.msk.bf16.gmra.mxu1 %vm1254_vm2, %v1196_v10  ;;  %v979_v18 = vpop.f32.mrf.mxu0 }
 0x140   : > { %v1150_v20 = vmax.f32 %v988_v16, 0.0  ;;  %v980_v21 = vadd.f32 %v8669_v8, %v979_v18 }
 0x141   : > { %v7488_v22 = vpop.f32.mrf.mxu0 }
 0x142   : > { %v1148_v23 = vmax.f32 %v980_v21, 0.0  ;;  %v1198_v24 = vpack.c.bf16 %v1150_v20, %v1149_v17  ;;  %v1001_v25 = vadd.f32 %v7488_v22, %v8669_v8  ;;  %v8805_v20 = vld [vmem:[%s10079_s5 + $0x1f0] sm:$0xff]  ;;  %v1091_v22 = vpop.f32.mrf.mxu1 }
 0x143   : > { %v992_v26 = vpop.f32.mrf.mxu0 }
 0x144   : > { %v1197_v27 = vpack.c.bf16 %v1148_v23, %v1147_v19  ;;  %v993_v28 = vadd.f32 %v8669_v8, %v992_v26  ;;  %v1153_v31 = vmax.f32 %v1001_v25, 0.0  ;;  %v8800_v19 = vld [vmem:[%s10079_s5 + $0x1d0] sm:$0xff]  ;;  %v8814_v26 = vld [vmem:[%s10079_s5 + $0x1d8] sm:$0xff] }
 0x145   : > { %v7489_v29 = vpop.f32.mrf.mxu0  ;;  %v7017_v23 = vcombine.low %v8800_v19, %v8805_v20 }
 0x146   : > { %7554 = vmatprep.mubr.msk.bf16.mxu1 %vm1254_vm2, %v1197_v27  ;;  %v1004_v30 = vadd.f32 %v7489_v29, %v8669_v8  ;;  %v1151_v33 = vmax.f32 %v993_v28, 0.0  ;;  %v8819_v27 = vld [vmem:[%s10079_s5 + $0x1f8] sm:$0xff] }
 0x147   : > { %7555 = vmatmul.mubr.msk.bf16.gmra.mxu1 %vm1254_vm2, %v1198_v24  ;;  %v995_v32 = vpop.f32.mrf.mxu0  ;;  %v7018_v24 = vcombine.high %v8800_v19, %v8805_v20  ;;  %v1770_v19 = vld [vmem:[%s10079_s5 + $0x110] sm:$0xff] }
 0x148   : > { %v1154_v34 = vmax.f32 %v1004_v30, 0.0  ;;  %v996_v35 = vadd.f32 %v8669_v8, %v995_v32  ;;  %v7020_v32 = vcombine.high %v8814_v26, %v8819_v27 }
 0x149   : > { %v7492_v36 = vpop.f32.mrf.mxu0  ;;  %2826 = vmatprep.subr.bf16.mxu0 %v7018_v24 }
 0x14a   : > { %v1152_v37 = vmax.f32 %v996_v35, 0.0  ;;  %v1200_v41 = vpack.c.bf16 %v1154_v34, %v1153_v31  ;;  %v1017_v42 = vadd.f32 %v7492_v36, %v8669_v8  ;;  %v7019_v31 = vcombine.low %v8814_v26, %v8819_v27  ;;  %v7516_v36 = vpop.f32.mrf.mxu1  ;;  %3179 = vmatprep.subr.bf16.mxu1 %v7020_v32  ;;  %v1771_v26 = vld [vmem:[%s10079_s5 + $0x118] sm:$0xff] }
 0x14b   : > { %v1008_v43 = vpop.f32.mrf.mxu0  ;;  %v1775_v27 = vld [vmem:[%s10079_s5 + $0x138] sm:$0xff] }
 0x14c   : > { %v1199_v44 = vpack.c.bf16 %v1152_v37, %v1151_v33  ;;  %v1009_v45 = vadd.f32 %v8669_v8, %v1008_v43  ;;  %v1157_v48 = vmax.f32 %v1017_v42, 0.0 }
 0x14d   : > { %v7493_v46 = vpop.f32.mrf.mxu0 }
 0x14e   : > { %7558 = vmatprep.mubr.msk.bf16.mxu1 %vm1254_vm2, %v1199_v44  ;;  %v1020_v47 = vadd.f32 %v7493_v46, %v8669_v8  ;;  %v1155_v50 = vmax.f32 %v1009_v45, 0.0 }
 0x14f   : > { %7559 = vmatmul.mubr.msk.bf16.gmra.mxu1 %vm1254_vm2, %v1200_v41  ;;  %v1011_v49 = vpop.f32.mrf.mxu0 }
 0x150   : > { %v1158_v51 = vmax.f32 %v1020_v47, 0.0  ;;  %v1012_v52 = vadd.f32 %v8669_v8, %v1011_v49  ;;  %v1104_v47 = vpop.f32.mrf.mxu1 }
 0x151   : > { %v7496_v53 = vpop.f32.mrf.mxu0 }
 0x152   : > { %v1156_v38 = vmax.f32 %v1012_v52, 0.0  ;;  %v1202_v39 = vpack.c.bf16 %v1158_v51, %v1157_v48  ;;  %v1033_v40 = vadd.f32 %v7496_v53, %v8669_v8  ;;  %v1089_v52 = vadd.f32 %v8669_v8, %v1088_v2 }
 0x153   : > { %v1024_v54 = vpop.f32.mrf.mxu0 }
 0x154   : > { %v1201_v55 = vpack.c.bf16 %v1156_v38, %v1155_v50  ;;  %v1025_v56 = vadd.f32 %v8669_v8, %v1024_v54  ;;  %v1161_v60 = vmax.f32 %v1033_v40, 0.0  ;;  %v7517_v54 = vpop.f32.mrf.mxu1 }
 0x155   : > { %v7497_v57 = vpop.f32.mrf.mxu0 }
 0x156   : > { %7562 = vmatprep.mubr.msk.bf16.mxu1 %vm1254_vm2, %v1201_v55  ;;  %v1036_v59 = vadd.f32 %v7497_v57, %v8669_v8  ;;  %v1159_v62 = vmax.f32 %v1025_v56, 0.0 }
 0x157   : > { %7563 = vmatmul.mubr.msk.bf16.gmra.mxu1 %vm1254_vm2, %v1202_v39  ;;  %v1027_v61 = vpop.f32.mrf.mxu0  ;;  %v1092_v39 = vadd.f32 %v8669_v8, %v1091_v22 }
 0x158   : > { %v1162_v63 = vmax.f32 %v1036_v59, 0.0  ;;  %v1028_v0 = vadd.f32 %v8669_v8, %v1027_v61  ;;  %v1175_v59 = vmax.f32 %v1089_v52, 0.0  ;;  %v1783_v52 = vld [vmem:[%s10079_s5 + $0x178] sm:$0xff] }
 0x159   : > { %v7500_v1 = vpop.f32.mrf.mxu0 }
 0x15a   : > { %v1160_v3 = vmax.f32 %v1028_v0, 0.0  ;;  %v1204_v4 = vpack.c.bf16 %v1162_v63, %v1161_v60  ;;  %v1049_v5 = vadd.f32 %v7500_v1, %v8669_v8  ;;  %v1176_v63 = vmax.f32 %v1092_v39, 0.0  ;;  %v1107_v0 = vpop.f32.mrf.mxu1 }
 0x15b   : > { %v1040_v6 = vpop.f32.mrf.mxu0 }
 0x15c   : > { %v1203_v9 = vpack.c.bf16 %v1160_v3, %v1159_v62  ;;  %v1041_v10 = vadd.f32 %v8669_v8, %v1040_v6  ;;  %v1165_v14 = vmax.f32 %v1049_v5, 0.0  ;;  %v1097_v3 = vadd.f32 %v8782_v58, %v8669_v8 }
 0x15d   : > { %v7501_v11 = vpop.f32.mrf.mxu0  ;;  %v1211_v6 = vpack.c.bf16 %v1176_v63, %v1175_v59 }
 0x15e   : > { %v1052_v13 = vadd.f32 %v7501_v11, %v8669_v8  ;;  %7566 = vmatprep.mubr.msk.bf16.mxu1 %vm1254_vm2, %v1203_v9  ;;  %v1163_v16 = vmax.f32 %v1041_v10, 0.0  ;;  %v1105_v9 = vadd.f32 %v8669_v8, %v1104_v47  ;;  %v1108_v10 = vadd.f32 %v8669_v8, %v1107_v0 }
 0x15f   : > { %v1043_v15 = vpop.f32.mrf.mxu0  ;;  %7567 = vmatmul.mubr.msk.bf16.gmra.mxu1 %vm1254_vm2, %v1204_v4  ;;  %v1100_v4 = vadd.f32 %v8791_v12, %v8669_v8  ;;  %v1177_v11 = vmax.f32 %v1097_v3, 0.0  ;;  %v1116_v12 = vadd.f32 %v7517_v54, %v8669_v8 }
 0x160   : > { %v1166_v17 = vmax.f32 %v1052_v13, 0.0  ;;  %v1044_v18 = vadd.f32 %v8669_v8, %v1043_v15  ;;  %v1180_v15 = vmax.f32 %v1108_v10, 0.0 }
 0x161   : > { %v7504_v21 = vpop.f32.mrf.mxu0  ;;  %v1178_v13 = vmax.f32 %v1100_v4, 0.0  ;;  %v1766_v4 = vld [vmem:[%s10079_s5 + $0xf0] sm:$0xff] }
 0x162   : > { %v1164_v25 = vmax.f32 %v1044_v18, 0.0  ;;  %v1206_v28 = vpack.c.bf16 %v1166_v17, %v1165_v14  ;;  %v1065_v29 = vadd.f32 %v7504_v21, %v8669_v8  ;;  %v1179_v14 = vmax.f32 %v1105_v9, 0.0 }
 0x163   : > { %v1056_v30 = vpop.f32.mrf.mxu0  ;;  %v1212_v58 = vpack.c.bf16 %v1178_v13, %v1177_v11  ;;  %v1182_v21 = vmax.f32 %v1116_v12, 0.0  ;;  %v6995_v13 = vcombine.low %v1771_v26, %v1775_v27 }
 0x164   : > { %v1205_v33 = vpack.c.bf16 %v1164_v25, %v1163_v16  ;;  %v1057_v34 = vadd.f32 %v8669_v8, %v1056_v30  ;;  %v1169_v41 = vmax.f32 %v1065_v29, 0.0  ;;  %v1113_v16 = vadd.f32 %v7516_v36, %v8669_v8 }
 0x165   : > { %v7505_v35 = vpop.f32.mrf.mxu0  ;;  %v1213_v17 = vpack.c.bf16 %v1180_v15, %v1179_v14 }
 0x166   : > { %v1068_v37 = vadd.f32 %v7505_v35, %v8669_v8  ;;  %7570 = vmatprep.mubr.msk.bf16.mxu1 %vm1254_vm2, %v1205_v33  ;;  %v1167_v43 = vmax.f32 %v1057_v34, 0.0  ;;  %v1181_v18 = vmax.f32 %v1113_v16, 0.0  ;;  %v1786_v34 = vld [vmem:[%s10079_s5 + $0x190] sm:$0xff] }
 0x167   : > { %v1059_v42 = vpop.f32.mrf.mxu0  ;;  %7571 = vmatmul.mubr.msk.bf16.gmra.mxu1 %vm1254_vm2, %v1206_v28  ;;  %v8857_v28 = vld [vmem:[%s10078_s4] ss:$0 sm:$0xff] }
 0x168   : > { %v1170_v44 = vmax.f32 %v1068_v37, 0.0  ;;  %v1060_v45 = vadd.f32 %v8669_v8, %v1059_v42  ;;  %v1214_v22 = vpack.c.bf16 %v1182_v21, %v1181_v18  ;;  %v1790_v37 = vld [vmem:[%s10079_s5 + $0x1b0] sm:$0xff]  ;;  %v1791_v42 = vld [vmem:[%s10079_s5 + $0x1b8] sm:$0xff] }
 0x169   : > { %v7508_v46 = vpop.f32.mrf.mxu0  ;;  %v7009_v39 = vcombine.low %v1786_v34, %v1790_v37 }
 0x16a   : > { %v1168_v48 = vmax.f32 %v1060_v45, 0.0  ;;  %v1208_v49 = vpack.c.bf16 %v1170_v44, %v1169_v41  ;;  %v1081_v50 = vadd.f32 %v7508_v46, %v8669_v8  ;;  %v1787_v41 = vld [vmem:[%s10079_s5 + $0x198] sm:$0xff]  ;;  %v1778_v46 = vld [vmem:[%s10079_s5 + $0x150] sm:$0xff] }
 0x16b   : > { %v1072_v51 = vpop.f32.mrf.mxu0 }
 0x16c   : > { %v1207_v53 = vpack.c.bf16 %v1168_v48, %v1167_v43  ;;  %v1073_v38 = vadd.f32 %v8669_v8, %v1072_v51  ;;  %v1173_v56 = vmax.f32 %v1081_v50, 0.0  ;;  %v7010_v48 = vcombine.high %v1786_v34, %v1790_v37  ;;  %v1782_v50 = vld [vmem:[%s10079_s5 + $0x170] sm:$0xff]  ;;  %v1779_v51 = vld [vmem:[%s10079_s5 + $0x158] sm:$0xff] }
 0x16d   : > { %v7509_v40 = vpop.f32.mrf.mxu0  ;;  %v7001_v59 = vcombine.low %v1778_v46, %v1782_v50 }
 0x16e   : > { %v1084_v55 = vadd.f32 %v7509_v40, %v8669_v8  ;;  %7574 = vmatprep.mubr.msk.bf16.mxu1 %vm1254_vm2, %v1207_v53  ;;  %v1171_v60 = vmax.f32 %v1073_v38, 0.0  ;;  %v7011_v40 = vcombine.low %v1787_v41, %v1791_v42 }
 0x16f   : > { %v1075_v57 = vpop.f32.mrf.mxu0  ;;  %7575 = vmatmul.mubr.msk.bf16.gmra.mxu1 %vm1254_vm2, %v1208_v49  ;;  %v7012_v49 = vcombine.high %v1787_v41, %v1791_v42  ;;  %v1754_v41 = vld [vmem:[%s10079_s5 + $0x90] sm:$0xff] }
 0x170   : > { %v1174_v61 = vmax.f32 %v1084_v55, 0.0  ;;  %v1076_v62 = vadd.f32 %v8669_v8, %v1075_v57  ;;  %v7002_v55 = vcombine.high %v1778_v46, %v1782_v50  ;;  %v1758_v42 = vld [vmem:[%s10079_s5 + $0xb0] sm:$0xff] }
 0x172   : > { %v1172_v1 = vmax.f32 %v1076_v62, 0.0  ;;  %v1210_v2 = vpack.c.bf16 %v1174_v61, %v1173_v56  ;;  %v7004_v56 = vcombine.high %v1779_v51, %v1783_v52  ;;  %v7003_v62 = vcombine.low %v1779_v51, %v1783_v52 }
 0x174   : > { %v1209_v5 = vpack.c.bf16 %v1172_v1, %v1171_v60  ;;  %v6996_v1 = vcombine.high %v1771_v26, %v1775_v27 }
 0x176   : > { %7578 = vmatprep.mubr.msk.bf16.mxu1 %vm1254_vm2, %v1209_v5  ;;  %v1763_v5 = vld [vmem:[%s10079_s5 + $0xd8] sm:$0xff] }
 0x177   : > { %7579 = vmatmul.mubr.msk.bf16.gmra.mxu1 %vm1254_vm2, %v1210_v2  ;;  %v1762_v2 = vld [vmem:[%s10079_s5 + $0xd0] sm:$0xff] }
 0x178   : > { %7582 = vmatprep.mubr.msk.bf16.mxu1 %vm1254_vm2, %v1211_v6  ;;  %v1767_v6 = vld [vmem:[%s10079_s5 + $0xf8] sm:$0xff]  ;;  %v6986_v15 = vcombine.high %v1762_v2, %v1766_v4 }
 0x17f   : > { %7583 = vmatmul.mubr.msk.bf16.gmra.mxu1 %vm1254_vm2, %v1212_v58  ;;  %v6988_v58 = vcombine.high %v1763_v5, %v1767_v6 }
 0x180   : > { %7586 = vmatprep.mubr.msk.bf16.mxu1 %vm1254_vm2, %v1213_v17  ;;  %v6985_v17 = vcombine.low %v1762_v2, %v1766_v4 }
 0x187   : > { %7587 = vmatmul.mubr.msk.bf16.gmra.mxu1 %vm1254_vm2, %v1214_v22  ;;  %v6987_v22 = vcombine.low %v1763_v5, %v1767_v6 }
 0x188   : > { %2505 = vmatprep.mubr.bf16.mxu1 %v10102_v7 }
 0x1cf   : > { %v7528_v24 = vpop.f32.mrf.mxu1 }
 0x1d0   : > { %v1394_v53 = vadd.f32 %v7528_v24, %v8857_v28 }
 0x1d1   : > { %v1385_v25 = vpop.f32.mrf.mxu1 }
 0x1d2   : > { %v1386_v29 = vadd.f32 %v8857_v28, %v1385_v25  ;;  %v1642_v20 = vmax.f32 %v1394_v53, 0.0 }
 0x1d3   : > { %v7529_v8 = vpop.f32.mrf.mxu1 }
 0x1d4   : > { %v1640_v35 = vmax.f32 %v1386_v29, 0.0  ;;  %v1397_v44 = vadd.f32 %v7529_v8, %v8857_v28 }
 0x1d5   : > { %v1388_v30 = vpop.f32.mrf.mxu1 }
 0x1d6   : > { %v1389_v32 = vadd.f32 %v8857_v28, %v1388_v30  ;;  %v1643_v54 = vmax.f32 %v1397_v44, 0.0 }
 0x1d7   : > { %v8861_v33 = vpop.f32.mrf.mxu1 }
 0x1d8   : > { %v1641_v36 = vmax.f32 %v1389_v32, 0.0  ;;  %v8915_v60 = vpack.c.bf16 %v1643_v54, %v1642_v20  ;;  %v1410_v25 = vadd.f32 %v8861_v33, %v8857_v28 }
 0x1d9   : > { %v1401_v43 = vpop.f32.mrf.mxu1 }
 0x1da   : > { %v8876_v45 = vpack.c.bf16 %v1641_v36, %v1640_v35  ;;  %v1402_v3 = vadd.f32 %v8857_v28, %v1401_v43  ;;  %v1646_v32 = vmax.f32 %v1410_v25, 0.0  ;;  %v1747_v25 = vld [vmem:[%s10079_s5 + $0x58] sm:$0xff] }
 0x1db   : > { %v7533_v47 = vpop.f32.mrf.mxu1 }
 0x1dc   : > { %2153 = vmatmul.mubr.bf16.vlgmr.msra.gmra.mxu0 %v8876_v45  ;;  %2506 = vmatmul.mubr.bf16.vlgmr.msra.gmra.mxu1 %v8876_v45  ;;  %v1644_v16 = vmax.f32 %v1402_v3, 0.0  ;;  %v1413_v18 = vadd.f32 %v7533_v47, %v8857_v28  ;;  %v6977_v47 = vcombine.low %v1754_v41, %v1758_v42 }
 0x1dd   : > { %2827 = vmatpush1.bf16.msra.mxu0 %v7017_v23  ;;  %v1404_v38 = vpop.f32.mrf.mxu1  ;;  %3180 = vmatpush1.bf16.msra.mxu1 %v7019_v31  ;;  %v1774_v23 = vld [vmem:[%s10079_s5 + $0x130] sm:$0xff] }
 0x1de   : > { %2162 = vmatprep.mubr.bf16.mxu0 %v10102_v7  ;;  %2515 = vmatprep.mubr.bf16.mxu1 %v10102_v7  ;;  %v1405_v61 = vadd.f32 %v8857_v28, %v1404_v38  ;;  %v6994_v0 = vcombine.high %v1770_v19, %v1774_v23  ;;  %v6993_v11 = vcombine.low %v1770_v19, %v1774_v23  ;;  %v1647_v29 = vmax.f32 %v1413_v18, 0.0  ;;  %v1755_v38 = vld [vmem:[%s10079_s5 + $0x98] sm:$0xff] }
 0x1df   : > { %v8901_v57 = vpop.f32.mrf.mxu1  ;;  %2828 = vmatprep.subr.bf16.mxu0 %v7010_v48  ;;  %3181 = vmatprep.subr.bf16.mxu1 %v7012_v49  ;;  %v6978_v48 = vcombine.high %v1754_v41, %v1758_v42 }
 0x1e0   : > { %v1645_v10 = vmax.f32 %v1405_v61, 0.0  ;;  %v8950_v35 = vpack.c.bf16 %v1647_v29, %v1646_v32  ;;  %v1426_v50 = vadd.f32 %v8901_v57, %v8857_v28 }
 0x1e1   : > { %v1417_v31 = vpop.f32.mrf.mxu1  ;;  %2829 = vmatpush1.bf16.msra.mxu0 %v7009_v39  ;;  %3182 = vmatpush1.bf16.msra.mxu1 %v7011_v40  ;;  %v1759_v39 = vld [vmem:[%s10079_s5 + $0xb8] sm:$0xff] }
 0x1e2   : > { %2830 = vmatprep.subr.bf16.mxu0 %v7002_v55  ;;  %3183 = vmatprep.subr.bf16.mxu1 %v7004_v56  ;;  %v8940_v21 = vpack.c.bf16 %v1645_v10, %v1644_v16  ;;  %v1418_v33 = vadd.f32 %v8857_v28, %v1417_v31  ;;  %v6979_v40 = vcombine.low %v1755_v38, %v1759_v39  ;;  %v1650_v55 = vmax.f32 %v1426_v50, 0.0 }
 0x1e3   : > { %v8918_v63 = vpop.f32.mrf.mxu1  ;;  %v6980_v54 = vcombine.high %v1755_v38, %v1759_v39 }
 0x1e4   : > { %2163 = vmatmul.mubr.bf16.gmra.mxu0 %v8915_v60  ;;  %2516 = vmatmul.mubr.bf16.gmra.mxu1 %v8915_v60  ;;  %v1648_v43 = vmax.f32 %v1418_v33, 0.0  ;;  %v1429_v51 = vadd.f32 %v8918_v63, %v8857_v28 }
 0x1e5   : > { %v1420_v9 = vpop.f32.mrf.mxu1  ;;  %2172 = vmatprep.mubr.bf16.mxu0 %v10102_v7  ;;  %2525 = vmatprep.mubr.bf16.mxu1 %v10102_v7 }
 0x1e6   : > { %2831 = vmatpush1.bf16.msra.mxu0 %v7001_v59  ;;  %3184 = vmatpush1.bf16.msra.mxu1 %v7003_v62  ;;  %v1421_v36 = vadd.f32 %v8857_v28, %v1420_v9  ;;  %v1651_v56 = vmax.f32 %v1429_v51, 0.0 }
 0x1e7   : > { %v8937_v14 = vpop.f32.mrf.mxu1  ;;  %2832 = vmatprep.subr.bf16.mxu0 %v6994_v0  ;;  %3185 = vmatprep.subr.bf16.mxu1 %v6996_v1 }
 0x1e8   : > { %v1649_v44 = vmax.f32 %v1421_v36, 0.0  ;;  %v8988_v19 = vpack.c.bf16 %v1651_v56, %v1650_v55  ;;  %v1442_v61 = vadd.f32 %v8937_v14, %v8857_v28 }
 0x1e9   : > { %v1433_v12 = vpop.f32.mrf.mxu1 }
 0x1ea   : > { %2833 = vmatpush1.bf16.msra.mxu0 %v6993_v11  ;;  %3186 = vmatpush1.bf16.msra.mxu1 %v6995_v13  ;;  %v8972_v52 = vpack.c.bf16 %v1649_v44, %v1648_v43  ;;  %v1434_v20 = vadd.f32 %v8857_v28, %v1433_v12  ;;  %v1654_v1 = vmax.f32 %v1442_v61, 0.0  ;;  %v1746_v11 = vld [vmem:[%s10079_s5 + $0x50] sm:$0xff] }
 0x1eb   : > { %v7541_v24 = vpop.f32.mrf.mxu1  ;;  %2834 = vmatprep.subr.bf16.mxu0 %v6986_v15  ;;  %3187 = vmatprep.subr.bf16.mxu1 %v6988_v58  ;;  %v1750_v13 = vld [vmem:[%s10079_s5 + $0x70] sm:$0xff] }
 0x1ec   : > { %2173 = vmatmul.mubr.bf16.gmra.mxu0 %v8940_v21  ;;  %2526 = vmatmul.mubr.bf16.gmra.mxu1 %v8940_v21  ;;  %v1652_v27 = vmax.f32 %v1434_v20, 0.0  ;;  %v1445_v62 = vadd.f32 %v7541_v24, %v8857_v28  ;;  %v6969_v58 = vcombine.low %v1746_v11, %v1750_v13  ;;  %v6970_v16 = vcombine.high %v1746_v11, %v1750_v13  ;;  %v1738_v61 = vld [vmem:[%s10079_s5 + $0x10] sm:$0xff] }
 0x1ed   : > { %2182 = vmatprep.mubr.bf16.mxu0 %v10102_v7  ;;  %2535 = vmatprep.mubr.bf16.mxu1 %v10102_v7  ;;  %v1436_v8 = vpop.f32.mrf.mxu1 }
 0x1ee   : > { %2835 = vmatpush1.bf16.msra.mxu0 %v6985_v17  ;;  %3188 = vmatpush1.bf16.msra.mxu1 %v6987_v22  ;;  %v1437_v23 = vadd.f32 %v8857_v28, %v1436_v8  ;;  %v1655_v2 = vmax.f32 %v1445_v62, 0.0  ;;  %v1751_v8 = vld [vmem:[%s10079_s5 + $0x78] sm:$0xff]  ;;  %v1742_v62 = vld [vmem:[%s10079_s5 + $0x30] sm:$0xff] }
 0x1ef   : > { %v8948_v30 = vpop.f32.mrf.mxu1  ;;  %2836 = vmatprep.subr.bf16.mxu0 %v6978_v48  ;;  %3189 = vmatprep.subr.bf16.mxu1 %v6980_v54  ;;  %v6971_v29 = vcombine.low %v1747_v25, %v1751_v8 }
 0x1f0   : > { %v1653_v31 = vmax.f32 %v1437_v23, 0.0  ;;  %v9011_v4 = vpack.c.bf16 %v1655_v2, %v1654_v1  ;;  %v1458_v17 = vadd.f32 %v8948_v30, %v8857_v28  ;;  %v6972_v30 = vcombine.high %v1747_v25, %v1751_v8  ;;  %v1739_v2 = vld [vmem:[%s10079_s5 + $0x18] sm:$0xff] }
 0x1f1   : > { %v1449_v34 = vpop.f32.mrf.mxu1  ;;  %v6961_v1 = vcombine.low %v1738_v61, %v1742_v62 }
 0x1f2   : > { %2837 = vmatpush1.bf16.msra.mxu0 %v6977_v47  ;;  %3190 = vmatpush1.bf16.msra.mxu1 %v6979_v40  ;;  %v9001_v63 = vpack.c.bf16 %v1653_v31, %v1652_v27  ;;  %v1450_v5 = vadd.f32 %v8857_v28, %v1449_v34  ;;  %v1658_v32 = vmax.f32 %v1458_v17, 0.0 }
 0x1f3   : > { %v8954_v37 = vpop.f32.mrf.mxu1  ;;  %2838 = vmatprep.subr.bf16.mxu0 %v6970_v16  ;;  %3191 = vmatprep.subr.bf16.mxu1 %v6972_v30 }
 0x1f4   : > { %2183 = vmatmul.mubr.bf16.gmra.mxu0 %v8950_v35  ;;  %2536 = vmatmul.mubr.bf16.gmra.mxu1 %v8950_v35  ;;  %v1656_v14 = vmax.f32 %v1450_v5, 0.0  ;;  %v1461_v18 = vadd.f32 %v8954_v37, %v8857_v28 }
 0x1f5   : > { %2192 = vmatprep.mubr.bf16.mxu0 %v10102_v7  ;;  %2545 = vmatprep.mubr.bf16.mxu1 %v10102_v7  ;;  %v1452_v46 = vpop.f32.mrf.mxu1 }
 0x1f6   : > { %v1453_v6 = vadd.f32 %v8857_v28, %v1452_v46  ;;  %2839 = vmatpush1.bf16.msra.mxu0 %v6969_v58  ;;  %v1659_v34 = vmax.f32 %v1461_v18, 0.0  ;;  %3192 = vmatpush1.bf16.msra.mxu1 %v6971_v29 }
 0x1f7   : > { %v8966_v49 = vpop.f32.mrf.mxu1 }
 0x1f8   : > { %v1657_v15 = vmax.f32 %v1453_v6, 0.0  ;;  %v9047_v36 = vpack.c.bf16 %v1659_v34, %v1658_v32  ;;  %v1474_v47 = vadd.f32 %v8966_v49, %v8857_v28 }
 0x1f9   : > { %v8976_v53 = vpop.f32.mrf.mxu1 }
 0x1fa   : > { %v9033_v22 = vpack.c.bf16 %v1657_v15, %v1656_v14  ;;  %v1466_v37 = vadd.f32 %v8857_v28, %v8976_v53  ;;  %v1662_v53 = vmax.f32 %v1474_v47, 0.0 }
 0x1fb   : > { %v8986_v57 = vpop.f32.mrf.mxu1 }
 0x1fc   : > { %2193 = vmatmul.mubr.bf16.gmra.mxu0 %v8972_v52  ;;  %2546 = vmatmul.mubr.bf16.gmra.mxu1 %v8972_v52  ;;  %v1660_v43 = vmax.f32 %v1466_v37, 0.0  ;;  %v1477_v48 = vadd.f32 %v8986_v57, %v8857_v28 }
 0x1fd   : > { %2202 = vmatprep.mubr.bf16.mxu0 %v10102_v7  ;;  %2555 = vmatprep.mubr.bf16.mxu1 %v10102_v7  ;;  %v1468_v26 = vpop.f32.mrf.mxu1 }
 0x1fe   : > { %v1469_v41 = vadd.f32 %v8857_v28, %v1468_v26  ;;  %v1663_v38 = vmax.f32 %v1477_v48, 0.0 }
 0x1ff   : > { %v8996_v59 = vpop.f32.mrf.mxu1 }
 0x200   : > { %v1661_v44 = vmax.f32 %v1469_v41, 0.0  ;;  %v9074_v49 = vpack.c.bf16 %v1663_v38, %v1662_v53  ;;  %v1490_v26 = vadd.f32 %v8996_v59, %v8857_v28  ;;  %v6962_v59 = vcombine.high %v1738_v61, %v1742_v62 }
 0x201   : > { %v9003_v0 = vpop.f32.mrf.mxu1 }
 0x202   : > { %v9064_v50 = vpack.c.bf16 %v1661_v44, %v1660_v43  ;;  %v1482_v54 = vadd.f32 %v8857_v28, %v9003_v0  ;;  %v1666_v5 = vmax.f32 %v1490_v26, 0.0  ;;  %2840 = vmatprep.subr.bf16.mxu0 %v6962_v59 }
 0x203   : > { %v9009_v3 = vpop.f32.mrf.mxu1  ;;  %2841 = vmatpush1.bf16.msra.mxu0 %v6961_v1 }
 0x204   : > { %2203 = vmatmul.mubr.bf16.gmra.mxu0 %v8988_v19  ;;  %2556 = vmatmul.mubr.bf16.gmra.mxu1 %v8988_v19  ;;  %v1664_v57 = vmax.f32 %v1482_v54, 0.0  ;;  %v1493_v27 = vadd.f32 %v9009_v3, %v8857_v28  ;;  %v1743_v3 = vld [vmem:[%s10079_s5 + $0x38] sm:$0xff] }
 0x205   : > { %2212 = vmatprep.mubr.bf16.mxu0 %v10102_v7  ;;  %2565 = vmatprep.mubr.bf16.mxu1 %v10102_v7  ;;  %v1484_v9 = vpop.f32.mrf.mxu1  ;;  %v6963_v11 = vcombine.low %v1739_v2, %v1743_v3  ;;  %v6964_v13 = vcombine.high %v1739_v2, %v1743_v3 }
 0x206   : > { %v1485_v55 = vadd.f32 %v8857_v28, %v1484_v9  ;;  %v1667_v6 = vmax.f32 %v1493_v27, 0.0 }
 0x207   : > { %v9017_v10 = vpop.f32.mrf.mxu1  ;;  %3193 = vmatprep.subr.bf16.mxu1 %v6964_v13 }
 0x208   : > { %v1665_v20 = vmax.f32 %v1485_v55, 0.0  ;;  %3194 = vmatpush1.bf16.msra.mxu1 %v6963_v11  ;;  %v9111_v14 = vpack.c.bf16 %v1667_v6, %v1666_v5  ;;  %v1506_v8 = vadd.f32 %v9017_v10, %v8857_v28 }
 0x209   : > { %v9027_v12 = vpop.f32.mrf.mxu1 }
 0x20a   : > { %v9091_v31 = vpack.c.bf16 %v1665_v20, %v1664_v57  ;;  %v1498_v15 = vadd.f32 %v8857_v28, %v9027_v12  ;;  %v1670_v32 = vmax.f32 %v1506_v8, 0.0 }
 0x20b   : > { %v9037_v24 = vpop.f32.mrf.mxu1 }
 0x20c   : > { %2213 = vmatmul.mubr.bf16.gmra.mxu0 %v9001_v63  ;;  %2566 = vmatmul.mubr.bf16.gmra.mxu1 %v9001_v63  ;;  %v1668_v17 = vmax.f32 %v1498_v15, 0.0  ;;  %v1509_v12 = vadd.f32 %v9037_v24, %v8857_v28 }
 0x20d   : > { %2222 = vmatprep.mubr.bf16.mxu0 %v10102_v7  ;;  %2575 = vmatprep.mubr.bf16.mxu1 %v10102_v7  ;;  %v1500_v33 = vpop.f32.mrf.mxu1 }
 0x20e   : > { %v1501_v58 = vadd.f32 %v8857_v28, %v1500_v33  ;;  %v1671_v34 = vmax.f32 %v1509_v12, 0.0 }
 0x20f   : > { %v9052_v42 = vpop.f32.mrf.mxu1 }
 0x210   : > { %v1669_v18 = vmax.f32 %v1501_v58, 0.0  ;;  %v9136_v37 = vpack.c.bf16 %v1671_v34, %v1670_v32  ;;  %v1522_v48 = vadd.f32 %v9052_v42, %v8857_v28 }
 0x211   : > { %v9058_v46 = vpop.f32.mrf.mxu1 }
 0x212   : > { %v9128_v29 = vpack.c.bf16 %v1669_v18, %v1668_v17  ;;  %v1514_v10 = vadd.f32 %v8857_v28, %v9058_v46 }
 0x213   : > { %v9066_v51 = vpop.f32.mrf.mxu1 }
 0x214   : > { %2223 = vmatmul.mubr.bf16.gmra.mxu0 %v9011_v4  ;;  %2576 = vmatmul.mubr.bf16.gmra.mxu1 %v9011_v4  ;;  %v1672_v43 = vmax.f32 %v1514_v10, 0.0  ;;  %v1525_v46 = vadd.f32 %v9066_v51, %v8857_v28 }
 0x215   : > { %2232 = vmatprep.mubr.bf16.mxu0 %v10102_v7  ;;  %2585 = vmatprep.mubr.bf16.mxu1 %v10102_v7  ;;  %v1516_v39 = vpop.f32.mrf.mxu1 }
 0x216   : > { %v1517_v24 = vadd.f32 %v8857_v28, %v1516_v39  ;;  %v1674_v39 = vmax.f32 %v1522_v48, 0.0  ;;  %v1675_v54 = vmax.f32 %v1525_v46, 0.0 }
 0x217   : > { %v9072_v40 = vpop.f32.mrf.mxu1 }
 0x218   : > { %v1673_v44 = vmax.f32 %v1517_v24, 0.0  ;;  %v9161_v57 = vpack.c.bf16 %v1675_v54, %v1674_v39  ;;  %v1538_v62 = vadd.f32 %v9072_v40, %v8857_v28 }
 0x219   : > { %v9081_v56 = vpop.f32.mrf.mxu1 }
 0x21a   : > { %v9153_v53 = vpack.c.bf16 %v1673_v44, %v1672_v43  ;;  %v1530_v42 = vadd.f32 %v8857_v28, %v9081_v56  ;;  %v1678_v59 = vmax.f32 %v1538_v62, 0.0 }
 0x21b   : > { %v9085_v23 = vpop.f32.mrf.mxu1 }
 0x21c   : > { %2233 = vmatmul.mubr.bf16.gmra.mxu0 %v9033_v22  ;;  %2586 = vmatmul.mubr.bf16.gmra.mxu1 %v9033_v22  ;;  %v1676_v26 = vmax.f32 %v1530_v42, 0.0  ;;  %v1541_v56 = vadd.f32 %v9085_v23, %v8857_v28 }
 0x21d   : > { %2242 = vmatprep.mubr.bf16.mxu0 %v10102_v7  ;;  %2595 = vmatprep.mubr.bf16.mxu1 %v10102_v7  ;;  %v1532_v0 = vpop.f32.mrf.mxu1 }
 0x21e   : > { %v1533_v51 = vadd.f32 %v8857_v28, %v1532_v0  ;;  %v1679_v2 = vmax.f32 %v1541_v56, 0.0 }
 0x21f   : > { %v9109_v9 = vpop.f32.mrf.mxu1 }
 0x220   : > { %v1677_v27 = vmax.f32 %v1533_v51, 0.0  ;;  %v9186_v5 = vpack.c.bf16 %v1679_v2, %v1678_v59  ;;  %v1554_v58 = vadd.f32 %v9109_v9, %v8857_v28 }
 0x221   : > { %v9116_v16 = vpop.f32.mrf.mxu1 }
 0x222   : > { %v9178_v0 = vpack.c.bf16 %v1677_v27, %v1676_v26  ;;  %v1546_v40 = vadd.f32 %v8857_v28, %v9116_v16  ;;  %v1682_v8 = vmax.f32 %v1554_v58, 0.0 }
 0x223   : > { %v9122_v25 = vpop.f32.mrf.mxu1 }
 0x224   : > { %2243 = vmatmul.mubr.bf16.gmra.mxu0 %v9047_v36  ;;  %2596 = vmatmul.mubr.bf16.gmra.mxu1 %v9047_v36  ;;  %v1680_v11 = vmax.f32 %v1546_v40, 0.0  ;;  %v1557_v16 = vadd.f32 %v9122_v25, %v8857_v28 }
 0x225   : > { %2252 = vmatprep.mubr.bf16.mxu0 %v10102_v7  ;;  %2605 = vmatprep.mubr.bf16.mxu1 %v10102_v7  ;;  %v1548_v30 = vpop.f32.mrf.mxu1 }
 0x226   : > { %v1549_v23 = vadd.f32 %v8857_v28, %v1548_v30  ;;  %v1683_v12 = vmax.f32 %v1557_v16, 0.0 }
 0x227   : > { %v9134_v33 = vpop.f32.mrf.mxu1 }
 0x228   : > { %v1681_v13 = vmax.f32 %v1549_v23, 0.0  ;;  %v9211_v32 = vpack.c.bf16 %v1683_v12, %v1682_v8  ;;  %v1570_v44 = vadd.f32 %v9134_v33, %v8857_v28 }
 0x229   : > { %v9141_v41 = vpop.f32.mrf.mxu1 }
 0x22a   : > { %v9203_v17 = vpack.c.bf16 %v1681_v13, %v1680_v11  ;;  %v1562_v9 = vadd.f32 %v8857_v28, %v9141_v41 }
 0x22b   : > { %v9147_v47 = vpop.f32.mrf.mxu1 }
 0x22c   : > { %2253 = vmatmul.mubr.bf16.gmra.mxu0 %v9064_v50  ;;  %2606 = vmatmul.mubr.bf16.gmra.mxu1 %v9064_v50  ;;  %v1684_v10 = vmax.f32 %v1562_v9, 0.0  ;;  %v1573_v41 = vadd.f32 %v9147_v47, %v8857_v28 }
 0x22d   : > { %2262 = vmatprep.mubr.bf16.mxu0 %v10102_v7  ;;  %2615 = vmatprep.mubr.bf16.mxu1 %v10102_v7  ;;  %v1564_v38 = vpop.f32.mrf.mxu1 }
 0x22e   : > { %v1565_v25 = vadd.f32 %v8857_v28, %v1564_v38  ;;  %v1686_v38 = vmax.f32 %v1570_v44, 0.0  ;;  %v1687_v39 = vmax.f32 %v1573_v41, 0.0 }
 0x22f   : > { %v9159_v55 = vpop.f32.mrf.mxu1 }
 0x230   : > { %v1685_v24 = vmax.f32 %v1565_v25, 0.0  ;;  %v9238_v33 = vpack.c.bf16 %v1687_v39, %v1686_v38  ;;  %v1586_v56 = vadd.f32 %v9159_v55, %v8857_v28 }
 0x231   : > { %v9166_v20 = vpop.f32.mrf.mxu1 }
 0x232   : > { %v9228_v48 = vpack.c.bf16 %v1685_v24, %v1684_v10  ;;  %v1578_v47 = vadd.f32 %v8857_v28, %v9166_v20  ;;  %v1690_v23 = vmax.f32 %v1586_v56, 0.0 }
 0x233   : > { %v9172_v61 = vpop.f32.mrf.mxu1 }
 0x234   : > { %2263 = vmatmul.mubr.bf16.gmra.mxu0 %v9074_v49  ;;  %2616 = vmatmul.mubr.bf16.gmra.mxu1 %v9074_v49  ;;  %v1688_v26 = vmax.f32 %v1578_v47, 0.0  ;;  %v1589_v20 = vadd.f32 %v9172_v61, %v8857_v28 }
 0x235   : > { %2272 = vmatprep.mubr.bf16.mxu0 %v10102_v7  ;;  %2625 = vmatprep.mubr.bf16.mxu1 %v10102_v7  ;;  %v1580_v1 = vpop.f32.mrf.mxu1 }
 0x236   : > { %v1581_v42 = vadd.f32 %v8857_v28, %v1580_v1  ;;  %v1691_v11 = vmax.f32 %v1589_v20, 0.0 }
 0x237   : > { %v9184_v3 = vpop.f32.mrf.mxu1 }
 0x238   : > { %v1689_v27 = vmax.f32 %v1581_v42, 0.0  ;;  %v9263_v12 = vpack.c.bf16 %v1691_v11, %v1690_v23 }
 0x239   : > { %v9191_v6 = vpop.f32.mrf.mxu1 }
 0x23a   : > { %v9255_v1 = vpack.c.bf16 %v1689_v27, %v1688_v26  ;;  %v1594_v9 = vadd.f32 %v8857_v28, %v9191_v6 }
 0x23b   : > { %v9197_v15 = vpop.f32.mrf.mxu1 }
 0x23c   : > { %2273 = vmatmul.mubr.bf16.gmra.mxu0 %v9091_v31  ;;  %2626 = vmatmul.mubr.bf16.gmra.mxu1 %v9091_v31  ;;  %v1692_v26 = vmax.f32 %v1594_v9, 0.0 }
 0x23d   : > { %2282 = vmatprep.mubr.bf16.mxu0 %v10102_v7  ;;  %2635 = vmatprep.mubr.bf16.mxu1 %v10102_v7  ;;  %v1596_v18 = vpop.f32.mrf.mxu1 }
 0x23e   : > { %v1597_v25 = vadd.f32 %v8857_v28, %v1596_v18 }
 0x23f   : > { %v9209_v30 = vpop.f32.mrf.mxu1 }
 0x240   : > { %v1693_v6 = vmax.f32 %v1597_v25, 0.0 }
 0x241   : > { %v9216_v34 = vpop.f32.mrf.mxu1 }
 0x243   : > { %v9222_v43 = vpop.f32.mrf.mxu1 }
 0x244   : > { %2283 = vmatmul.mubr.bf16.gmra.mxu0 %v9111_v14  ;;  %2636 = vmatmul.mubr.bf16.gmra.mxu1 %v9111_v14 }
 0x245   : > { %2292 = vmatprep.mubr.bf16.mxu0 %v10102_v7  ;;  %2645 = vmatprep.mubr.bf16.mxu1 %v10102_v7  ;;  %v9230_v46 = vpop.f32.mrf.mxu1 }
 0x247   : > { %v9236_v54 = vpop.f32.mrf.mxu1 }
 0x249   : > { %v9243_v51 = vpop.f32.mrf.mxu1 }
 0x24b   : > { %v9249_v62 = vpop.f32.mrf.mxu1 }
 0x24c   : > { %2293 = vmatmul.mubr.bf16.gmra.mxu0 %v9128_v29  ;;  %2646 = vmatmul.mubr.bf16.gmra.mxu1 %v9128_v29 }
 0x24d   : > { %2302 = vmatprep.mubr.bf16.mxu0 %v10102_v7  ;;  %2655 = vmatprep.mubr.bf16.mxu1 %v10102_v7  ;;  %v9257_v59 = vpop.f32.mrf.mxu1 }
 0x254   : > { %2303 = vmatmul.mubr.bf16.gmra.mxu0 %v9136_v37  ;;  %2656 = vmatmul.mubr.bf16.gmra.mxu1 %v9136_v37 }
 0x255   : > { %2312 = vmatprep.mubr.bf16.mxu0 %v10102_v7  ;;  %2665 = vmatprep.mubr.bf16.mxu1 %v10102_v7 }
 0x25c   : > { %2313 = vmatmul.mubr.bf16.gmra.mxu0 %v9153_v53  ;;  %2666 = vmatmul.mubr.bf16.gmra.mxu1 %v9153_v53 }
 0x25d   : > { %2322 = vmatprep.mubr.bf16.mxu0 %v10102_v7  ;;  %2675 = vmatprep.mubr.bf16.mxu1 %v10102_v7 }
 0x264   : > { %2323 = vmatmul.mubr.bf16.gmra.mxu0 %v9161_v57  ;;  %2676 = vmatmul.mubr.bf16.gmra.mxu1 %v9161_v57 }
 0x265   : > { %2332 = vmatprep.mubr.bf16.mxu0 %v10102_v7  ;;  %2685 = vmatprep.mubr.bf16.mxu1 %v10102_v7 }
 0x26c   : > { %2333 = vmatmul.mubr.bf16.gmra.mxu0 %v9178_v0  ;;  %2686 = vmatmul.mubr.bf16.gmra.mxu1 %v9178_v0 }
 0x26d   : > { %2342 = vmatprep.mubr.bf16.mxu0 %v10102_v7  ;;  %2695 = vmatprep.mubr.bf16.mxu1 %v10102_v7 }
 0x274   : > { %2343 = vmatmul.mubr.bf16.gmra.mxu0 %v9186_v5  ;;  %2696 = vmatmul.mubr.bf16.gmra.mxu1 %v9186_v5 }
 0x275   : > { %2352 = vmatprep.mubr.bf16.mxu0 %v10102_v7  ;;  %2705 = vmatprep.mubr.bf16.mxu1 %v10102_v7 }
 0x27c   : > { %2353 = vmatmul.mubr.bf16.gmra.mxu0 %v9203_v17  ;;  %2706 = vmatmul.mubr.bf16.gmra.mxu1 %v9203_v17 }
 0x27d   : > { %2362 = vmatprep.mubr.bf16.mxu0 %v10102_v7  ;;  %2715 = vmatprep.mubr.bf16.mxu1 %v10102_v7 }
 0x284   : > { %2363 = vmatmul.mubr.bf16.gmra.mxu0 %v9211_v32  ;;  %2716 = vmatmul.mubr.bf16.gmra.mxu1 %v9211_v32 }
 0x285   : > { %2372 = vmatprep.mubr.bf16.mxu0 %v10102_v7  ;;  %2725 = vmatprep.mubr.bf16.mxu1 %v10102_v7 }
 0x28c   : > { %2373 = vmatmul.mubr.bf16.gmra.mxu0 %v9228_v48  ;;  %2726 = vmatmul.mubr.bf16.gmra.mxu1 %v9228_v48 }
 0x28d   : > { %2382 = vmatprep.mubr.bf16.mxu0 %v10102_v7  ;;  %2735 = vmatprep.mubr.bf16.mxu1 %v10102_v7 }
 0x294   : > { %2383 = vmatmul.mubr.bf16.gmra.mxu0 %v9238_v33  ;;  %2736 = vmatmul.mubr.bf16.gmra.mxu1 %v9238_v33 }
 0x295   : > { %2392 = vmatprep.mubr.bf16.mxu0 %v10102_v7  ;;  %2745 = vmatprep.mubr.bf16.mxu1 %v10102_v7 }
 0x29c   : > { %v2154_v2 = vpop.f32.mrf.mxu0  ;;  %2393 = vmatmul.mubr.bf16.gmra.mxu0 %v9255_v1  ;;  %v2507_v40 = vpop.f32.mrf.mxu1  ;;  %2746 = vmatmul.mubr.bf16.gmra.mxu1 %v9255_v1 }
 0x29d   : > { %2402 = vmatprep.mubr.bf16.mxu0 %v10102_v7  ;;  %2755 = vmatprep.mubr.bf16.mxu1 %v10102_v7 }
 0x29e   : > { %v2156_v55 = vpop.f32.mrf.mxu0  ;;  %v2509_v13 = vpop.f32.mrf.mxu1 }
 0x2a0   : > { %v2158_v58 = vpop.f32.mrf.mxu0  ;;  %v2511_v61 = vpop.f32.mrf.mxu1 }
 0x2a1   : > { %v3532_v16 = vmax.f32 %v2154_v2, %v2158_v58  ;;  %v3658_v8 = vmax.f32 %v2507_v40, %v2511_v61  ;;  %v9276_v58 = vpack.c.bf16 %v1693_v6, %v1692_v26 }
 0x2a2   : > { %v2160_v10 = vpop.f32.mrf.mxu0  ;;  %v2513_v24 = vpop.f32.mrf.mxu1 }
 0x2a3   : > { %v3595_v44 = vmax.f32 %v2156_v55, %v2160_v10  ;;  %v3721_v41 = vmax.f32 %v2509_v13, %v2513_v24  ;;  %v1602_v55 = vadd.f32 %v9184_v3, %v8857_v28  ;;  %v1605_v13 = vadd.f32 %v9197_v15, %v8857_v28 }
 0x2a4   : > { %v2164_v38 = vpop.f32.mrf.mxu0  ;;  %2403 = vmatmul.mubr.bf16.gmra.mxu0 %v9263_v12  ;;  %v2517_v39 = vpop.f32.mrf.mxu1  ;;  %2756 = vmatmul.mubr.bf16.gmra.mxu1 %v9263_v12 }
 0x2a5   : > { %v3533_v47 = vmax.f32 %v3532_v16, %v2164_v38  ;;  %v3659_v42 = vmax.f32 %v3658_v8, %v2517_v39  ;;  %2412 = vmatprep.mubr.bf16.mxu0 %v10102_v7  ;;  %2765 = vmatprep.mubr.bf16.mxu1 %v10102_v7  ;;  %v1694_v3 = vmax.f32 %v1602_v55, 0.0  ;;  %v1695_v15 = vmax.f32 %v1605_v13, 0.0 }
 0x2a6   : > { %v2166_v27 = vpop.f32.mrf.mxu0  ;;  %v2519_v18 = vpop.f32.mrf.mxu1 }
 0x2a7   : > { %v3596_v56 = vmax.f32 %v3595_v44, %v2166_v27  ;;  %v3722_v20 = vmax.f32 %v3721_v41, %v2519_v18  ;;  %v9282_v18 = vpack.c.bf16 %v1695_v15, %v1694_v3 }
 0x2a8   : > { %v2168_v2 = vpop.f32.mrf.mxu0  ;;  %v2521_v40 = vpop.f32.mrf.mxu1 }
 0x2a9   : > { %v3534_v23 = vmax.f32 %v3533_v47, %v2168_v2  ;;  %v3660_v11 = vmax.f32 %v3659_v42, %v2521_v40 }
 0x2aa   : > { %v2170_v61 = vpop.f32.mrf.mxu0  ;;  %v2523_v16 = vpop.f32.mrf.mxu1 }
 0x2ab   : > { %v3597_v8 = vmax.f32 %v3596_v56, %v2170_v61  ;;  %v3723_v9 = vmax.f32 %v3722_v20, %v2523_v16  ;;  %v1610_v56 = vadd.f32 %v8857_v28, %v9216_v34  ;;  %v1613_v20 = vadd.f32 %v8857_v28, %v9230_v46 }
 0x2ac   : > { %v2174_v25 = vpop.f32.mrf.mxu0  ;;  %2413 = vmatmul.mubr.bf16.gmra.mxu0 %v9276_v58  ;;  %v2527_v10 = vpop.f32.mrf.mxu1  ;;  %2766 = vmatmul.mubr.bf16.gmra.mxu1 %v9276_v58 }
 0x2ad   : > { %v3535_v24 = vmax.f32 %v3534_v23, %v2174_v25  ;;  %v3661_v44 = vmax.f32 %v3660_v11, %v2527_v10  ;;  %2422 = vmatprep.mubr.bf16.mxu0 %v10102_v7  ;;  %2775 = vmatprep.mubr.bf16.mxu1 %v10102_v7  ;;  %v1696_v34 = vmax.f32 %v1610_v56, 0.0 }
 0x2ae   : > { %v2176_v41 = vpop.f32.mrf.mxu0  ;;  %v2529_v38 = vpop.f32.mrf.mxu1 }
 0x2af   : > { %v3598_v39 = vmax.f32 %v3597_v8, %v2176_v41  ;;  %v3724_v47 = vmax.f32 %v3723_v9, %v2529_v38  ;;  %v1697_v8 = vmax.f32 %v1613_v20, 0.0  ;;  %v1618_v41 = vadd.f32 %v9209_v30, %v8857_v28 }
 0x2b0   : > { %v2178_v42 = vpop.f32.mrf.mxu0  ;;  %v2531_v26 = vpop.f32.mrf.mxu1  ;;  %v1621_v38 = vadd.f32 %v9222_v43, %v8857_v28 }
 0x2b1   : > { %v3536_v6 = vmax.f32 %v3535_v24, %v2178_v42  ;;  %v3662_v27 = vmax.f32 %v3661_v44, %v2531_v26  ;;  %v1698_v30 = vmax.f32 %v1618_v41, 0.0 }
 0x2b2   : > { %v2180_v2 = vpop.f32.mrf.mxu0  ;;  %v2533_v40 = vpop.f32.mrf.mxu1  ;;  %v1699_v43 = vmax.f32 %v1621_v38, 0.0 }
 0x2b3   : > { %v3599_v23 = vmax.f32 %v3598_v39, %v2180_v2  ;;  %v3725_v11 = vmax.f32 %v3724_v47, %v2533_v40  ;;  %v9296_v39 = vpack.c.bf16 %v1697_v8, %v1696_v34 }
 0x2b4   : > { %v2184_v55 = vpop.f32.mrf.mxu0  ;;  %2423 = vmatmul.mubr.bf16.gmra.mxu0 %v9282_v18  ;;  %v2537_v13 = vpop.f32.mrf.mxu1  ;;  %2776 = vmatmul.mubr.bf16.gmra.mxu1 %v9282_v18  ;;  %v9302_v8 = vpack.c.bf16 %v1699_v43, %v1698_v30  ;;  %v1634_v30 = vadd.f32 %v9236_v54, %v8857_v28  ;;  %v8207_v43 = vld [vmem:[%s10078_s4] ss:$0 sm:$0xff] }
 0x2b5   : > { %v3537_v61 = vmax.f32 %v3536_v6, %v2184_v55  ;;  %v3663_v16 = vmax.f32 %v3662_v27, %v2537_v13  ;;  %2432 = vmatprep.mubr.bf16.mxu0 %v10102_v7  ;;  %2785 = vmatprep.mubr.bf16.mxu1 %v10102_v7  ;;  %10130 = vst [vmem:[#allocation19_spill] sm:$0xff] %v9296_v39 }
 0x2b6   : > { %v2186_v9 = vpop.f32.mrf.mxu0  ;;  %v2539_v46 = vpop.f32.mrf.mxu1  ;;  %10131 = vst [vmem:[#allocation20_spill] sm:$0xff] %v9302_v8  ;;  %v1702_v54 = vmax.f32 %v1634_v30, 0.0 }
 0x2b7   : > { %v3600_v25 = vmax.f32 %v3599_v23, %v2186_v9  ;;  %v3726_v10 = vmax.f32 %v3725_v11, %v2539_v46  ;;  %v1626_v9 = vadd.f32 %v8857_v28, %v9243_v51  ;;  %v1629_v46 = vadd.f32 %v8857_v28, %v9257_v59 }
 0x2b8   : > { %v2188_v24 = vpop.f32.mrf.mxu0  ;;  %v2541_v44 = vpop.f32.mrf.mxu1 }
 0x2b9   : > { %v3538_v3 = vmax.f32 %v3537_v61, %v2188_v24  ;;  %v3664_v15 = vmax.f32 %v3663_v16, %v2541_v44  ;;  %v1700_v51 = vmax.f32 %v1626_v9, 0.0 }
 0x2ba   : > { %v2190_v47 = vpop.f32.mrf.mxu0  ;;  %v2543_v42 = vpop.f32.mrf.mxu1 }
 0x2bb   : > { %v3601_v26 = vmax.f32 %v3600_v25, %v2190_v47  ;;  %v3727_v6 = vmax.f32 %v3726_v10, %v2543_v42  ;;  %v1701_v47 = vmax.f32 %v1629_v46, 0.0 }
 0x2bc   : > { %v2194_v27 = vpop.f32.mrf.mxu0  ;;  %2433 = vmatmul.mubr.bf16.gmra.mxu0 %v9296_v39  ;;  %v2547_v56 = vpop.f32.mrf.mxu1  ;;  %2786 = vmatmul.mubr.bf16.gmra.mxu1 %v9296_v39 }
 0x2bd   : > { %v3539_v20 = vmax.f32 %v3538_v3, %v2194_v27  ;;  %v3665_v2 = vmax.f32 %v3664_v15, %v2547_v56  ;;  %2442 = vmatprep.mubr.bf16.mxu0 %v10102_v7  ;;  %2795 = vmatprep.mubr.bf16.mxu1 %v10102_v7 }
 0x2be   : > { %v2196_v40 = vpop.f32.mrf.mxu0  ;;  %v2549_v23 = vpop.f32.mrf.mxu1 }
 0x2bf   : > { %v3602_v11 = vmax.f32 %v3601_v26, %v2196_v40  ;;  %v3728_v55 = vmax.f32 %v3727_v6, %v2549_v23  ;;  %v1637_v40 = vadd.f32 %v8207_v43, %v9249_v62  ;;  %v9318_v23 = vpack.c.bf16 %v1701_v47, %v1700_v51 }
 0x2c0   : > { %v2198_v13 = vpop.f32.mrf.mxu0  ;;  %v2551_v61 = vpop.f32.mrf.mxu1 }
 0x2c1   : > { %v3540_v16 = vmax.f32 %v3539_v20, %v2198_v13  ;;  %v3666_v34 = vmax.f32 %v3665_v2, %v2551_v61  ;;  %10132 = vst [vmem:[#allocation21_spill] sm:$0xff] %v9318_v23  ;;  %v1703_v62 = vmax.f32 %v1637_v40, 0.0 }
 0x2c2   : > { %v2200_v25 = vpop.f32.mrf.mxu0  ;;  %v2553_v10 = vpop.f32.mrf.mxu1 }
 0x2c3   : > { %v3603_v24 = vmax.f32 %v3602_v11, %v2200_v25  ;;  %v3729_v44 = vmax.f32 %v3728_v55, %v2553_v10 }
 0x2c4   : > { %v2204_v3 = vpop.f32.mrf.mxu0  ;;  %2443 = vmatmul.mubr.bf16.gmra.mxu0 %v9302_v8  ;;  %v2557_v15 = vpop.f32.mrf.mxu1  ;;  %2796 = vmatmul.mubr.bf16.gmra.mxu1 %v9302_v8 }
 0x2c5   : > { %v3541_v41 = vmax.f32 %v3540_v16, %v2204_v3  ;;  %v3667_v38 = vmax.f32 %v3666_v34, %v2557_v15  ;;  %2452 = vmatprep.mubr.bf16.mxu0 %v10102_v7  ;;  %2805 = vmatprep.mubr.bf16.mxu1 %v10102_v7 }
 0x2c6   : > { %v2206_v42 = vpop.f32.mrf.mxu0  ;;  %v2559_v59 = vpop.f32.mrf.mxu1 }
 0x2c7   : > { %v3604_v26 = vmax.f32 %v3603_v24, %v2206_v42  ;;  %v3730_v6 = vmax.f32 %v3729_v44, %v2559_v59 }
 0x2c8   : > { %v2208_v27 = vpop.f32.mrf.mxu0  ;;  %v2561_v56 = vpop.f32.mrf.mxu1 }
 0x2c9   : > { %v3542_v20 = vmax.f32 %v3541_v41, %v2208_v27  ;;  %v3668_v2 = vmax.f32 %v3667_v38, %v2561_v56  ;;  %v9324_v38 = vpack.c.bf16 %v1703_v62, %v1702_v54 }
 0x2ca   : > { %v2210_v11 = vpop.f32.mrf.mxu0  ;;  %v2563_v55 = vpop.f32.mrf.mxu1 }
 0x2cb   : > { %v3605_v13 = vmax.f32 %v3604_v26, %v2210_v11  ;;  %v3731_v61 = vmax.f32 %v3730_v6, %v2563_v55  ;;  %10133 = vst [vmem:[#allocation22_spill] sm:$0xff] %v9324_v38 }
 0x2cc   : > { %v2214_v16 = vpop.f32.mrf.mxu0  ;;  %2453 = vmatmul.mubr.bf16.gmra.mxu0 %v9318_v23  ;;  %v2567_v34 = vpop.f32.mrf.mxu1  ;;  %2806 = vmatmul.mubr.bf16.gmra.mxu1 %v9318_v23 }
 0x2cd   : > { %v3543_v9 = vmax.f32 %v3542_v20, %v2214_v16  ;;  %v3669_v28 = vmax.f32 %v3668_v2, %v2567_v34  ;;  %2462 = vmatprep.mubr.bf16.mxu0 %v10102_v7  ;;  %2815 = vmatprep.mubr.bf16.mxu1 %v10102_v7 }
 0x2ce   : > { %v2216_v46 = vpop.f32.mrf.mxu0  ;;  %v2569_v25 = vpop.f32.mrf.mxu1 }
 0x2cf   : > { %v3606_v10 = vmax.f32 %v3605_v13, %v2216_v46  ;;  %v3732_v24 = vmax.f32 %v3731_v61, %v2569_v25 }
 0x2d0   : > { %v2218_v44 = vpop.f32.mrf.mxu0  ;;  %v2571_v3 = vpop.f32.mrf.mxu1 }
 0x2d1   : > { %v3544_v15 = vmax.f32 %v3543_v9, %v2218_v44  ;;  %v3670_v41 = vmax.f32 %v3669_v28, %v2571_v3 }
 0x2d2   : > { %v2220_v51 = vpop.f32.mrf.mxu0  ;;  %v2573_v47 = vpop.f32.mrf.mxu1 }
 0x2d3   : > { %v3607_v42 = vmax.f32 %v3606_v10, %v2220_v51  ;;  %v3733_v59 = vmax.f32 %v3732_v24, %v2573_v47 }
 0x2d4   : > { %v2224_v26 = vpop.f32.mrf.mxu0  ;;  %2463 = vmatmul.mubr.bf16.gmra.mxu0 %v9324_v38  ;;  %v2577_v6 = vpop.f32.mrf.mxu1  ;;  %2816 = vmatmul.mubr.bf16.gmra.mxu1 %v9324_v38 }
 0x2d5   : > { %v3545_v27 = vmax.f32 %v3544_v15, %v2224_v26  ;;  %v3671_v56 = vmax.f32 %v3670_v41, %v2577_v6  ;;  %2858 = vmatprep.mubr.bf16.mxu0 %v10102_v7  ;;  %3211 = vmatprep.mubr.bf16.mxu1 %v10102_v7 }
 0x2d6   : > { %v2226_v20 = vpop.f32.mrf.mxu0  ;;  %v2579_v2 = vpop.f32.mrf.mxu1 }
 0x2d7   : > { %v3608_v30 = vmax.f32 %v3607_v42, %v2226_v20  ;;  %v3734_v43 = vmax.f32 %v3733_v59, %v2579_v2 }
 0x2d8   : > { %v2228_v40 = vpop.f32.mrf.mxu0  ;;  %v2581_v11 = vpop.f32.mrf.mxu1 }
 0x2d9   : > { %v3546_v55 = vmax.f32 %v3545_v27, %v2228_v40  ;;  %v3672_v13 = vmax.f32 %v3671_v56, %v2581_v11 }
 0x2da   : > { %v2230_v61 = vpop.f32.mrf.mxu0  ;;  %v2583_v16 = vpop.f32.mrf.mxu1 }
 0x2db   : > { %v3609_v34 = vmax.f32 %v3608_v30, %v2230_v61  ;;  %v3735_v9 = vmax.f32 %v3734_v43, %v2583_v16 }
 0x2dc   : > { %v2234_v28 = vpop.f32.mrf.mxu0  ;;  %v2587_v54 = vpop.f32.mrf.mxu1  ;;  %2859 = vmatmul.mubr.bf16.vlgmr.msra.gmra.mxu0 %v8876_v45  ;;  %3212 = vmatmul.mubr.bf16.vlgmr.msra.gmra.mxu1 %v8876_v45 }
 0x2dd   : > { %v3547_v62 = vmax.f32 %v3546_v55, %v2234_v28  ;;  %v3673_v46 = vmax.f32 %v3672_v13, %v2587_v54  ;;  %2868 = vmatprep.mubr.bf16.mxu0 %v10102_v7  ;;  %3221 = vmatprep.mubr.bf16.mxu1 %v10102_v7 }
 0x2de   : > { %v2236_v25 = vpop.f32.mrf.mxu0  ;;  %v2589_v10 = vpop.f32.mrf.mxu1 }
 0x2df   : > { %v3610_v24 = vmax.f32 %v3609_v34, %v2236_v25  ;;  %v3736_v44 = vmax.f32 %v3735_v9, %v2589_v10  ;;  %v7713_v25 = vld [vmem:[#allocation3 + $0xe4] ss:$16 sps:$4 sm:$0xff]  }
 0x2e0   : > { %v2238_v3 = vpop.f32.mrf.mxu0  ;;  %v2591_v15 = vpop.f32.mrf.mxu1  ;;  %5751 = vmatprep.subr.bf16.mxu0 %v7713_v25  ;;  %v7717_v25 = vld [vmem:[#allocation3 + $0xc0] ss:$16 sps:$4 sm:$0xff]  }
 0x2e1   : > { %v3548_v41 = vmax.f32 %v3547_v62, %v2238_v3  ;;  %v3674_v51 = vmax.f32 %v3673_v46, %v2591_v15  ;;  %v7711_v46 = vld [vmem:[#allocation3 + $0xe0] ss:$16 sps:$4 sm:$0xff]  }
 0x2e2   : > { %v2240_v47 = vpop.f32.mrf.mxu0  ;;  %v2593_v42 = vpop.f32.mrf.mxu1  ;;  %v7714_v15 = vld [vmem:[#allocation3 + $0x2e0] ss:$16 sps:$4 sm:$0xff]   ;;  %5752 = vmatpush1.bf16.msra.mxu0 %v7711_v46 }
 0x2e3   : > { %v3611_v59 = vmax.f32 %v3610_v24, %v2240_v47  ;;  %v3737_v26 = vmax.f32 %v3736_v44, %v2593_v42 }
 0x2e4   : > { %v2244_v6 = vpop.f32.mrf.mxu0  ;;  %v2597_v45 = vpop.f32.mrf.mxu1  ;;  %2869 = vmatmul.mubr.bf16.gmra.mxu0 %v8915_v60  ;;  %3222 = vmatmul.mubr.bf16.gmra.mxu1 %v8915_v60 }
 0x2e5   : > { %v3549_v27 = vmax.f32 %v3548_v41, %v2244_v6  ;;  %v3675_v56 = vmax.f32 %v3674_v51, %v2597_v45  ;;  %2878 = vmatprep.mubr.bf16.mxu0 %v10102_v7  ;;  %3231 = vmatprep.mubr.bf16.mxu1 %v10102_v7  ;;  %v7716_v41 = vld [vmem:[#allocation3 + $0x2e4] ss:$16 sps:$4 sm:$0xff]  }
 0x2e6   : > { %v2246_v20 = vpop.f32.mrf.mxu0  ;;  %v2599_v2 = vpop.f32.mrf.mxu1  ;;  %5792 = vmatprep.subr.bf16.mxu1 %v7716_v41  ;;  %v7720_v41 = vld [vmem:[#allocation3 + $0x2c0] ss:$16 sps:$4 sm:$0xff]  }
 0x2e7   : > { %v3612_v30 = vmax.f32 %v3611_v59, %v2246_v20  ;;  %v3738_v43 = vmax.f32 %v3737_v26, %v2599_v2  ;;  %5793 = vmatpush1.bf16.msra.mxu1 %v7714_v15 }
 0x2e8   : > { %v2248_v40 = vpop.f32.mrf.mxu0  ;;  %v2601_v11 = vpop.f32.mrf.mxu1 }
 0x2e9   : > { %v3550_v55 = vmax.f32 %v3549_v27, %v2248_v40  ;;  %v3676_v13 = vmax.f32 %v3675_v56, %v2601_v11 }
 0x2ea   : > { %v2250_v61 = vpop.f32.mrf.mxu0  ;;  %v2603_v16 = vpop.f32.mrf.mxu1 }
 0x2eb   : > { %v3613_v34 = vmax.f32 %v3612_v30, %v2250_v61  ;;  %v3739_v9 = vmax.f32 %v3738_v43, %v2603_v16 }
 0x2ec   : > { %v2254_v28 = vpop.f32.mrf.mxu0  ;;  %v2607_v60 = vpop.f32.mrf.mxu1  ;;  %2879 = vmatmul.mubr.bf16.gmra.mxu0 %v8940_v21  ;;  %3232 = vmatmul.mubr.bf16.gmra.mxu1 %v8940_v21 }
 0x2ed   : > { %v3551_v54 = vmax.f32 %v3550_v55, %v2254_v28  ;;  %v3677_v62 = vmax.f32 %v3676_v13, %v2607_v60  ;;  %2888 = vmatprep.mubr.bf16.mxu0 %v10102_v7  ;;  %3241 = vmatprep.mubr.bf16.mxu1 %v10102_v7 }
 0x2ee   : > { %v2256_v10 = vpop.f32.mrf.mxu0  ;;  %v2609_v24 = vpop.f32.mrf.mxu1 }
 0x2ef   : > { %v3614_v44 = vmax.f32 %v3613_v34, %v2256_v10  ;;  %v3740_v3 = vmax.f32 %v3739_v9, %v2609_v24  ;;  %v7719_v10 = vld [vmem:[#allocation3 + $0xc4] ss:$16 sps:$4 sm:$0xff]  }
 0x2f0   : > { %v2258_v51 = vpop.f32.mrf.mxu0  ;;  %v2611_v47 = vpop.f32.mrf.mxu1  ;;  %5753 = vmatprep.subr.bf16.mxu0 %v7719_v10 }
 0x2f1   : > { %v3552_v42 = vmax.f32 %v3551_v54, %v2258_v51  ;;  %v3678_v21 = vmax.f32 %v3677_v62, %v2611_v47  ;;  %v7722_v51 = vld [vmem:[#allocation3 + $0x2c4] ss:$16 sps:$4 sm:$0xff]   ;;  %5754 = vmatpush1.bf16.msra.mxu0 %v7717_v25 }
 0x2f2   : > { %v2260_v59 = vpop.f32.mrf.mxu0  ;;  %v2613_v26 = vpop.f32.mrf.mxu1  ;;  %5794 = vmatprep.subr.bf16.mxu1 %v7722_v51  ;;  %v7725_v25 = vld [vmem:[#allocation3 + $0xa4] ss:$16 sps:$4 sm:$0xff]  }
 0x2f3   : > { %v3615_v6 = vmax.f32 %v3614_v44, %v2260_v59  ;;  %v3741_v45 = vmax.f32 %v3740_v3, %v2613_v26  ;;  %5795 = vmatpush1.bf16.msra.mxu1 %v7720_v41  ;;  %5755 = vmatprep.subr.bf16.mxu0 %v7725_v25  ;;  %v7728_v41 = vld [vmem:[#allocation3 + $0x2a4] ss:$16 sps:$4 sm:$0xff]  }
 0x2f4   : > { %v2264_v27 = vpop.f32.mrf.mxu0  ;;  %v2617_v56 = vpop.f32.mrf.mxu1  ;;  %2889 = vmatmul.mubr.bf16.gmra.mxu0 %v8950_v35  ;;  %3242 = vmatmul.mubr.bf16.gmra.mxu1 %v8950_v35 }
 0x2f5   : > { %v3553_v20 = vmax.f32 %v3552_v42, %v2264_v27  ;;  %v3679_v2 = vmax.f32 %v3678_v21, %v2617_v56  ;;  %2898 = vmatprep.mubr.bf16.mxu0 %v10102_v7  ;;  %3251 = vmatprep.mubr.bf16.mxu1 %v10102_v7 }
 0x2f6   : > { %v2266_v30 = vpop.f32.mrf.mxu0  ;;  %v2619_v43 = vpop.f32.mrf.mxu1  ;;  %5796 = vmatprep.subr.bf16.mxu1 %v7728_v41 }
 0x2f7   : > { %v3616_v40 = vmax.f32 %v3615_v6, %v2266_v30  ;;  %v3742_v11 = vmax.f32 %v3741_v45, %v2619_v43 }
 0x2f8   : > { %v2268_v55 = vpop.f32.mrf.mxu0  ;;  %v2621_v13 = vpop.f32.mrf.mxu1 }
 0x2f9   : > { %v3554_v61 = vmax.f32 %v3553_v20, %v2268_v55  ;;  %v3680_v16 = vmax.f32 %v3679_v2, %v2621_v13 }
 0x2fa   : > { %v2270_v34 = vpop.f32.mrf.mxu0  ;;  %v2623_v9 = vpop.f32.mrf.mxu1 }
 0x2fb   : > { %v3617_v28 = vmax.f32 %v3616_v40, %v2270_v34  ;;  %v3743_v60 = vmax.f32 %v3742_v11, %v2623_v9 }
 0x2fc   : > { %v2274_v54 = vpop.f32.mrf.mxu0  ;;  %v2627_v35 = vpop.f32.mrf.mxu1  ;;  %2899 = vmatmul.mubr.bf16.gmra.mxu0 %v8972_v52  ;;  %3252 = vmatmul.mubr.bf16.gmra.mxu1 %v8972_v52 }
 0x2fd   : > { %v3555_v62 = vmax.f32 %v3554_v61, %v2274_v54  ;;  %v3681_v46 = vmax.f32 %v3680_v16, %v2627_v35  ;;  %2908 = vmatprep.mubr.bf16.mxu0 %v10102_v7  ;;  %3261 = vmatprep.mubr.bf16.mxu1 %v10102_v7 }
 0x2fe   : > { %v2276_v24 = vpop.f32.mrf.mxu0  ;;  %v2629_v44 = vpop.f32.mrf.mxu1 }
 0x2ff   : > { %v3618_v3 = vmax.f32 %v3617_v28, %v2276_v24  ;;  %v3744_v15 = vmax.f32 %v3743_v60, %v2629_v44 }
 0x300   : > { %v2278_v47 = vpop.f32.mrf.mxu0  ;;  %v2631_v42 = vpop.f32.mrf.mxu1 }
 0x301   : > { %v3556_v21 = vmax.f32 %v3555_v62, %v2278_v47  ;;  %v3682_v52 = vmax.f32 %v3681_v46, %v2631_v42  ;;  %v7723_v46 = vld [vmem:[#allocation3 + $0xa0] ss:$16 sps:$4 sm:$0xff]  }
 0x302   : > { %v2280_v59 = vpop.f32.mrf.mxu0  ;;  %v2633_v26 = vpop.f32.mrf.mxu1  ;;  %5756 = vmatpush1.bf16.msra.mxu0 %v7723_v46 }
 0x303   : > { %v3619_v6 = vmax.f32 %v3618_v3, %v2280_v59  ;;  %v3745_v45 = vmax.f32 %v3744_v15, %v2633_v26  ;;  %v7726_v15 = vld [vmem:[#allocation3 + $0x2a0] ss:$16 sps:$4 sm:$0xff]  }
 0x304   : > { %v2284_v27 = vpop.f32.mrf.mxu0  ;;  %v2637_v56 = vpop.f32.mrf.mxu1  ;;  %2909 = vmatmul.mubr.bf16.gmra.mxu0 %v8988_v19  ;;  %3262 = vmatmul.mubr.bf16.gmra.mxu1 %v8988_v19 }
 0x305   : > { %v3557_v20 = vmax.f32 %v3556_v21, %v2284_v27  ;;  %v3683_v2 = vmax.f32 %v3682_v52, %v2637_v56  ;;  %2918 = vmatprep.mubr.bf16.mxu0 %v10102_v7  ;;  %3271 = vmatprep.mubr.bf16.mxu1 %v10102_v7 }
 0x306   : > { %v2286_v30 = vpop.f32.mrf.mxu0  ;;  %v2639_v43 = vpop.f32.mrf.mxu1  ;;  %5797 = vmatpush1.bf16.msra.mxu1 %v7726_v15 }
 0x307   : > { %v3620_v40 = vmax.f32 %v3619_v6, %v2286_v30  ;;  %v3746_v11 = vmax.f32 %v3745_v45, %v2639_v43 }
 0x308   : > { %v2288_v55 = vpop.f32.mrf.mxu0  ;;  %v2641_v13 = vpop.f32.mrf.mxu1 }
 0x309   : > { %v3558_v61 = vmax.f32 %v3557_v20, %v2288_v55  ;;  %v3684_v16 = vmax.f32 %v3683_v2, %v2641_v13 }
 0x30a   : > { %v2290_v34 = vpop.f32.mrf.mxu0  ;;  %v2643_v9 = vpop.f32.mrf.mxu1 }
 0x30b   : > { %v3621_v28 = vmax.f32 %v3620_v40, %v2290_v34  ;;  %v3747_v60 = vmax.f32 %v3746_v11, %v2643_v9 }
 0x30c   : > { %v2294_v54 = vpop.f32.mrf.mxu0  ;;  %v2647_v19 = vpop.f32.mrf.mxu1  ;;  %2919 = vmatmul.mubr.bf16.gmra.mxu0 %v9001_v63  ;;  %3272 = vmatmul.mubr.bf16.gmra.mxu1 %v9001_v63 }
 0x30d   : > { %v3559_v35 = vmax.f32 %v3558_v61, %v2294_v54  ;;  %v3685_v62 = vmax.f32 %v3684_v16, %v2647_v19  ;;  %2928 = vmatprep.mubr.bf16.mxu0 %v10102_v7  ;;  %3281 = vmatprep.mubr.bf16.mxu1 %v10102_v7 }
 0x30e   : > { %v2296_v10 = vpop.f32.mrf.mxu0  ;;  %v2649_v24 = vpop.f32.mrf.mxu1 }
 0x30f   : > { %v3622_v44 = vmax.f32 %v3621_v28, %v2296_v10  ;;  %v3748_v3 = vmax.f32 %v3747_v60, %v2649_v24 }
 0x310   : > { %v2298_v51 = vpop.f32.mrf.mxu0  ;;  %v2651_v47 = vpop.f32.mrf.mxu1 }
 0x311   : > { %v3560_v42 = vmax.f32 %v3559_v35, %v2298_v51  ;;  %v3686_v63 = vmax.f32 %v3685_v62, %v2651_v47 }
 0x312   : > { %v2300_v21 = vpop.f32.mrf.mxu0  ;;  %v2653_v52 = vpop.f32.mrf.mxu1 }
 0x313   : > { %v3623_v59 = vmax.f32 %v3622_v44, %v2300_v21  ;;  %v3749_v26 = vmax.f32 %v3748_v3, %v2653_v52 }
 0x314   : > { %v2304_v6 = vpop.f32.mrf.mxu0  ;;  %v2657_v45 = vpop.f32.mrf.mxu1  ;;  %2929 = vmatmul.mubr.bf16.gmra.mxu0 %v9011_v4  ;;  %3282 = vmatmul.mubr.bf16.gmra.mxu1 %v9011_v4 }
 0x315   : > { %v3561_v27 = vmax.f32 %v3560_v42, %v2304_v6  ;;  %v3687_v56 = vmax.f32 %v3686_v63, %v2657_v45  ;;  %2938 = vmatprep.mubr.bf16.mxu0 %v10102_v7  ;;  %3291 = vmatprep.mubr.bf16.mxu1 %v10102_v7 }
 0x316   : > { %v2306_v20 = vpop.f32.mrf.mxu0  ;;  %v2659_v2 = vpop.f32.mrf.mxu1 }
 0x317   : > { %v3624_v30 = vmax.f32 %v3623_v59, %v2306_v20  ;;  %v3750_v43 = vmax.f32 %v3749_v26, %v2659_v2  ;;  %v7731_v59 = vld [vmem:[#allocation3 + $0x84] ss:$16 sps:$4 sm:$0xff]  }
 0x318   : > { %v2308_v40 = vpop.f32.mrf.mxu0  ;;  %v2661_v11 = vpop.f32.mrf.mxu1  ;;  %v7734_v26 = vld [vmem:[#allocation3 + $0x284] ss:$16 sps:$4 sm:$0xff]   ;;  %5757 = vmatprep.subr.bf16.mxu0 %v7731_v59  ;;  %v7747_v59 = vld [vmem:[#allocation3 + $0x20] ss:$16 sps:$4 sm:$0xff]  }
 0x319   : > { %v3562_v55 = vmax.f32 %v3561_v27, %v2308_v40  ;;  %v3688_v13 = vmax.f32 %v3687_v56, %v2661_v11  ;;  %v7729_v27 = vld [vmem:[#allocation3 + $0x80] ss:$16 sps:$4 sm:$0xff]   ;;  %5798 = vmatprep.subr.bf16.mxu1 %v7734_v26 }
 0x31a   : > { %v2310_v61 = vpop.f32.mrf.mxu0  ;;  %v2663_v16 = vpop.f32.mrf.mxu1  ;;  %v7732_v56 = vld [vmem:[#allocation3 + $0x280] ss:$16 sps:$4 sm:$0xff]   ;;  %5758 = vmatpush1.bf16.msra.mxu0 %v7729_v27 }
 0x31b   : > { %v3625_v34 = vmax.f32 %v3624_v30, %v2310_v61  ;;  %v3751_v9 = vmax.f32 %v3750_v43, %v2663_v16  ;;  %5799 = vmatpush1.bf16.msra.mxu1 %v7732_v56  ;;  %v7740_v61 = vld [vmem:[#allocation3 + $0x264] ss:$16 sps:$4 sm:$0xff]   ;;  %v7750_v26 = vld [vmem:[#allocation3 + $0x220] ss:$16 sps:$4 sm:$0xff]  }
 0x31c   : > { %v2314_v28 = vpop.f32.mrf.mxu0  ;;  %v2667_v4 = vpop.f32.mrf.mxu1  ;;  %2939 = vmatmul.mubr.bf16.gmra.mxu0 %v9033_v22  ;;  %3292 = vmatmul.mubr.bf16.gmra.mxu1 %v9033_v22 }
 0x31d   : > { %v3563_v60 = vmax.f32 %v3562_v55, %v2314_v28  ;;  %v3689_v54 = vmax.f32 %v3688_v13, %v2667_v4  ;;  %2948 = vmatprep.mubr.bf16.mxu0 %v10102_v7  ;;  %3301 = vmatprep.mubr.bf16.mxu1 %v10102_v7  ;;  %v7737_v13 = vld [vmem:[#allocation3 + $0x64] ss:$16 sps:$4 sm:$0xff]   ;;  %v7738_v28 = vld [vmem:[#allocation3 + $0x260] ss:$16 sps:$4 sm:$0xff]  }
 0x31e   : > { %v2316_v19 = vpop.f32.mrf.mxu0  ;;  %v2669_v35 = vpop.f32.mrf.mxu1  ;;  %5759 = vmatprep.subr.bf16.mxu0 %v7737_v13  ;;  %5800 = vmatprep.subr.bf16.mxu1 %v7740_v61 }
 0x31f   : > { %v3626_v62 = vmax.f32 %v3625_v34, %v2316_v19  ;;  %v3752_v46 = vmax.f32 %v3751_v9, %v2669_v35  ;;  %v7735_v9 = vld [vmem:[#allocation3 + $0x60] ss:$16 sps:$4 sm:$0xff]   ;;  %5801 = vmatpush1.bf16.msra.mxu1 %v7738_v28  ;;  %v7761_v28 = vld [vmem:[#allocation3 + $0x1e4] ss:$16 sps:$4 sm:$0xff]  }
 0x320   : > { %v2318_v25 = vpop.f32.mrf.mxu0  ;;  %v2671_v10 = vpop.f32.mrf.mxu1  ;;  %5760 = vmatpush1.bf16.msra.mxu0 %v7735_v9 }
 0x321   : > { %v3564_v24 = vmax.f32 %v3563_v60, %v2318_v25  ;;  %v3690_v44 = vmax.f32 %v3689_v54, %v2671_v10  ;;  %v7746_v25 = vld [vmem:[#allocation3 + $0x244] ss:$16 sps:$4 sm:$0xff]  }
 0x322   : > { %v2320_v3 = vpop.f32.mrf.mxu0  ;;  %v2673_v15 = vpop.f32.mrf.mxu1  ;;  %5802 = vmatprep.subr.bf16.mxu1 %v7746_v25 }
 0x323   : > { %v3627_v41 = vmax.f32 %v3626_v62, %v2320_v3  ;;  %v3753_v51 = vmax.f32 %v3752_v46, %v2673_v15  ;;  %v7743_v46 = vld [vmem:[#allocation3 + $0x44] ss:$16 sps:$4 sm:$0xff]  }
 0x324   : > { %v2324_v47 = vpop.f32.mrf.mxu0  ;;  %v2677_v22 = vpop.f32.mrf.mxu1  ;;  %2949 = vmatmul.mubr.bf16.gmra.mxu0 %v9047_v36  ;;  %3302 = vmatmul.mubr.bf16.gmra.mxu1 %v9047_v36 }
 0x325   : > { %v3565_v42 = vmax.f32 %v3564_v24, %v2324_v47  ;;  %v3691_v63 = vmax.f32 %v3690_v44, %v2677_v22  ;;  %2958 = vmatprep.mubr.bf16.mxu0 %v10102_v7  ;;  %3311 = vmatprep.mubr.bf16.mxu1 %v10102_v7  ;;  %v7741_v24 = vld [vmem:[#allocation3 + $0x40] ss:$16 sps:$4 sm:$0xff]  }
 0x326   : > { %v2326_v21 = vpop.f32.mrf.mxu0  ;;  %v2679_v52 = vpop.f32.mrf.mxu1  ;;  %v7744_v44 = vld [vmem:[#allocation3 + $0x240] ss:$16 sps:$4 sm:$0xff]   ;;  %5761 = vmatprep.subr.bf16.mxu0 %v7743_v46 }
 0x327   : > { %v3628_v6 = vmax.f32 %v3627_v41, %v2326_v21  ;;  %v3754_v45 = vmax.f32 %v3753_v51, %v2679_v52  ;;  %5762 = vmatpush1.bf16.msra.mxu0 %v7741_v24  ;;  %5803 = vmatpush1.bf16.msra.mxu1 %v7744_v44  ;;  %v7767_v44 = vld [vmem:[#allocation3 + $0x1c4] ss:$16 sps:$4 sm:$0xff]  }
 0x328   : > { %v2328_v20 = vpop.f32.mrf.mxu0  ;;  %v2681_v2 = vpop.f32.mrf.mxu1 }
 0x329   : > { %v3566_v30 = vmax.f32 %v3565_v42, %v2328_v20  ;;  %v3692_v36 = vmax.f32 %v3691_v63, %v2681_v2  ;;  %v7749_v42 = vld [vmem:[#allocation3 + $0x24] ss:$16 sps:$4 sm:$0xff]  }
 0x32a   : > { %v2330_v43 = vpop.f32.mrf.mxu0  ;;  %v2683_v40 = vpop.f32.mrf.mxu1  ;;  %v7752_v63 = vld [vmem:[#allocation3 + $0x224] ss:$16 sps:$4 sm:$0xff]   ;;  %5763 = vmatprep.subr.bf16.mxu0 %v7749_v42 }
 0x32b   : > { %v3629_v11 = vmax.f32 %v3628_v6, %v2330_v43  ;;  %v3755_v55 = vmax.f32 %v3754_v45, %v2683_v40  ;;  %5804 = vmatprep.subr.bf16.mxu1 %v7752_v63  ;;  %5764 = vmatpush1.bf16.msra.mxu0 %v7747_v59  ;;  %v7753_v40 = vld [vmem:[#allocation3] ss:$16 sps:$4 sm:$0xff]   ;;  %v7773_v59 = vld [vmem:[#allocation3 + $0x1a4] ss:$16 sps:$4 sm:$0xff]  }
 0x32c   : > { %v2334_v16 = vpop.f32.mrf.mxu0  ;;  %v2687_v34 = vpop.f32.mrf.mxu1  ;;  %2959 = vmatmul.mubr.bf16.gmra.mxu0 %v9064_v50  ;;  %3312 = vmatmul.mubr.bf16.gmra.mxu1 %v9064_v50 }
 0x32d   : > { %v3567_v4 = vmax.f32 %v3566_v30, %v2334_v16  ;;  %v3693_v60 = vmax.f32 %v3692_v36, %v2687_v34  ;;  %2968 = vmatprep.mubr.bf16.mxu0 %v10102_v7  ;;  %3321 = vmatprep.mubr.bf16.mxu1 %v10102_v7  ;;  %v7755_v30 = vld [vmem:[#allocation3 + $0x4] ss:$16 sps:$4 sm:$0xff]  }
 0x32e   : > { %v2336_v54 = vpop.f32.mrf.mxu0  ;;  %v2689_v19 = vpop.f32.mrf.mxu1  ;;  %5805 = vmatpush1.bf16.msra.mxu1 %v7750_v26  ;;  %v7758_v36 = vld [vmem:[#allocation3 + $0x204] ss:$16 sps:$4 sm:$0xff]   ;;  %5765 = vmatprep.subr.bf16.mxu0 %v7755_v30 }
 0x32f   : > { %v3630_v35 = vmax.f32 %v3629_v11, %v2336_v54  ;;  %v3756_v62 = vmax.f32 %v3755_v55, %v2689_v19  ;;  %v7756_v11 = vld [vmem:[#allocation3 + $0x200] ss:$16 sps:$4 sm:$0xff]   ;;  %5806 = vmatprep.subr.bf16.mxu1 %v7758_v36  ;;  %5766 = vmatpush1.bf16.msra.mxu0 %v7753_v40  ;;  %v7776_v26 = vld [vmem:[#allocation3 + $0x3a4] ss:$16 sps:$4 sm:$0xff]  }
 0x330   : > { %v2338_v10 = vpop.f32.mrf.mxu0  ;;  %v2691_v50 = vpop.f32.mrf.mxu1  ;;  %v7759_v19 = vld [vmem:[#allocation3 + $0x1e0] ss:$16 sps:$4 sm:$0xff]   ;;  %5767 = vmatprep.subr.bf16.mxu0 %v7761_v28  ;;  %v7779_v40 = vld [vmem:[#allocation3 + $0x184] ss:$16 sps:$4 sm:$0xff]  }
 0x331   : > { %v3568_v3 = vmax.f32 %v3567_v4, %v2338_v10  ;;  %v3694_v15 = vmax.f32 %v3693_v60, %v2691_v50  ;;  %v7764_v4 = vld [vmem:[#allocation3 + $0x3e4] ss:$16 sps:$4 sm:$0xff]  }
 0x332   : > { %v2340_v41 = vpop.f32.mrf.mxu0  ;;  %v2693_v51 = vpop.f32.mrf.mxu1  ;;  %5807 = vmatpush1.bf16.msra.mxu1 %v7756_v11  ;;  %v7782_v11 = vld [vmem:[#allocation3 + $0x384] ss:$16 sps:$4 sm:$0xff]  }
 0x333   : > { %v3631_v47 = vmax.f32 %v3630_v35, %v2340_v41  ;;  %v3757_v22 = vmax.f32 %v3756_v62, %v2693_v51  ;;  %v7762_v35 = vld [vmem:[#allocation3 + $0x3e0] ss:$16 sps:$4 sm:$0xff]   ;;  %5808 = vmatprep.subr.bf16.mxu1 %v7764_v4  ;;  %5768 = vmatpush2.bf16.msra.mxu0 %v7759_v19  ;;  %v7788_v19 = vld [vmem:[#allocation3 + $0x364] ss:$16 sps:$4 sm:$0xff]  }
 0x334   : > { %v2344_v21 = vpop.f32.mrf.mxu0  ;;  %v2697_v52 = vpop.f32.mrf.mxu1  ;;  %2969 = vmatmul.mubr.bf16.gmra.mxu0 %v9074_v49  ;;  %3322 = vmatmul.mubr.bf16.gmra.mxu1 %v9074_v49  ;;  %v7765_v41 = vld [vmem:[#allocation3 + $0x1c0] ss:$16 sps:$4 sm:$0xff]  }
 0x335   : > { %v3569_v6 = vmax.f32 %v3568_v3, %v2344_v21  ;;  %v3695_v45 = vmax.f32 %v3694_v15, %v2697_v52  ;;  %2978 = vmatprep.mubr.bf16.mxu0 %v10102_v7  ;;  %3331 = vmatprep.mubr.bf16.mxu1 %v10102_v7  ;;  %v7770_v3 = vld [vmem:[#allocation3 + $0x3c4] ss:$16 sps:$4 sm:$0xff]   ;;  %v7768_v51 = vld [vmem:[#allocation3 + $0x3c0] ss:$16 sps:$4 sm:$0xff]  }
 0x336   : > { %v2346_v27 = vpop.f32.mrf.mxu0  ;;  %v2699_v56 = vpop.f32.mrf.mxu1  ;;  %5809 = vmatpush2.bf16.msra.mxu1 %v7762_v35  ;;  %5769 = vmatprep.subr.bf16.mxu0 %v7767_v44 }
 0x337   : > { %v3632_v20 = vmax.f32 %v3631_v47, %v2346_v27  ;;  %v3758_v2 = vmax.f32 %v3757_v22, %v2699_v56  ;;  %5810 = vmatprep.subr.bf16.mxu1 %v7770_v3  ;;  %5770 = vmatpush2.bf16.msra.mxu0 %v7765_v41  ;;  %v7771_v27 = vld [vmem:[#allocation3 + $0x1a0] ss:$16 sps:$4 sm:$0xff]   ;;  %v7794_v41 = vld [vmem:[#allocation3 + $0x344] ss:$16 sps:$4 sm:$0xff]  }
 0x338   : > { %v2348_v43 = vpop.f32.mrf.mxu0  ;;  %v2701_v49 = vpop.f32.mrf.mxu1  ;;  %v7774_v56 = vld [vmem:[#allocation3 + $0x3a0] ss:$16 sps:$4 sm:$0xff]   ;;  %5771 = vmatprep.subr.bf16.mxu0 %v7773_v59 }
 0x339   : > { %v3570_v55 = vmax.f32 %v3569_v6, %v2348_v43  ;;  %v3696_v13 = vmax.f32 %v3695_v45, %v2701_v49 }
 0x33a   : > { %v2350_v61 = vpop.f32.mrf.mxu0  ;;  %v2703_v16 = vpop.f32.mrf.mxu1  ;;  %5811 = vmatpush2.bf16.msra.mxu1 %v7768_v51 }
 0x33b   : > { %v3633_v34 = vmax.f32 %v3632_v20, %v2350_v61  ;;  %v3759_v9 = vmax.f32 %v3758_v2, %v2703_v16  ;;  %5812 = vmatprep.subr.bf16.mxu1 %v7776_v26  ;;  %5772 = vmatpush2.bf16.msra.mxu0 %v7771_v27  ;;  %v7780_v61 = vld [vmem:[#allocation3 + $0x380] ss:$16 sps:$4 sm:$0xff]  }
 0x33c   : > { %v2354_v60 = vpop.f32.mrf.mxu0  ;;  %v2707_v54 = vpop.f32.mrf.mxu1  ;;  %2979 = vmatmul.mubr.bf16.gmra.mxu0 %v9091_v31  ;;  %3332 = vmatmul.mubr.bf16.gmra.mxu1 %v9091_v31 }
 0x33d   : > { %v3571_v62 = vmax.f32 %v3570_v55, %v2354_v60  ;;  %v3697_v46 = vmax.f32 %v3696_v13, %v2707_v54  ;;  %2988 = vmatprep.mubr.bf16.mxu0 %v10102_v7  ;;  %3341 = vmatprep.mubr.bf16.mxu1 %v10102_v7  ;;  %v7777_v13 = vld [vmem:[#allocation3 + $0x180] ss:$16 sps:$4 sm:$0xff]   ;;  %v7785_v54 = vld [vmem:[#allocation3 + $0x164] ss:$16 sps:$4 sm:$0xff]  }
 0x33e   : > { %v2356_v25 = vpop.f32.mrf.mxu0  ;;  %v2709_v10 = vpop.f32.mrf.mxu1  ;;  %5813 = vmatpush2.bf16.msra.mxu1 %v7774_v56  ;;  %5773 = vmatprep.subr.bf16.mxu0 %v7779_v40 }
 0x33f   : > { %v3634_v50 = vmax.f32 %v3633_v34, %v2356_v25  ;;  %v3760_v24 = vmax.f32 %v3759_v9, %v2709_v10  ;;  %5814 = vmatprep.subr.bf16.mxu1 %v7782_v11  ;;  %5774 = vmatpush2.bf16.msra.mxu0 %v7777_v13  ;;  %v7786_v25 = vld [vmem:[#allocation3 + $0x360] ss:$16 sps:$4 sm:$0xff]  }
 0x340   : > { %v2358_v15 = vpop.f32.mrf.mxu0  ;;  %v2711_v31 = vpop.f32.mrf.mxu1  ;;  %5775 = vmatprep.subr.bf16.mxu0 %v7785_v54 }
 0x341   : > { %v3572_v47 = vmax.f32 %v3571_v62, %v2358_v15  ;;  %v3698_v22 = vmax.f32 %v3697_v46, %v2711_v31  ;;  %v7783_v46 = vld [vmem:[#allocation3 + $0x160] ss:$16 sps:$4 sm:$0xff]   ;;  %v7791_v31 = vld [vmem:[#allocation3 + $0x144] ss:$16 sps:$4 sm:$0xff]  }
 0x342   : > { %v2360_v42 = vpop.f32.mrf.mxu0  ;;  %v2713_v63 = vpop.f32.mrf.mxu1  ;;  %5815 = vmatpush2.bf16.msra.mxu1 %v7780_v61  ;;  %v7801_v61 = vld [vmem:[#allocation3 + $0x100] ss:$16 sps:$4 sm:$0xff]  }
 0x343   : > { %v3635_v21 = vmax.f32 %v3634_v50, %v2360_v42  ;;  %v3761_v52 = vmax.f32 %v3760_v24, %v2713_v63  ;;  %5816 = vmatprep.subr.bf16.mxu1 %v7788_v19  ;;  %5776 = vmatpush2.bf16.msra.mxu0 %v7783_v46 }
 0x344   : > { %v2364_v6 = vpop.f32.mrf.mxu0  ;;  %v2717_v45 = vpop.f32.mrf.mxu1  ;;  %2989 = vmatmul.mubr.bf16.gmra.mxu0 %v9111_v14  ;;  %3342 = vmatmul.mubr.bf16.gmra.mxu1 %v9111_v14 }
 0x345   : > { %v3573_v20 = vmax.f32 %v3572_v47, %v2364_v6  ;;  %v3699_v2 = vmax.f32 %v3698_v22, %v2717_v45  ;;  %2998 = vmatprep.mubr.bf16.mxu0 %v10102_v7  ;;  %3351 = vmatprep.mubr.bf16.mxu1 %v10102_v7  ;;  %v7789_v47 = vld [vmem:[#allocation3 + $0x140] ss:$16 sps:$4 sm:$0xff]   ;;  %v7797_v6 = vld [vmem:[#allocation3 + $0x124] ss:$16 sps:$4 sm:$0xff]  }
 0x346   : > { %v2366_v30 = vpop.f32.mrf.mxu0  ;;  %v2719_v36 = vpop.f32.mrf.mxu1  ;;  %5817 = vmatpush2.bf16.msra.mxu1 %v7786_v25  ;;  %v7792_v22 = vld [vmem:[#allocation3 + $0x340] ss:$16 sps:$4 sm:$0xff]   ;;  %5777 = vmatprep.subr.bf16.mxu0 %v7791_v31  ;;  %v7800_v45 = vld [vmem:[#allocation3 + $0x324] ss:$16 sps:$4 sm:$0xff]  }
 0x347   : > { %v3636_v43 = vmax.f32 %v3635_v21, %v2366_v30  ;;  %v3762_v49 = vmax.f32 %v3761_v52, %v2719_v36  ;;  %5818 = vmatprep.subr.bf16.mxu1 %v7794_v41  ;;  %5778 = vmatpush2.bf16.msra.mxu0 %v7789_v47 }
 0x348   : > { %v2368_v55 = vpop.f32.mrf.mxu0  ;;  %v2721_v14 = vpop.f32.mrf.mxu1  ;;  %5779 = vmatprep.subr.bf16.mxu0 %v7797_v6 }
 0x349   : > { %v3574_v16 = vmax.f32 %v3573_v20, %v2368_v55  ;;  %v3700_v34 = vmax.f32 %v3699_v2, %v2721_v14  ;;  %v7795_v20 = vld [vmem:[#allocation3 + $0x120] ss:$16 sps:$4 sm:$0xff]   ;;  %v7803_v55 = vld [vmem:[#allocation3 + $0x104] ss:$16 sps:$4 sm:$0xff]  }
 0x34a   : > { %v2370_v9 = vpop.f32.mrf.mxu0  ;;  %v2723_v28 = vpop.f32.mrf.mxu1  ;;  %5819 = vmatpush2.bf16.msra.mxu1 %v7792_v22  ;;  %v7798_v2 = vld [vmem:[#allocation3 + $0x320] ss:$16 sps:$4 sm:$0xff]   ;;  %v7806_v14 = vld [vmem:[#allocation3 + $0x304] ss:$16 sps:$4 sm:$0xff]  }
 0x34b   : > { %v3637_v4 = vmax.f32 %v3636_v43, %v2370_v9  ;;  %v3763_v60 = vmax.f32 %v3762_v49, %v2723_v28  ;;  %5820 = vmatprep.subr.bf16.mxu1 %v7800_v45  ;;  %5780 = vmatpush2.bf16.msra.mxu0 %v7795_v20 }
 0x34c   : > { %v2374_v35 = vpop.f32.mrf.mxu0  ;;  %v2727_v62 = vpop.f32.mrf.mxu1  ;;  %2999 = vmatmul.mubr.bf16.gmra.mxu0 %v9128_v29  ;;  %3352 = vmatmul.mubr.bf16.gmra.mxu1 %v9128_v29 }
 0x34d   : > { %v3575_v10 = vmax.f32 %v3574_v16, %v2374_v35  ;;  %v3701_v50 = vmax.f32 %v3700_v34, %v2727_v62  ;;  %3008 = vmatprep.mubr.bf16.mxu0 %v10102_v7  ;;  %3361 = vmatprep.mubr.bf16.mxu1 %v10102_v7  ;;  %v7804_v16 = vld [vmem:[#allocation3 + $0x300] ss:$16 sps:$4 sm:$0xff]  }
 0x34e   : > { %v2376_v24 = vpop.f32.mrf.mxu0  ;;  %v2729_v44 = vpop.f32.mrf.mxu1  ;;  %5821 = vmatpush2.bf16.msra.mxu1 %v7798_v2  ;;  %5781 = vmatprep.subr.bf16.mxu0 %v7803_v55 }
 0x34f   : > { %v3638_v3 = vmax.f32 %v3637_v4, %v2376_v24  ;;  %v3764_v15 = vmax.f32 %v3763_v60, %v2729_v44  ;;  %5822 = vmatprep.subr.bf16.mxu1 %v7806_v14  ;;  %5782 = vmatpush2.bf16.msra.mxu0 %v7801_v61 }
 0x350   : > { %v2378_v51 = vpop.f32.mrf.mxu0  ;;  %v2731_v29 = vpop.f32.mrf.mxu1 }
 0x351   : > { %v3576_v42 = vmax.f32 %v3575_v10, %v2378_v51  ;;  %v3702_v63 = vmax.f32 %v3701_v50, %v2731_v29 }
 0x352   : > { %v2380_v21 = vpop.f32.mrf.mxu0  ;;  %v2733_v52 = vpop.f32.mrf.mxu1  ;;  %5823 = vmatpush2.bf16.msra.mxu1 %v7804_v16 }
 0x353   : > { %v3639_v59 = vmax.f32 %v3638_v3, %v2380_v21  ;;  %v3765_v26 = vmax.f32 %v3764_v15, %v2733_v52 }
 0x354   : > { %v2384_v27 = vpop.f32.mrf.mxu0  ;;  %v2737_v56 = vpop.f32.mrf.mxu1  ;;  %3009 = vmatmul.mubr.bf16.gmra.mxu0 %v9136_v37  ;;  %3362 = vmatmul.mubr.bf16.gmra.mxu1 %v9136_v37 }
 0x355   : > { %v3577_v30 = vmax.f32 %v3576_v42, %v2384_v27  ;;  %v3703_v36 = vmax.f32 %v3702_v63, %v2737_v56  ;;  %3018 = vmatprep.mubr.bf16.mxu0 %v10102_v7  ;;  %3371 = vmatprep.mubr.bf16.mxu1 %v10102_v7 }
 0x356   : > { %v2386_v43 = vpop.f32.mrf.mxu0  ;;  %v2739_v49 = vpop.f32.mrf.mxu1 }
 0x357   : > { %v3640_v40 = vmax.f32 %v3639_v59, %v2386_v43  ;;  %v3766_v11 = vmax.f32 %v3765_v26, %v2739_v49 }
 0x358   : > { %v2388_v13 = vpop.f32.mrf.mxu0  ;;  %v2741_v37 = vpop.f32.mrf.mxu1 }
 0x359   : > { %v3578_v34 = vmax.f32 %v3577_v30, %v2388_v13  ;;  %v3704_v9 = vmax.f32 %v3703_v36, %v2741_v37 }
 0x35a   : > { %v2390_v28 = vpop.f32.mrf.mxu0  ;;  %v2743_v4 = vpop.f32.mrf.mxu1 }
 0x35b   : > { %v3641_v60 = vmax.f32 %v3640_v40, %v2390_v28  ;;  %v3767_v54 = vmax.f32 %v3766_v11, %v2743_v4 }
 0x35c   : > { %v2394_v19 = vpop.f32.mrf.mxu0  ;;  %v2747_v35 = vpop.f32.mrf.mxu1  ;;  %3019 = vmatmul.mubr.bf16.gmra.mxu0 %v9153_v53  ;;  %3372 = vmatmul.mubr.bf16.gmra.mxu1 %v9153_v53 }
 0x35d   : > { %v3579_v62 = vmax.f32 %v3578_v34, %v2394_v19  ;;  %v3705_v46 = vmax.f32 %v3704_v9, %v2747_v35  ;;  %3028 = vmatprep.mubr.bf16.mxu0 %v10102_v7  ;;  %3381 = vmatprep.mubr.bf16.mxu1 %v10102_v7 }
 0x35e   : > { %v2396_v25 = vpop.f32.mrf.mxu0  ;;  %v2749_v10 = vpop.f32.mrf.mxu1 }
 0x35f   : > { %v3642_v50 = vmax.f32 %v3641_v60, %v2396_v25  ;;  %v3768_v24 = vmax.f32 %v3767_v54, %v2749_v10 }
 0x360   : > { %v2398_v44 = vpop.f32.mrf.mxu0  ;;  %v2751_v3 = vpop.f32.mrf.mxu1 }
 0x361   : > { %v3580_v15 = vmax.f32 %v3579_v62, %v2398_v44  ;;  %v3706_v31 = vmax.f32 %v3705_v46, %v2751_v3 }
 0x362   : > { %v2400_v41 = vpop.f32.mrf.mxu0  ;;  %v2753_v51 = vpop.f32.mrf.mxu1 }
 0x363   : > { %v3643_v29 = vmax.f32 %v3642_v50, %v2400_v41  ;;  %v3769_v47 = vmax.f32 %v3768_v24, %v2753_v51 }
 0x364   : > { %v2404_v22 = vpop.f32.mrf.mxu0  ;;  %v2757_v53 = vpop.f32.mrf.mxu1  ;;  %3029 = vmatmul.mubr.bf16.gmra.mxu0 %v9161_v57  ;;  %3382 = vmatmul.mubr.bf16.gmra.mxu1 %v9161_v57 }
 0x365   : > { %v3581_v42 = vmax.f32 %v3580_v15, %v2404_v22  ;;  %v3707_v63 = vmax.f32 %v3706_v31, %v2757_v53  ;;  %3038 = vmatprep.mubr.bf16.mxu0 %v10102_v7  ;;  %3391 = vmatprep.mubr.bf16.mxu1 %v10102_v7 }
 0x366   : > { %v2406_v21 = vpop.f32.mrf.mxu0  ;;  %v2759_v52 = vpop.f32.mrf.mxu1 }
 0x367   : > { %v9402_v59 = vmax.f32 %v3643_v29, %v2406_v21  ;;  %v9404_v26 = vmax.f32 %v3769_v47, %v2759_v52 }
 0x368   : > { %v2408_v6 = vpop.f32.mrf.mxu0  ;;  %v2761_v45 = vpop.f32.mrf.mxu1 }
 0x369   : > { %v3582_v27 = vmax.f32 %v3581_v42, %v2408_v6  ;;  %v3708_v56 = vmax.f32 %v3707_v63, %v2761_v45 }
 0x36a   : > { %v9406_v20 = vpop.f32.mrf.mxu0  ;;  %v9408_v2 = vpop.f32.mrf.mxu1 }
 0x36b   : > { %v3645_v57 = vmax.f32 %v9402_v59, %v9406_v20  ;;  %v3771_v30 = vmax.f32 %v9404_v26, %v9408_v2 }
 0x36c   : > { %v2414_v36 = vpop.f32.mrf.mxu0  ;;  %v2767_v43 = vpop.f32.mrf.mxu1  ;;  %3039 = vmatmul.mubr.bf16.gmra.mxu0 %v9178_v0  ;;  %3392 = vmatmul.mubr.bf16.gmra.mxu1 %v9178_v0 }
 0x36d   : > { %v3583_v49 = vmax.f32 %v3582_v27, %v2414_v36  ;;  %v3709_v40 = vmax.f32 %v3708_v56, %v2767_v43  ;;  %3048 = vmatprep.mubr.bf16.mxu0 %v10102_v7  ;;  %3401 = vmatprep.mubr.bf16.mxu1 %v10102_v7 }
 0x36e   : > { %v9418_v11 = vpop.f32.mrf.mxu0  ;;  %v9420_v55 = vpop.f32.mrf.mxu1 }
 0x370   : > { %v2418_v14 = vpop.f32.mrf.mxu0  ;;  %v2771_v13 = vpop.f32.mrf.mxu1 }
 0x371   : > { %v3584_v37 = vmax.f32 %v3583_v49, %v2418_v14  ;;  %v3710_v61 = vmax.f32 %v3709_v40, %v2771_v13 }
 0x372   : > { %v9422_v16 = vpop.f32.mrf.mxu0  ;;  %v9424_v34 = vpop.f32.mrf.mxu1 }
 0x374   : > { %v2424_v9 = vpop.f32.mrf.mxu0  ;;  %v2777_v0 = vpop.f32.mrf.mxu1  ;;  %3049 = vmatmul.mubr.bf16.gmra.mxu0 %v9186_v5  ;;  %3402 = vmatmul.mubr.bf16.gmra.mxu1 %v9186_v5  ;;  %v3772_v5 = vmax.f32 %v3771_v30, %v9420_v55 }
 0x375   : > { %v9428_v28 = vmax.f32 %v3584_v37, %v2424_v9  ;;  %v9430_v4 = vmax.f32 %v3710_v61, %v2777_v0  ;;  %3058 = vmatprep.mubr.bf16.mxu0 %v10102_v7  ;;  %3411 = vmatprep.mubr.bf16.mxu1 %v10102_v7 }
 0x376   : > { %v9434_v60 = vpop.f32.mrf.mxu0  ;;  %v9436_v54 = vpop.f32.mrf.mxu1  ;;  %v3773_v20 = vmax.f32 %v3772_v5, %v9424_v34 }
 0x378   : > { %v9438_v19 = vpop.f32.mrf.mxu0  ;;  %v9440_v35 = vpop.f32.mrf.mxu1 }
 0x37a   : > { %v9446_v46 = vpop.f32.mrf.mxu0  ;;  %v9448_v25 = vpop.f32.mrf.mxu1 }
 0x37c   : > { %v9450_v10 = vpop.f32.mrf.mxu0  ;;  %v9452_v50 = vpop.f32.mrf.mxu1  ;;  %3059 = vmatmul.mubr.bf16.gmra.mxu0 %v9203_v17  ;;  %3412 = vmatmul.mubr.bf16.gmra.mxu1 %v9203_v17 }
 0x37d   : > { %3068 = vmatprep.mubr.bf16.mxu0 %v10102_v7  ;;  %3421 = vmatprep.mubr.bf16.mxu1 %v10102_v7 }
 0x37e   : > { %v9458_v24 = vpop.f32.mrf.mxu0  ;;  %v9460_v44 = vpop.f32.mrf.mxu1 }
 0x380   : > { %v9462_v3 = vpop.f32.mrf.mxu0  ;;  %v9464_v15 = vpop.f32.mrf.mxu1 }
 0x382   : > { %v9466_v31 = vpop.f32.mrf.mxu0  ;;  %v9468_v41 = vpop.f32.mrf.mxu1 }
 0x384   : > { %v9470_v51 = vpop.f32.mrf.mxu0  ;;  %v9472_v29 = vpop.f32.mrf.mxu1  ;;  %3069 = vmatmul.mubr.bf16.gmra.mxu0 %v9211_v32  ;;  %3422 = vmatmul.mubr.bf16.gmra.mxu1 %v9211_v32 }
 0x385   : > { %3078 = vmatprep.mubr.bf16.mxu0 %v10102_v7  ;;  %3431 = vmatprep.mubr.bf16.mxu1 %v10102_v7 }
 0x386   : > { %v9478_v17 = vpop.f32.mrf.mxu0  ;;  %v9480_v47 = vpop.f32.mrf.mxu1 }
 0x388   : > { %v9482_v22 = vpop.f32.mrf.mxu0  ;;  %v9484_v53 = vpop.f32.mrf.mxu1 }
 0x38a   : > { %v9486_v42 = vpop.f32.mrf.mxu0  ;;  %v9488_v63 = vpop.f32.mrf.mxu1 }
 0x38c   : > { %v9490_v21 = vpop.f32.mrf.mxu0  ;;  %v9492_v52 = vpop.f32.mrf.mxu1  ;;  %3079 = vmatmul.mubr.bf16.gmra.mxu0 %v9228_v48  ;;  %3432 = vmatmul.mubr.bf16.gmra.mxu1 %v9228_v48 }
 0x38d   : > { %3088 = vmatprep.mubr.bf16.mxu0 %v10102_v7  ;;  %3441 = vmatprep.mubr.bf16.mxu1 %v10102_v7 }
 0x38e   : > { %v9498_v32 = vpop.f32.mrf.mxu0  ;;  %v9500_v6 = vpop.f32.mrf.mxu1 }
 0x390   : > { %v9502_v45 = vpop.f32.mrf.mxu0  ;;  %v9504_v27 = vpop.f32.mrf.mxu1 }
 0x392   : > { %v9506_v56 = vpop.f32.mrf.mxu0  ;;  %v9508_v36 = vpop.f32.mrf.mxu1 }
 0x394   : > { %v9510_v43 = vpop.f32.mrf.mxu0  ;;  %v9512_v49 = vpop.f32.mrf.mxu1  ;;  %3089 = vmatmul.mubr.bf16.gmra.mxu0 %v9238_v33  ;;  %3442 = vmatmul.mubr.bf16.gmra.mxu1 %v9238_v33  ;;  %v3646_v33 = vmax.f32 %v3645_v57, %v9418_v11 }
 0x395   : > { %3098 = vmatprep.mubr.bf16.mxu0 %v10102_v7  ;;  %3451 = vmatprep.mubr.bf16.mxu1 %v10102_v7 }
 0x396   : > { %v9518_v48 = vpop.f32.mrf.mxu0  ;;  %v9520_v40 = vpop.f32.mrf.mxu1  ;;  %v3647_v62 = vmax.f32 %v3646_v33, %v9422_v16 }
 0x398   : > { %v9522_v14 = vpop.f32.mrf.mxu0  ;;  %v9524_v13 = vpop.f32.mrf.mxu1  ;;  %v3648_v57 = vmax.f32 %v3647_v62, %v9434_v60 }
 0x399   : > { %10134 = vst [vmem:[#allocation23_spill] sm:$0xff] %v9524_v13 }
 0x39a   : > { %v9526_v37 = vpop.f32.mrf.mxu0  ;;  %v9528_v61 = vpop.f32.mrf.mxu1  ;;  %v3649_v8 = vmax.f32 %v3648_v57, %v9446_v46 }
 0x39c   : > { %v2860_v9 = vpop.f32.mrf.mxu0  ;;  %3099 = vmatmul.mubr.bf16.gmra.mxu0 %v9255_v1  ;;  %v3213_v0 = vpop.f32.mrf.mxu1  ;;  %3452 = vmatmul.mubr.bf16.gmra.mxu1 %v9255_v1  ;;  %v3774_v1 = vmax.f32 %v3773_v20, %v9436_v54  ;;  %v3650_v16 = vmax.f32 %v3649_v8, %v9458_v24  ;;  %v10135_v54 = vmov 0  }
 0x39d   : > { %3108 = vmatprep.mubr.bf16.mxu0 %v10102_v7  ;;  %3461 = vmatprep.mubr.bf16.mxu1 %v10102_v7 }
 0x39e   : > { %v2862_v38 = vpop.f32.mrf.mxu0  ;;  %v3215_v59 = vpop.f32.mrf.mxu1  ;;  %v3775_v7 = vmax.f32 %v3774_v1, %v9448_v25 }
 0x3a0   : > { %v2864_v11 = vpop.f32.mrf.mxu0  ;;  %v3217_v23 = vpop.f32.mrf.mxu1  ;;  %v3776_v60 = vmax.f32 %v3775_v7, %v9460_v44 }
 0x3a1   : > { %v3784_v26 = vmax.f32 %v2860_v9, %v2864_v11  ;;  %v3910_v2 = vmax.f32 %v3213_v0, %v3217_v23  ;;  %v3651_v23 = vmax.f32 %v3650_v16, %v9466_v31 }
 0x3a2   : > { %v2866_v30 = vpop.f32.mrf.mxu0  ;;  %v3219_v55 = vpop.f32.mrf.mxu1 }
 0x3a3   : > { %v3847_v33 = vmax.f32 %v2862_v38, %v2866_v30  ;;  %v3973_v39 = vmax.f32 %v3215_v59, %v3219_v55  ;;  %v3777_v38 = vmax.f32 %v3776_v60, %v9468_v41  ;;  %v3652_v9 = vmax.f32 %v3651_v23, %v9478_v17 }
 0x3a4   : > { %v2870_v13 = vpop.f32.mrf.mxu0  ;;  %3109 = vmatmul.mubr.bf16.gmra.mxu0 %v9263_v12  ;;  %v3223_v34 = vpop.f32.mrf.mxu1  ;;  %3462 = vmatmul.mubr.bf16.gmra.mxu1 %v9263_v12  ;;  %v10137_v17 = vmax.f32 %v9430_v4, %v9440_v35 }
 0x3a5   : > { %3118 = vmatprep.mubr.bf16.mxu0 %v10135_v54  ;;  %3471 = vmatprep.mubr.bf16.mxu1 %v10135_v54  ;;  %v3785_v62 = vmax.f32 %v3784_v26, %v2870_v13  ;;  %v3911_v5 = vmax.f32 %v3910_v2, %v3223_v34  ;;  %v3778_v7 = vmax.f32 %v3777_v38, %v9480_v47 }
 0x3a6   : > { %v2872_v46 = vpop.f32.mrf.mxu0  ;;  %v3225_v8 = vpop.f32.mrf.mxu1  ;;  %v3653_v20 = vmax.f32 %v3652_v9, %v9486_v42  ;;  %v3713_v47 = vmax.f32 %v10137_v17, %v9452_v50 }
 0x3a7   : > { %v3848_v25 = vmax.f32 %v3847_v33, %v2872_v46  ;;  %v3974_v24 = vmax.f32 %v3973_v39, %v3225_v8  ;;  %v3779_v13 = vmax.f32 %v3778_v7, %v9488_v63  ;;  %v10136_v39 = vmax.f32 %v9428_v28, %v9438_v19 }
 0x3a8   : > { %v2874_v0 = vpop.f32.mrf.mxu0  ;;  %v3227_v12 = vpop.f32.mrf.mxu1  ;;  %v3654_v26 = vmax.f32 %v3653_v20, %v9498_v32  ;;  %v3714_v4 = vmax.f32 %v3713_v47, %v9464_v15 }
 0x3a9   : > { %v3786_v44 = vmax.f32 %v3785_v62, %v2874_v0  ;;  %v3912_v59 = vmax.f32 %v3911_v5, %v3227_v12  ;;  %v3587_v41 = vmax.f32 %v10136_v39, %v9450_v10  ;;  %v3780_v63 = vmax.f32 %v3779_v13, %v9500_v6  ;;  %v10138_v13 = vld [vmem:[#allocation23_spill] sm:$0xff] }
 0x3aa   : > { %v2876_v57 = vpop.f32.mrf.mxu0  ;;  %v3229_v31 = vpop.f32.mrf.mxu1  ;;  %v3655_v10 = vmax.f32 %v3654_v26, %v9506_v56  ;;  %v3715_v16 = vmax.f32 %v3714_v4, %v9472_v29  ;;  %v10139_v26 = vld [vmem:[#allocation19_spill] sm:$0xff] }
 0x3ab   : > { %v3849_v11 = vmax.f32 %v3848_v25, %v2876_v57  ;;  %v3975_v1 = vmax.f32 %v3974_v24, %v3229_v31  ;;  %v3588_v28 = vmax.f32 %v3587_v41, %v9462_v3  ;;  %v3781_v50 = vmax.f32 %v3780_v63, %v9508_v36 }
 0x3ac   : > { %v2880_v2 = vpop.f32.mrf.mxu0  ;;  %3119 = vmatmul.mubr.bf16.gmra.mxu0 %v9276_v58  ;;  %v3233_v42 = vpop.f32.mrf.mxu1  ;;  %3472 = vmatmul.mubr.bf16.gmra.mxu1 %v9276_v58  ;;  %v3656_v60 = vmax.f32 %v3655_v10, %v9518_v48  ;;  %v3716_v56 = vmax.f32 %v3715_v16, %v9484_v53 }
 0x3ad   : > { %v3787_v30 = vmax.f32 %v3786_v44, %v2880_v2  ;;  %v3913_v55 = vmax.f32 %v3912_v59, %v3233_v42  ;;  %3128 = vmatprep.mubr.bf16.mxu0 %v10135_v54  ;;  %3481 = vmatprep.mubr.bf16.mxu1 %v10135_v54  ;;  %v3589_v6 = vmax.f32 %v3588_v28, %v9470_v51 }
 0x3ae   : > { %v2882_v19 = vpop.f32.mrf.mxu0  ;;  %v3235_v35 = vpop.f32.mrf.mxu1  ;;  %v3782_v3 = vmax.f32 %v3781_v50, %v9520_v40  ;;  %v3657_v46 = vmax.f32 %v3656_v60, %v9526_v37  ;;  %v3717_v48 = vmax.f32 %v3716_v56, %v9492_v52 }
 0x3af   : > { %v3850_v32 = vmax.f32 %v3849_v11, %v2882_v19  ;;  %v3976_v58 = vmax.f32 %v3975_v1, %v3235_v35  ;;  %v3590_v62 = vmax.f32 %v3589_v6, %v9482_v22  ;;  %v4137_v35 = vlaneseq }
 0x3b0   : > { %v2884_v33 = vpop.f32.mrf.mxu0  ;;  %v3237_v34 = vpop.f32.mrf.mxu1  ;;  %v3783_v51 = vmax.f32 %v3782_v3, %v9528_v61  ;;  %v3718_v61 = vmax.f32 %v3717_v48, %v9504_v27  ;;  %v4093_v9 = vrot.slane %v3657_v46, 4 }
 0x3b1   : > { %v3788_v23 = vmax.f32 %v3787_v30, %v2884_v33  ;;  %v3914_v15 = vmax.f32 %v3913_v55, %v3237_v34  ;;  %v3591_v38 = vmax.f32 %v3590_v62, %v9490_v21  ;;  %v9602_v62 = vshrl.u32 %v4137_v35, 7 }
 0x3b2   : > { %v2886_v5 = vpop.f32.mrf.mxu0  ;;  %v3239_v36 = vpop.f32.mrf.mxu1  ;;  %v4105_v52 = vrot.slane %v3783_v51, 4  ;;  %v4094_v1 = vmax.f32 %v3657_v46, %v4093_v9 }
 0x3b3   : > { %v3851_v8 = vmax.f32 %v3850_v32, %v2886_v5  ;;  %v3977_v29 = vmax.f32 %v3976_v58, %v3239_v36  ;;  %v3592_v37 = vmax.f32 %v3591_v38, %v9502_v45  ;;  %10140 = vst [vmem:[#allocation23_spill] sm:$0xff] %v9602_v62  ;;  %v10141_v5 = vld [vmem:[#allocation20_spill] sm:$0xff] }
 0x3b4   : > { %v2890_v25 = vpop.f32.mrf.mxu0  ;;  %3129 = vmatmul.mubr.bf16.gmra.mxu0 %v9282_v18  ;;  %v3243_v40 = vpop.f32.mrf.mxu1  ;;  %3482 = vmatmul.mubr.bf16.gmra.mxu1 %v9282_v18  ;;  %v3719_v18 = vmax.f32 %v3718_v61, %v9512_v49  ;;  %v4106_v39 = vmax.f32 %v3783_v51, %v4105_v52  ;;  %v4095_v55 = vrot.slane %v4094_v1, 2 }
 0x3b5   : > { %v3789_v22 = vmax.f32 %v3788_v23, %v2890_v25  ;;  %v3915_v53 = vmax.f32 %v3914_v15, %v3243_v40  ;;  %3138 = vmatprep.mubr.bf16.mxu0 %v10135_v54  ;;  %3491 = vmatprep.mubr.bf16.mxu1 %v10135_v54  ;;  %v3593_v7 = vmax.f32 %v3592_v37, %v9510_v43  ;;  %v9609_v25 = vsub.s32 1, %v9602_v62 }
 0x3b6   : > { %v2892_v24 = vpop.f32.mrf.mxu0  ;;  %v3245_v21 = vpop.f32.mrf.mxu1  ;;  %v3720_v45 = vmax.f32 %v3719_v18, %v10138_v13  ;;  %v4107_v28 = vrot.slane %v4106_v39, 2  ;;  %v4096_v60 = vmax.f32 %v4094_v1, %v4095_v55  ;;  %v10106_v40 = vsub.s32 3, %v9602_v62 }
 0x3b7   : > { %v3852_v0 = vmax.f32 %v3851_v8, %v2892_v24  ;;  %v3978_v12 = vmax.f32 %v3977_v29, %v3245_v21  ;;  %v3594_v31 = vmax.f32 %v3593_v7, %v9522_v14  ;;  %10142 = vst [vmem:[#allocation19_spill] sm:$0xff] %v9609_v25 }
 0x3b8   : > { %v2894_v44 = vpop.f32.mrf.mxu0  ;;  %v3247_v59 = vpop.f32.mrf.mxu1  ;;  %v4099_v42 = vrot.slane %v3720_v45, 4  ;;  %v4108_v3 = vmax.f32 %v4106_v39, %v4107_v28 }
 0x3b9   : > { %v3790_v20 = vmax.f32 %v3789_v22, %v2894_v44  ;;  %v3916_v57 = vmax.f32 %v3915_v53, %v3247_v59  ;;  %v4087_v14 = vrot.slane %v3594_v31, 4  ;;  %v4097_v22 = vrot.slane %v4096_v60, 1 }
 0x3ba   : > { %v2896_v11 = vpop.f32.mrf.mxu0  ;;  %v3249_v27 = vpop.f32.mrf.mxu1  ;;  %v4100_v16 = vmax.f32 %v3720_v45, %v4099_v42  ;;  %v4109_v53 = vrot.slane %v4108_v3, 1 }
 0x3bb   : > { %v3853_v41 = vmax.f32 %v3852_v0, %v2896_v11  ;;  %v3979_v17 = vmax.f32 %v3978_v12, %v3249_v27  ;;  %v4088_v6 = vmax.f32 %v3594_v31, %v4087_v14  ;;  %v4135_v12 = vld [vmem:[%s10080_s6] sm:$0xff]  ;;  %v4098_v59 = vmax.f32 %v4096_v60, %v4097_v22  ;;  %v10143_v11 = vld [vmem:[#allocation21_spill] sm:$0xff] }
 0x3bc   : > { %v2900_v47 = vpop.f32.mrf.mxu0  ;;  %3139 = vmatmul.mubr.bf16.gmra.mxu0 %v10139_v26  ;;  %v3253_v43 = vpop.f32.mrf.mxu1  ;;  %3492 = vmatmul.mubr.bf16.gmra.mxu1 %v10139_v26  ;;  %v4101_v29 = vrot.slane %v4100_v16, 2  ;;  %v4152_v31 = vrot.slane %v4135_v12, %v10106_v40  ;;  %v10147_v60 = vld [vmem:[#allocation22_spill] sm:$0xff] }
 0x3bd   : > { %v3791_v49 = vmax.f32 %v3790_v20, %v2900_v47  ;;  %v3917_v2 = vmax.f32 %v3916_v57, %v3253_v43  ;;  %3148 = vmatprep.mubr.bf16.mxu0 %v10135_v54  ;;  %3501 = vmatprep.mubr.bf16.mxu1 %v10135_v54  ;;  %v4089_v8 = vrot.slane %v4088_v6, 2  ;;  %v4144_v20 = vrot.slane %v4135_v12, %v9609_v25 }
 0x3be   : > { %v2902_v63 = vpop.f32.mrf.mxu0  ;;  %v3255_v30 = vpop.f32.mrf.mxu1  ;;  %v4102_v7 = vmax.f32 %v4100_v16, %v4101_v29  ;;  %v4110_v57 = vmax.f32 %v4108_v3, %v4109_v53  ;;  %v9623_v47 = vsub.s32 0, %v9602_v62  ;;  %v10107_v43 = vsub.s32 2, %v9602_v62 }
 0x3bf   : > { %v3854_v4 = vmax.f32 %v3853_v41, %v2902_v63  ;;  %v3980_v19 = vmax.f32 %v3979_v17, %v3255_v30  ;;  %v4090_v0 = vmax.f32 %v4088_v6, %v4089_v8  ;;  %v4178_v63 = vadd.f32 %v4144_v20, %v4098_v59 }
 0x3c0   : > { %v2904_v10 = vpop.f32.mrf.mxu0  ;;  %v3257_v50 = vpop.f32.mrf.mxu1  ;;  %10144 = vst [vmem:[#allocation20_spill] sm:$0xff] %v9623_v47  ;;  %v4103_v26 = vrot.slane %v4102_v7, 1  ;;  %v4180_v30 = vadd.f32 %v4152_v31, %v4110_v57 }
 0x3c1   : > { %v3792_v32 = vmax.f32 %v3791_v49, %v2904_v10  ;;  %v3918_v58 = vmax.f32 %v3917_v2, %v3257_v50  ;;  %v4091_v17 = vrot.slane %v4090_v0, 1  ;;  %v4148_v50 = vrot.slane %v4135_v12, %v10107_v43 }
 0x3c2   : > { %v2906_v33 = vpop.f32.mrf.mxu0  ;;  %v3259_v34 = vpop.f32.mrf.mxu1  ;;  %v4104_v10 = vmax.f32 %v4102_v7, %v4103_v26  ;;  %v9629_v6 = vpack.c.bf16 %v4178_v63, %v4178_v63  ;;  %v9631_v16 = vpack.c.bf16 %v4180_v30, %v4180_v30 }
 0x3c3   : > { %v3855_v23 = vmax.f32 %v3854_v4, %v2906_v33  ;;  %v3981_v15 = vmax.f32 %v3980_v19, %v3259_v34  ;;  %v4092_v35 = vmax.f32 %v4090_v0, %v4091_v17 }
 0x3c4   : > { %v2910_v56 = vpop.f32.mrf.mxu0  ;;  %3149 = vmatmul.mubr.bf16.gmra.mxu0 %v10141_v5  ;;  %v3263_v36 = vpop.f32.mrf.mxu1  ;;  %3502 = vmatmul.mubr.bf16.gmra.mxu1 %v10141_v5  ;;  %10145 = vst [vmem:[#allocation21_spill] sm:$0xff] %v9629_v6  ;;  %10146 = vst [vmem:[#allocation24_spill] sm:$0xff] %v9631_v16 }
 0x3c5   : > { %v3793_v46 = vmax.f32 %v3792_v32, %v2910_v56  ;;  %v3919_v51 = vmax.f32 %v3918_v58, %v3263_v36  ;;  %3158 = vmatprep.mubr.bf16.mxu0 %v10135_v54  ;;  %3511 = vmatprep.mubr.bf16.mxu1 %v10135_v54  ;;  %v4179_v36 = vadd.f32 %v4148_v50, %v4104_v10 }
 0x3c6   : > { %v2912_v38 = vpop.f32.mrf.mxu0  ;;  %v3265_v48 = vpop.f32.mrf.mxu1 }
 0x3c7   : > { %v3856_v37 = vmax.f32 %v3855_v23, %v2912_v38  ;;  %v3982_v61 = vmax.f32 %v3981_v15, %v3265_v48 }
 0x3c8   : > { %v2914_v24 = vpop.f32.mrf.mxu0  ;;  %v3267_v21 = vpop.f32.mrf.mxu1 }
 0x3c9   : > { %v3794_v9 = vmax.f32 %v3793_v46, %v2914_v24  ;;  %v3920_v52 = vmax.f32 %v3919_v51, %v3267_v21 }
 0x3ca   : > { %v2916_v18 = vpop.f32.mrf.mxu0  ;;  %v3269_v44 = vpop.f32.mrf.mxu1 }
 0x3cb   : > { %v3857_v13 = vmax.f32 %v3856_v37, %v2916_v18  ;;  %v3983_v1 = vmax.f32 %v3982_v61, %v3269_v44  ;;  %v9639_v61 = vpack.c.bf16 %v4179_v36, %v4179_v36 }
 0x3cc   : > { %v2920_v45 = vpop.f32.mrf.mxu0  ;;  %3159 = vmatmul.mubr.bf16.gmra.mxu0 %v10143_v11  ;;  %v3273_v27 = vpop.f32.mrf.mxu1  ;;  %3512 = vmatmul.mubr.bf16.gmra.mxu1 %v10143_v11 }
 0x3cd   : > { %v3795_v39 = vmax.f32 %v3794_v9, %v2920_v45  ;;  %v3921_v41 = vmax.f32 %v3920_v52, %v3273_v27  ;;  %3168 = vmatprep.mubr.bf16.mxu0 %v10135_v54  ;;  %3521 = vmatprep.mubr.bf16.mxu1 %v10135_v54  ;;  %v4140_v54 = vrot.slane %v4135_v12, %v9623_v47 }
 0x3ce   : > { %v2922_v49 = vpop.f32.mrf.mxu0  ;;  %v3275_v2 = vpop.f32.mrf.mxu1  ;;  %10149 = vst [vmem:[#allocation25_spill] sm:$0xff] %v9639_v61 }
 0x3cf   : > { %v3858_v14 = vmax.f32 %v3857_v13, %v2922_v49  ;;  %v3984_v42 = vmax.f32 %v3983_v1, %v3275_v2  ;;  %v4177_v5 = vadd.f32 %v4140_v54, %v4092_v35 }
 0x3d0   : > { %v2924_v55 = vpop.f32.mrf.mxu0  ;;  %v3277_v28 = vpop.f32.mrf.mxu1 }
 0x3d1   : > { %v3796_v4 = vmax.f32 %v3795_v39, %v2924_v55  ;;  %v3922_v19 = vmax.f32 %v3921_v41, %v3277_v28  ;;  %v9637_v37 = vpack.c.bf16 %v4177_v5, %v4177_v5 }
 0x3d2   : > { %v2926_v32 = vpop.f32.mrf.mxu0  ;;  %v3279_v58 = vpop.f32.mrf.mxu1 }
 0x3d3   : > { %v3859_v33 = vmax.f32 %v3858_v14, %v2926_v32  ;;  %v3985_v23 = vmax.f32 %v3984_v42, %v3279_v58  ;;  %10148 = vst [vmem:[#allocation22_spill] sm:$0xff] %v9637_v37  ;;  %v7809_v58 = vld [vmem:[#allocation3 + $0x4e4] ss:$16 sps:$4 sm:$0xff]  }
 0x3d4   : > { %v2930_v34 = vpop.f32.mrf.mxu0  ;;  %3169 = vmatmul.mubr.bf16.gmra.mxu0 %v10147_v60  ;;  %v3283_v3 = vpop.f32.mrf.mxu1  ;;  %3522 = vmatmul.mubr.bf16.gmra.mxu1 %v10147_v60 }
 0x3d5   : > { %v3797_v15 = vmax.f32 %v3796_v4, %v2930_v34  ;;  %v3923_v56 = vmax.f32 %v3922_v19, %v3283_v3  ;;  %5783 = vmatprep.mubr.bf16.mxu0 %v9629_v6  ;;  %5824 = vmatprep.mubr.bf16.mxu1 %v9631_v16 }
 0x3d6   : > { %v2932_v46 = vpop.f32.mrf.mxu0  ;;  %v3285_v51 = vpop.f32.mrf.mxu1  ;;  %5833 = vmatprep.subr.bf16.mxu0 %v7809_v58 }
 0x3d7   : > { %v3860_v8 = vmax.f32 %v3859_v33, %v2932_v46  ;;  %v3986_v29 = vmax.f32 %v3985_v23, %v3285_v51  ;;  %v7812_v33 = vld [vmem:[#allocation3 + $0x6e4] ss:$16 sps:$4 sm:$0xff]   ;;  %v7807_v23 = vld [vmem:[#allocation3 + $0x4e0] ss:$16 sps:$4 sm:$0xff]  }
 0x3d8   : > { %v2934_v38 = vpop.f32.mrf.mxu0  ;;  %v3287_v48 = vpop.f32.mrf.mxu1  ;;  %5874 = vmatprep.subr.bf16.mxu1 %v7812_v33 }
 0x3d9   : > { %v3798_v22 = vmax.f32 %v3797_v15, %v2934_v38  ;;  %v3924_v53 = vmax.f32 %v3923_v56, %v3287_v48  ;;  %v7810_v15 = vld [vmem:[#allocation3 + $0x6e0] ss:$16 sps:$4 sm:$0xff]   ;;  %v7818_v38 = vld [vmem:[#allocation3 + $0x6c4] ss:$16 sps:$4 sm:$0xff]  }
 0x3da   : > { %v2936_v24 = vpop.f32.mrf.mxu0  ;;  %v3289_v21 = vpop.f32.mrf.mxu1 }
 0x3db   : > { %v3861_v0 = vmax.f32 %v3860_v8, %v2936_v24  ;;  %v3987_v12 = vmax.f32 %v3986_v29, %v3289_v21  ;;  %v7815_v29 = vld [vmem:[#allocation3 + $0x4c4] ss:$16 sps:$4 sm:$0xff]   ;;  %v7816_v24 = vld [vmem:[#allocation3 + $0x6c0] ss:$16 sps:$4 sm:$0xff]  }
 0x3dc   : > { %v2940_v9 = vpop.f32.mrf.mxu0  ;;  %v3293_v52 = vpop.f32.mrf.mxu1  ;;  %5784 = vmatmul.mubr.bf16.vlgmr.msra.gmra.mxu0 %v9637_v37  ;;  %5825 = vmatmul.mubr.bf16.vlgmr.msra.gmra.mxu1 %v9639_v61 }
 0x3dd   : > { %v3799_v7 = vmax.f32 %v3798_v22, %v2940_v9  ;;  %v3925_v18 = vmax.f32 %v3924_v53, %v3293_v52  ;;  %5834 = vmatpush1.bf16.msra.mxu0 %v7807_v23  ;;  %5875 = vmatpush1.bf16.msra.mxu1 %v7810_v15  ;;  %v7813_v53 = vld [vmem:[#allocation3 + $0x4c0] ss:$16 sps:$4 sm:$0xff]   ;;  %v7839_v15 = vld [vmem:[#allocation3 + $0x444] ss:$16 sps:$4 sm:$0xff]  }
 0x3de   : > { %v2942_v44 = vpop.f32.mrf.mxu0  ;;  %v3295_v59 = vpop.f32.mrf.mxu1  ;;  %5835 = vmatprep.subr.bf16.mxu0 %v7815_v29  ;;  %5876 = vmatprep.subr.bf16.mxu1 %v7818_v38 }
 0x3df   : > { %v3862_v20 = vmax.f32 %v3861_v0, %v2942_v44  ;;  %v3988_v57 = vmax.f32 %v3987_v12, %v3295_v59  ;;  %v7824_v44 = vld [vmem:[#allocation3 + $0x6a4] ss:$16 sps:$4 sm:$0xff]  }
 0x3e0   : > { %v2944_v31 = vpop.f32.mrf.mxu0  ;;  %v3297_v13 = vpop.f32.mrf.mxu1 }
 0x3e1   : > { %v3800_v45 = vmax.f32 %v3799_v7, %v2944_v31  ;;  %v3926_v11 = vmax.f32 %v3925_v18, %v3297_v13  ;;  %5836 = vmatpush1.bf16.msra.mxu0 %v7813_v53  ;;  %5877 = vmatpush1.bf16.msra.mxu1 %v7816_v24  ;;  %v7821_v18 = vld [vmem:[#allocation3 + $0x4a4] ss:$16 sps:$4 sm:$0xff]   ;;  %v7822_v31 = vld [vmem:[#allocation3 + $0x6a0] ss:$16 sps:$4 sm:$0xff]  }
 0x3e2   : > { %v2946_v27 = vpop.f32.mrf.mxu0  ;;  %v3299_v1 = vpop.f32.mrf.mxu1  ;;  %5837 = vmatprep.subr.bf16.mxu0 %v7821_v18  ;;  %5878 = vmatprep.subr.bf16.mxu1 %v7824_v44  ;;  %v7845_v24 = vld [vmem:[#allocation3 + $0x424] ss:$16 sps:$4 sm:$0xff]  }
 0x3e3   : > { %v3863_v17 = vmax.f32 %v3862_v20, %v2946_v27  ;;  %v3989_v26 = vmax.f32 %v3988_v57, %v3299_v1  ;;  %v7819_v57 = vld [vmem:[#allocation3 + $0x4a0] ss:$16 sps:$4 sm:$0xff]  }
 0x3e4   : > { %v2950_v39 = vpop.f32.mrf.mxu0  ;;  %v3303_v41 = vpop.f32.mrf.mxu1 }
 0x3e5   : > { %v3801_v49 = vmax.f32 %v3800_v45, %v2950_v39  ;;  %v3927_v2 = vmax.f32 %v3926_v11, %v3303_v41  ;;  %5838 = vmatpush1.bf16.msra.mxu0 %v7819_v57  ;;  %5879 = vmatpush1.bf16.msra.mxu1 %v7822_v31  ;;  %v7827_v41 = vld [vmem:[#allocation3 + $0x484] ss:$16 sps:$4 sm:$0xff]  }
 0x3e6   : > { %v2952_v14 = vpop.f32.mrf.mxu0  ;;  %v3305_v42 = vpop.f32.mrf.mxu1  ;;  %5839 = vmatprep.subr.bf16.mxu0 %v7827_v41  ;;  %v7851_v31 = vld [vmem:[#allocation3 + $0x404] ss:$16 sps:$4 sm:$0xff]  }
 0x3e7   : > { %v3864_v63 = vmax.f32 %v3863_v17, %v2952_v14  ;;  %v3990_v30 = vmax.f32 %v3989_v26, %v3305_v42  ;;  %v7830_v17 = vld [vmem:[#allocation3 + $0x684] ss:$16 sps:$4 sm:$0xff]   ;;  %v7828_v14 = vld [vmem:[#allocation3 + $0x680] ss:$16 sps:$4 sm:$0xff]  }
 0x3e8   : > { %v2954_v55 = vpop.f32.mrf.mxu0  ;;  %v3307_v28 = vpop.f32.mrf.mxu1  ;;  %5880 = vmatprep.subr.bf16.mxu1 %v7830_v17 }
 0x3e9   : > { %v3802_v4 = vmax.f32 %v3801_v49, %v2954_v55  ;;  %v3928_v19 = vmax.f32 %v3927_v2, %v3307_v28  ;;  %v7825_v2 = vld [vmem:[#allocation3 + $0x480] ss:$16 sps:$4 sm:$0xff]   ;;  %5881 = vmatpush1.bf16.msra.mxu1 %v7828_v14  ;;  %v7857_v14 = vld [vmem:[#allocation3 + $0x5e4] ss:$16 sps:$4 sm:$0xff]  }
 0x3ea   : > { %v2956_v35 = vpop.f32.mrf.mxu0  ;;  %v3309_v54 = vpop.f32.mrf.mxu1  ;;  %5840 = vmatpush1.bf16.msra.mxu0 %v7825_v2 }
 0x3eb   : > { %v3991_v10 = vmax.f32 %v3990_v30, %v3309_v54  ;;  %v3865_v34 = vmax.f32 %v3864_v63, %v2956_v35  ;;  %v7836_v35 = vld [vmem:[#allocation3 + $0x664] ss:$16 sps:$4 sm:$0xff]  }
 0x3ec   : > { %v2960_v50 = vpop.f32.mrf.mxu0  ;;  %v3313_v32 = vpop.f32.mrf.mxu1  ;;  %5882 = vmatprep.subr.bf16.mxu1 %v7836_v35 }
 0x3ed   : > { %v3803_v60 = vmax.f32 %v3802_v4, %v2960_v50  ;;  %v3929_v3 = vmax.f32 %v3928_v19, %v3313_v32  ;;  %v7833_v19 = vld [vmem:[#allocation3 + $0x464] ss:$16 sps:$4 sm:$0xff]   ;;  %v7831_v50 = vld [vmem:[#allocation3 + $0x460] ss:$16 sps:$4 sm:$0xff]  }
 0x3ee   : > { %v2962_v56 = vpop.f32.mrf.mxu0  ;;  %v3315_v5 = vpop.f32.mrf.mxu1  ;;  %v7834_v32 = vld [vmem:[#allocation3 + $0x660] ss:$16 sps:$4 sm:$0xff]   ;;  %5841 = vmatprep.subr.bf16.mxu0 %v7833_v19 }
 0x3ef   : > { %v3866_v36 = vmax.f32 %v3865_v34, %v2962_v56  ;;  %v3992_v46 = vmax.f32 %v3991_v10, %v3315_v5  ;;  %5842 = vmatpush1.bf16.msra.mxu0 %v7831_v50  ;;  %5883 = vmatpush1.bf16.msra.mxu1 %v7834_v32  ;;  %v7842_v56 = vld [vmem:[#allocation3 + $0x644] ss:$16 sps:$4 sm:$0xff]  }
 0x3f0   : > { %v2964_v51 = vpop.f32.mrf.mxu0  ;;  %v3317_v8 = vpop.f32.mrf.mxu1  ;;  %5843 = vmatprep.subr.bf16.mxu0 %v7839_v15  ;;  %5884 = vmatprep.subr.bf16.mxu1 %v7842_v56  ;;  %v7863_v32 = vld [vmem:[#allocation3 + $0x5c4] ss:$16 sps:$4 sm:$0xff]  }
 0x3f1   : > { %v3804_v48 = vmax.f32 %v3803_v60, %v2964_v51  ;;  %v3930_v22 = vmax.f32 %v3929_v3, %v3317_v8  ;;  %v7840_v51 = vld [vmem:[#allocation3 + $0x640] ss:$16 sps:$4 sm:$0xff]  }
 0x3f2   : > { %v2966_v21 = vpop.f32.mrf.mxu0  ;;  %v3319_v9 = vpop.f32.mrf.mxu1 }
 0x3f3   : > { %v3867_v52 = vmax.f32 %v3866_v36, %v2966_v21  ;;  %v3993_v0 = vmax.f32 %v3992_v46, %v3319_v9  ;;  %v7837_v46 = vld [vmem:[#allocation3 + $0x440] ss:$16 sps:$4 sm:$0xff]   ;;  %5885 = vmatpush1.bf16.msra.mxu1 %v7840_v51  ;;  %v7848_v21 = vld [vmem:[#allocation3 + $0x624] ss:$16 sps:$4 sm:$0xff]  }
 0x3f4   : > { %v2970_v12 = vpop.f32.mrf.mxu0  ;;  %v3323_v7 = vpop.f32.mrf.mxu1  ;;  %5844 = vmatpush1.bf16.msra.mxu0 %v7837_v46  ;;  %5886 = vmatprep.subr.bf16.mxu1 %v7848_v21  ;;  %v7869_v51 = vld [vmem:[#allocation3 + $0x5a4] ss:$16 sps:$4 sm:$0xff]  }
 0x3f5   : > { %v3805_v59 = vmax.f32 %v3804_v48, %v2970_v12  ;;  %v3931_v20 = vmax.f32 %v3930_v22, %v3323_v7  ;;  %v7846_v12 = vld [vmem:[#allocation3 + $0x620] ss:$16 sps:$4 sm:$0xff]   ;;  %5845 = vmatprep.subr.bf16.mxu0 %v7845_v24 }
 0x3f6   : > { %v2972_v13 = vpop.f32.mrf.mxu0  ;;  %v3325_v45 = vpop.f32.mrf.mxu1 }
 0x3f7   : > { %v3868_v11 = vmax.f32 %v3867_v52, %v2972_v13  ;;  %v3994_v27 = vmax.f32 %v3993_v0, %v3325_v45  ;;  %v7843_v0 = vld [vmem:[#allocation3 + $0x420] ss:$16 sps:$4 sm:$0xff]   ;;  %5887 = vmatpush1.bf16.msra.mxu1 %v7846_v12  ;;  %v7854_v13 = vld [vmem:[#allocation3 + $0x604] ss:$16 sps:$4 sm:$0xff]  }
 0x3f8   : > { %v2974_v1 = vpop.f32.mrf.mxu0  ;;  %v3327_v39 = vpop.f32.mrf.mxu1  ;;  %5846 = vmatpush1.bf16.msra.mxu0 %v7843_v0  ;;  %5888 = vmatprep.subr.bf16.mxu1 %v7854_v13  ;;  %v7875_v12 = vld [vmem:[#allocation3 + $0x584] ss:$16 sps:$4 sm:$0xff]  }
 0x3f9   : > { %v3806_v26 = vmax.f32 %v3805_v59, %v2974_v1  ;;  %v3932_v49 = vmax.f32 %v3931_v20, %v3327_v39  ;;  %v7852_v1 = vld [vmem:[#allocation3 + $0x600] ss:$16 sps:$4 sm:$0xff]   ;;  %5847 = vmatprep.subr.bf16.mxu0 %v7851_v31 }
 0x3fa   : > { %v2976_v42 = vpop.f32.mrf.mxu0  ;;  %v3329_v63 = vpop.f32.mrf.mxu1 }
 0x3fb   : > { %v3869_v30 = vmax.f32 %v3868_v11, %v2976_v42  ;;  %v3995_v55 = vmax.f32 %v3994_v27, %v3329_v63  ;;  %v7849_v27 = vld [vmem:[#allocation3 + $0x400] ss:$16 sps:$4 sm:$0xff]   ;;  %5889 = vmatpush1.bf16.msra.mxu1 %v7852_v1  ;;  %v7860_v42 = vld [vmem:[#allocation3 + $0x7e4] ss:$16 sps:$4 sm:$0xff]  }
 0x3fc   : > { %v2980_v28 = vpop.f32.mrf.mxu0  ;;  %v3333_v4 = vpop.f32.mrf.mxu1  ;;  %5848 = vmatpush1.bf16.msra.mxu0 %v7849_v27  ;;  %5890 = vmatprep.subr.bf16.mxu1 %v7860_v42  ;;  %v7881_v1 = vld [vmem:[#allocation3 + $0x564] ss:$16 sps:$4 sm:$0xff]  }
 0x3fd   : > { %v3807_v54 = vmax.f32 %v3806_v26, %v2980_v28  ;;  %v3933_v10 = vmax.f32 %v3932_v49, %v3333_v4  ;;  %v7858_v28 = vld [vmem:[#allocation3 + $0x7e0] ss:$16 sps:$4 sm:$0xff]   ;;  %5849 = vmatprep.subr.bf16.mxu0 %v7857_v14 }
 0x3fe   : > { %v2982_v58 = vpop.f32.mrf.mxu0  ;;  %v3335_v33 = vpop.f32.mrf.mxu1 }
 0x3ff   : > { %v3870_v34 = vmax.f32 %v3869_v30, %v2982_v58  ;;  %v3996_v60 = vmax.f32 %v3995_v55, %v3335_v33  ;;  %v7855_v55 = vld [vmem:[#allocation3 + $0x5e0] ss:$16 sps:$4 sm:$0xff]   ;;  %5891 = vmatpush2.bf16.msra.mxu1 %v7858_v28  ;;  %v7866_v58 = vld [vmem:[#allocation3 + $0x7c4] ss:$16 sps:$4 sm:$0xff]  }
 0x400   : > { %v2984_v3 = vpop.f32.mrf.mxu0  ;;  %v3337_v23 = vpop.f32.mrf.mxu1  ;;  %5850 = vmatpush2.bf16.msra.mxu0 %v7855_v55  ;;  %5892 = vmatprep.subr.bf16.mxu1 %v7866_v58  ;;  %v7890_v55 = vld [vmem:[#allocation3 + $0x744] ss:$16 sps:$4 sm:$0xff]   ;;  %v7885_v28 = vld [vmem:[#allocation3 + $0x540] ss:$16 sps:$4 sm:$0xff]  }
 0x401   : > { %v3808_v5 = vmax.f32 %v3807_v54, %v2984_v3  ;;  %v3934_v36 = vmax.f32 %v3933_v10, %v3337_v23  ;;  %v7864_v3 = vld [vmem:[#allocation3 + $0x7c0] ss:$16 sps:$4 sm:$0xff]   ;;  %5851 = vmatprep.subr.bf16.mxu0 %v7863_v32  ;;  %v7896_v32 = vld [vmem:[#allocation3 + $0x724] ss:$16 sps:$4 sm:$0xff]  }
 0x402   : > { %v2986_v8 = vpop.f32.mrf.mxu0  ;;  %v3339_v29 = vpop.f32.mrf.mxu1  ;;  %v7891_v58 = vld [vmem:[#allocation3 + $0x520] ss:$16 sps:$4 sm:$0xff]  }
 0x403   : > { %v3871_v38 = vmax.f32 %v3870_v34, %v2986_v8  ;;  %v3997_v48 = vmax.f32 %v3996_v60, %v3339_v29  ;;  %v7861_v60 = vld [vmem:[#allocation3 + $0x5c0] ss:$16 sps:$4 sm:$0xff]   ;;  %5893 = vmatpush2.bf16.msra.mxu1 %v7864_v3  ;;  %v7872_v8 = vld [vmem:[#allocation3 + $0x7a4] ss:$16 sps:$4 sm:$0xff]  }
 0x404   : > { %v2990_v22 = vpop.f32.mrf.mxu0  ;;  %v3343_v53 = vpop.f32.mrf.mxu1  ;;  %5852 = vmatpush2.bf16.msra.mxu0 %v7861_v60  ;;  %5894 = vmatprep.subr.bf16.mxu1 %v7872_v8 }
 0x405   : > { %v3809_v9 = vmax.f32 %v3808_v5, %v2990_v22  ;;  %v3935_v52 = vmax.f32 %v3934_v36, %v3343_v53  ;;  %v7870_v22 = vld [vmem:[#allocation3 + $0x7a0] ss:$16 sps:$4 sm:$0xff]   ;;  %5853 = vmatprep.subr.bf16.mxu0 %v7869_v51 }
 0x406   : > { %v2992_v7 = vpop.f32.mrf.mxu0  ;;  %v3345_v18 = vpop.f32.mrf.mxu1 }
 0x407   : > { %v3872_v44 = vmax.f32 %v3871_v38, %v2992_v7  ;;  %v3998_v59 = vmax.f32 %v3997_v48, %v3345_v18  ;;  %v7867_v48 = vld [vmem:[#allocation3 + $0x5a0] ss:$16 sps:$4 sm:$0xff]   ;;  %5895 = vmatpush2.bf16.msra.mxu1 %v7870_v22  ;;  %v7878_v7 = vld [vmem:[#allocation3 + $0x784] ss:$16 sps:$4 sm:$0xff]  }
 0x408   : > { %v2994_v20 = vpop.f32.mrf.mxu0  ;;  %v3347_v57 = vpop.f32.mrf.mxu1  ;;  %5854 = vmatpush2.bf16.msra.mxu0 %v7867_v48  ;;  %5896 = vmatprep.subr.bf16.mxu1 %v7878_v7  ;;  %v7908_v48 = vld [vmem:[#allocation3 + $0x2ec] ss:$16 sps:$4 sm:$0xff]  }
 0x409   : > { %v3810_v45 = vmax.f32 %v3809_v9, %v2994_v20  ;;  %v3936_v11 = vmax.f32 %v3935_v52, %v3347_v57  ;;  %v7876_v20 = vld [vmem:[#allocation3 + $0x780] ss:$16 sps:$4 sm:$0xff]   ;;  %5855 = vmatprep.subr.bf16.mxu0 %v7875_v12 }
 0x40a   : > { %v2996_v39 = vpop.f32.mrf.mxu0  ;;  %v3349_v41 = vpop.f32.mrf.mxu1 }
 0x40b   : > { %v3873_v17 = vmax.f32 %v3872_v44, %v2996_v39  ;;  %v3999_v26 = vmax.f32 %v3998_v59, %v3349_v41  ;;  %v7873_v59 = vld [vmem:[#allocation3 + $0x580] ss:$16 sps:$4 sm:$0xff]   ;;  %5897 = vmatpush2.bf16.msra.mxu1 %v7876_v20  ;;  %v7884_v39 = vld [vmem:[#allocation3 + $0x764] ss:$16 sps:$4 sm:$0xff]  }
 0x40c   : > { %v3000_v49 = vpop.f32.mrf.mxu0  ;;  %v3353_v2 = vpop.f32.mrf.mxu1  ;;  %5856 = vmatpush2.bf16.msra.mxu0 %v7873_v59  ;;  %5898 = vmatprep.subr.bf16.mxu1 %v7884_v39 }
 0x40d   : > { %v3811_v63 = vmax.f32 %v3810_v45, %v3000_v49  ;;  %v3937_v30 = vmax.f32 %v3936_v11, %v3353_v2  ;;  %v7882_v49 = vld [vmem:[#allocation3 + $0x760] ss:$16 sps:$4 sm:$0xff]   ;;  %5857 = vmatprep.subr.bf16.mxu0 %v7881_v1 }
 0x40e   : > { %v3002_v4 = vpop.f32.mrf.mxu0  ;;  %v3355_v19 = vpop.f32.mrf.mxu1 }
 0x40f   : > { %v3874_v35 = vmax.f32 %v3873_v17, %v3002_v4  ;;  %v4000_v54 = vmax.f32 %v3999_v26, %v3355_v19  ;;  %v7879_v26 = vld [vmem:[#allocation3 + $0x560] ss:$16 sps:$4 sm:$0xff]   ;;  %5899 = vmatpush2.bf16.msra.mxu1 %v7882_v49 }
 0x410   : > { %v3004_v10 = vpop.f32.mrf.mxu0  ;;  %v3357_v50 = vpop.f32.mrf.mxu1  ;;  %5858 = vmatpush2.bf16.msra.mxu0 %v7879_v26  ;;  %v7888_v4 = vld [vmem:[#allocation3 + $0x740] ss:$16 sps:$4 sm:$0xff]   ;;  %5900 = vmatprep.subr.bf16.mxu1 %v7890_v55 }
 0x411   : > { %v3812_v33 = vmax.f32 %v3811_v63, %v3004_v10  ;;  %v3938_v34 = vmax.f32 %v3937_v30, %v3357_v50  ;;  %v7887_v30 = vld [vmem:[#allocation3 + $0x544] ss:$16 sps:$4 sm:$0xff]  }
 0x412   : > { %v3006_v23 = vpop.f32.mrf.mxu0  ;;  %v3359_v15 = vpop.f32.mrf.mxu1  ;;  %5859 = vmatprep.subr.bf16.mxu0 %v7887_v30  ;;  %v7893_v50 = vld [vmem:[#allocation3 + $0x524] ss:$16 sps:$4 sm:$0xff]  }
 0x413   : > { %v3875_v56 = vmax.f32 %v3874_v35, %v3006_v23  ;;  %v4001_v5 = vmax.f32 %v4000_v54, %v3359_v15  ;;  %5901 = vmatpush2.bf16.msra.mxu1 %v7888_v4  ;;  %v7899_v15 = vld [vmem:[#allocation3 + $0x504] ss:$16 sps:$4 sm:$0xff]  }
 0x414   : > { %v3010_v36 = vpop.f32.mrf.mxu0  ;;  %v3363_v46 = vpop.f32.mrf.mxu1  ;;  %5860 = vmatpush2.bf16.msra.mxu0 %v7885_v28  ;;  %5902 = vmatprep.subr.bf16.mxu1 %v7896_v32 }
 0x415   : > { %v3813_v29 = vmax.f32 %v3812_v33, %v3010_v36  ;;  %v3939_v38 = vmax.f32 %v3938_v34, %v3363_v46  ;;  %v7894_v33 = vld [vmem:[#allocation3 + $0x720] ss:$16 sps:$4 sm:$0xff]   ;;  %5861 = vmatprep.subr.bf16.mxu0 %v7893_v50 }
 0x416   : > { %v3012_v53 = vpop.f32.mrf.mxu0  ;;  %v3365_v24 = vpop.f32.mrf.mxu1  ;;  %v7900_v36 = vld [vmem:[#allocation3 + $0x700] ss:$16 sps:$4 sm:$0xff]  }
 0x417   : > { %v9643_v21 = vmax.f32 %v3875_v56, %v3012_v53  ;;  %v9645_v9 = vmax.f32 %v4001_v5, %v3365_v24  ;;  %5903 = vmatpush2.bf16.msra.mxu1 %v7894_v33  ;;  %v7902_v56 = vld [vmem:[#allocation3 + $0x704] ss:$16 sps:$4 sm:$0xff]   ;;  %v7897_v5 = vld [vmem:[#allocation3 + $0x500] ss:$16 sps:$4 sm:$0xff]  }
 0x418   : > { %v3014_v52 = vpop.f32.mrf.mxu0  ;;  %v3367_v0 = vpop.f32.mrf.mxu1  ;;  %5862 = vmatpush2.bf16.msra.mxu0 %v7891_v58  ;;  %5904 = vmatprep.subr.bf16.mxu1 %v7902_v56 }
 0x419   : > { %v3814_v18 = vmax.f32 %v3813_v29, %v3014_v52  ;;  %v3940_v44 = vmax.f32 %v3939_v38, %v3367_v0  ;;  %5863 = vmatprep.subr.bf16.mxu0 %v7899_v15  ;;  %v7905_v38 = vld [vmem:[#allocation3 + $0xec] ss:$16 sps:$4 sm:$0xff]  }
 0x41a   : > { %v9647_v57 = vpop.f32.mrf.mxu0  ;;  %v9649_v31 = vpop.f32.mrf.mxu1 }
 0x41b   : > { %5905 = vmatpush2.bf16.msra.mxu1 %v7900_v36 }
 0x41c   : > { %v3020_v11 = vpop.f32.mrf.mxu0  ;;  %v3373_v27 = vpop.f32.mrf.mxu1  ;;  %5864 = vmatpush2.bf16.msra.mxu0 %v7897_v5  ;;  %5956 = vmatprep.subr.bf16.mxu1 %v7908_v48 }
 0x41d   : > { %v9655_v41 = vmax.f32 %v3814_v18, %v3020_v11  ;;  %v9657_v17 = vmax.f32 %v3940_v44, %v3373_v27  ;;  %5915 = vmatprep.subr.bf16.mxu0 %v7905_v38 }
 0x41e   : > { %v9659_v2 = vpop.f32.mrf.mxu0  ;;  %v9661_v14 = vpop.f32.mrf.mxu1 }
 0x420   : > { %v9663_v42 = vpop.f32.mrf.mxu0  ;;  %v9665_v63 = vpop.f32.mrf.mxu1 }
 0x422   : > { %v9667_v19 = vpop.f32.mrf.mxu0  ;;  %v9669_v35 = vpop.f32.mrf.mxu1 }
 0x424   : > { %v9671_v54 = vpop.f32.mrf.mxu0  ;;  %v9673_v10 = vpop.f32.mrf.mxu1 }
 0x426   : > { %v9675_v34 = vpop.f32.mrf.mxu0  ;;  %v9677_v60 = vpop.f32.mrf.mxu1 }
 0x428   : > { %v9679_v3 = vpop.f32.mrf.mxu0  ;;  %v9681_v23 = vpop.f32.mrf.mxu1 }
 0x42a   : > { %v9683_v46 = vpop.f32.mrf.mxu0  ;;  %v9685_v51 = vpop.f32.mrf.mxu1 }
 0x42c   : > { %v9687_v8 = vpop.f32.mrf.mxu0  ;;  %v9689_v29 = vpop.f32.mrf.mxu1 }
 0x42e   : > { %v9691_v22 = vpop.f32.mrf.mxu0  ;;  %v9693_v53 = vpop.f32.mrf.mxu1 }
 0x430   : > { %v9695_v24 = vpop.f32.mrf.mxu0  ;;  %v9697_v52 = vpop.f32.mrf.mxu1 }
 0x432   : > { %v9699_v0 = vpop.f32.mrf.mxu0  ;;  %v9701_v12 = vpop.f32.mrf.mxu1 }
 0x434   : > { %v9703_v7 = vpop.f32.mrf.mxu0  ;;  %v9705_v18 = vpop.f32.mrf.mxu1 }
 0x436   : > { %v9707_v44 = vpop.f32.mrf.mxu0  ;;  %v9709_v59 = vpop.f32.mrf.mxu1 }
 0x438   : > { %v9711_v20 = vpop.f32.mrf.mxu0  ;;  %v9713_v11 = vpop.f32.mrf.mxu1 }
 0x43a   : > { %v9715_v27 = vpop.f32.mrf.mxu0  ;;  %v9717_v1 = vpop.f32.mrf.mxu1 }
 0x43c   : > { %v9719_v39 = vpop.f32.mrf.mxu0  ;;  %v9721_v26 = vpop.f32.mrf.mxu1 }
 0x43e   : > { %v9723_v49 = vpop.f32.mrf.mxu0  ;;  %v9725_v30 = vpop.f32.mrf.mxu1 }
 0x440   : > { %v9727_v55 = vpop.f32.mrf.mxu0  ;;  %v9729_v28 = vpop.f32.mrf.mxu1 }
 0x442   : > { %v9731_v4 = vpop.f32.mrf.mxu0  ;;  %v9733_v50 = vpop.f32.mrf.mxu1 }
 0x444   : > { %v9735_v32 = vpop.f32.mrf.mxu0  ;;  %v9737_v58 = vpop.f32.mrf.mxu1 }
 0x446   : > { %v9739_v33 = vpop.f32.mrf.mxu0  ;;  %v9741_v15 = vpop.f32.mrf.mxu1 }
 0x448   : > { %v9743_v56 = vpop.f32.mrf.mxu0  ;;  %v9745_v5 = vpop.f32.mrf.mxu1 }
 0x44a   : > { %v9747_v36 = vpop.f32.mrf.mxu0  ;;  %v9749_v38 = vpop.f32.mrf.mxu1 }
 0x44c   : > { %v9751_v48 = vpop.f32.mrf.mxu0  ;;  %v9753_v40 = vpop.f32.mrf.mxu1 }
 0x44d   : > { %10150 = vst [vmem:[#allocation26_spill] sm:$0xff] %v9753_v40 }
 0x44e   : > { %v9755_v43 = vpop.f32.mrf.mxu0  ;;  %v9757_v45 = vpop.f32.mrf.mxu1 }
 0x44f   : > { %10151 = vst [vmem:[#allocation27_spill] sm:$0xff] %v9755_v43  ;;  %10152 = vst [vmem:[#allocation28_spill] sm:$0xff] %v9757_v45 }
 0x450   : > { %v9759_v13 = vpop.f32.mrf.mxu0  ;;  %v9761_v61 = vpop.f32.mrf.mxu1 }
 0x451   : > { %10153 = vst [vmem:[#allocation29_spill] sm:$0xff] %v9759_v13  ;;  %10154 = vst [vmem:[#allocation30_spill] sm:$0xff] %v9761_v61 }
 0x452   : > { %v9763_v37 = vpop.f32.mrf.mxu0  ;;  %v9765_v16 = vpop.f32.mrf.mxu1 }
 0x453   : > { %10155 = vst [vmem:[#allocation31_spill] sm:$0xff] %v9763_v37 }
 0x454   : > { %v9767_v6 = vpop.f32.mrf.mxu0  ;;  %v9769_v62 = vpop.f32.mrf.mxu1 }
 0x455   : > { %10156 = vst [vmem:[#allocation32_spill] sm:$0xff] %v9767_v6  ;;  %10157 = vst [vmem:[#allocation33_spill] sm:$0xff] %v9769_v62  ;;  %v10165_v62 = vmax.f32 %v9643_v21, %v9647_v57 }
 0x456   : > { %v9771_v25 = vpop.f32.mrf.mxu0  ;;  %v9773_v47 = vpop.f32.mrf.mxu1 }
 0x457   : > { %10158 = vst [vmem:[#allocation34_spill] sm:$0xff] %v9773_v47  ;;  %v3878_v6 = vmax.f32 %v10165_v62, %v9659_v2  ;;  %v10166_v47 = vmax.f32 %v9645_v9, %v9649_v31 }
 0x458   : > { %v9775_v40 = vpop.f32.mrf.mxu0  ;;  %v9777_v43 = vpop.f32.mrf.mxu1 }
 0x459   : > { %10159 = vst [vmem:[#allocation35_spill] sm:$0xff] %v9775_v40  ;;  %10160 = vst [vmem:[#allocation36_spill] sm:$0xff] %v9777_v43  ;;  %v4004_v40 = vmax.f32 %v10166_v47, %v9661_v14  ;;  %v3816_v43 = vmax.f32 %v9655_v41, %v9663_v42 }
 0x45a   : > { %v9779_v45 = vpop.f32.mrf.mxu0  ;;  %v9781_v13 = vpop.f32.mrf.mxu1 }
 0x45b   : > { %10161 = vst [vmem:[#allocation37_spill] sm:$0xff] %v9779_v45  ;;  %10162 = vst [vmem:[#allocation38_spill] sm:$0xff] %v9781_v13  ;;  %v3942_v13 = vmax.f32 %v9657_v17, %v9665_v63  ;;  %v4005_v21 = vmax.f32 %v4004_v40, %v9669_v35  ;;  %v3817_v62 = vmax.f32 %v3816_v43, %v9671_v54 }
 0x45c   : > { %v9783_v61 = vpop.f32.mrf.mxu0  ;;  %v9785_v37 = vpop.f32.mrf.mxu1 }
 0x45d   : > { %10163 = vst [vmem:[#allocation39_spill] sm:$0xff] %v9783_v61  ;;  %10164 = vst [vmem:[#allocation40_spill] sm:$0xff] %v9785_v37  ;;  %v3879_v37 = vmax.f32 %v3878_v6, %v9667_v19  ;;  %v3943_v57 = vmax.f32 %v3942_v13, %v9673_v10  ;;  %v4006_v41 = vmax.f32 %v4005_v21, %v9677_v60 }
 0x45e   : > { %v9799_v45 = vpop.f32.mrf.mxu0  ;;  %v9801_v61 = vpop.f32.mrf.mxu1  ;;  %v3818_v17 = vmax.f32 %v3817_v62, %v9679_v3 }
 0x45f   : > { %v3880_v31 = vmax.f32 %v3879_v37, %v9675_v34  ;;  %v3944_v2 = vmax.f32 %v3943_v57, %v9681_v23  ;;  %v4007_v43 = vmax.f32 %v4006_v41, %v9685_v51 }
 0x460   : > { %v9807_v9 = vpop.f32.mrf.mxu0  ;;  %v9809_v47 = vpop.f32.mrf.mxu1  ;;  %v3819_v13 = vmax.f32 %v3818_v17, %v9687_v8 }
 0x461   : > { %v3881_v40 = vmax.f32 %v3880_v31, %v9683_v46  ;;  %v3945_v42 = vmax.f32 %v3944_v2, %v9689_v29  ;;  %v4008_v35 = vmax.f32 %v4007_v43, %v9693_v53 }
 0x462   : > { %v9815_v14 = vpop.f32.mrf.mxu0  ;;  %v9817_v6 = vpop.f32.mrf.mxu1  ;;  %v3820_v54 = vmax.f32 %v3819_v13, %v9695_v24  ;;  %v10167_v13 = vld [vmem:[#allocation26_spill] sm:$0xff] }
 0x463   : > { %v3882_v19 = vmax.f32 %v3881_v40, %v9691_v22  ;;  %v3946_v10 = vmax.f32 %v3945_v42, %v9697_v52  ;;  %v4009_v23 = vmax.f32 %v4008_v35, %v9701_v12  ;;  %v10168_v35 = vld [vmem:[#allocation27_spill] sm:$0xff] }
 0x464   : > { %v9823_v63 = vpop.f32.mrf.mxu0  ;;  %v9825_v37 = vpop.f32.mrf.mxu1  ;;  %v3821_v46 = vmax.f32 %v3820_v54, %v9703_v7  ;;  %v10169_v54 = vld [vmem:[#allocation28_spill] sm:$0xff] }
 0x465   : > { %v3883_v3 = vmax.f32 %v3882_v19, %v9699_v0  ;;  %v3947_v51 = vmax.f32 %v3946_v10, %v9705_v18  ;;  %v4010_v53 = vmax.f32 %v4009_v23, %v9709_v59  ;;  %v10170_v10 = vld [vmem:[#allocation29_spill] sm:$0xff] }
 0x466   : > { %v9831_v34 = vpop.f32.mrf.mxu0  ;;  %v9833_v60 = vpop.f32.mrf.mxu1  ;;  %v3822_v24 = vmax.f32 %v3821_v46, %v9711_v20 }
 0x467   : > { %v3884_v22 = vmax.f32 %v3883_v3, %v9707_v44  ;;  %v3948_v52 = vmax.f32 %v3947_v51, %v9713_v11  ;;  %v4011_v7 = vmax.f32 %v4010_v53, %v9717_v1  ;;  %v10171_v3 = vld [vmem:[#allocation30_spill] sm:$0xff]  ;;  %v10173_v53 = vld [vmem:[#allocation32_spill] sm:$0xff] }
 0x468   : > { %v9839_v8 = vpop.f32.mrf.mxu0  ;;  %v9841_v29 = vpop.f32.mrf.mxu1  ;;  %v3823_v18 = vmax.f32 %v3822_v24, %v9719_v39  ;;  %v10174_v24 = vld [vmem:[#allocation33_spill] sm:$0xff] }
 0x469   : > { %v3885_v12 = vmax.f32 %v3884_v22, %v9715_v27  ;;  %v3949_v62 = vmax.f32 %v3948_v52, %v9721_v26  ;;  %v4012_v20 = vmax.f32 %v4011_v7, %v9725_v30  ;;  %v10172_v22 = vld [vmem:[#allocation31_spill] sm:$0xff] }
 0x46a   : > { %v9847_v21 = vpop.f32.mrf.mxu0  ;;  %v9849_v0 = vpop.f32.mrf.mxu1  ;;  %v3824_v11 = vmax.f32 %v3823_v18, %v9727_v55 }
 0x46b   : > { %v3886_v59 = vmax.f32 %v3885_v12, %v9723_v49  ;;  %v3950_v31 = vmax.f32 %v3949_v62, %v9729_v28  ;;  %v4013_v39 = vmax.f32 %v4012_v20, %v9733_v50  ;;  %v10175_v62 = vld [vmem:[#allocation34_spill] sm:$0xff]  ;;  %v10176_v20 = vld [vmem:[#allocation35_spill] sm:$0xff] }
 0x46c   : > { %v9855_v57 = vpop.f32.mrf.mxu0  ;;  %v9857_v44 = vpop.f32.mrf.mxu1  ;;  %v3825_v26 = vmax.f32 %v3824_v11, %v9735_v32 }
 0x46d   : > { %v3887_v1 = vmax.f32 %v3886_v59, %v9731_v4  ;;  %v3951_v17 = vmax.f32 %v3950_v31, %v9737_v58  ;;  %v4014_v55 = vmax.f32 %v4013_v39, %v9741_v15  ;;  %v10177_v31 = vld [vmem:[#allocation36_spill] sm:$0xff] }
 0x46e   : > { %v9863_v41 = vpop.f32.mrf.mxu0  ;;  %v9865_v27 = vpop.f32.mrf.mxu1  ;;  %v3826_v28 = vmax.f32 %v3825_v26, %v9743_v56 }
 0x46f   : > { %v3888_v30 = vmax.f32 %v3887_v1, %v9739_v33  ;;  %v3952_v40 = vmax.f32 %v3951_v17, %v9745_v5  ;;  %v4015_v32 = vmax.f32 %v4014_v55, %v9749_v38  ;;  %v10178_v17 = vld [vmem:[#allocation37_spill] sm:$0xff]  ;;  %v10179_v55 = vld [vmem:[#allocation38_spill] sm:$0xff] }
 0x470   : > { %v9871_v2 = vpop.f32.mrf.mxu0  ;;  %v9873_v49 = vpop.f32.mrf.mxu1  ;;  %v3827_v58 = vmax.f32 %v3826_v28, %v9751_v48  ;;  %v10180_v28 = vld [vmem:[#allocation39_spill] sm:$0xff] }
 0x471   : > { %v3889_v50 = vmax.f32 %v3888_v30, %v9747_v36  ;;  %v3953_v42 = vmax.f32 %v3952_v40, %v10167_v13  ;;  %v4016_v56 = vmax.f32 %v4015_v32, %v10169_v54 }
 0x472   : > { %v9879_v43 = vpop.f32.mrf.mxu0  ;;  %v9881_v4 = vpop.f32.mrf.mxu1  ;;  %v3828_v5 = vmax.f32 %v3827_v58, %v10170_v10 }
 0x473   : > { %v3890_v15 = vmax.f32 %v3889_v50, %v10168_v35  ;;  %v3954_v23 = vmax.f32 %v3953_v42, %v10171_v3  ;;  %v4017_v38 = vmax.f32 %v4016_v56, %v9765_v16  ;;  %v10181_v50 = vld [vmem:[#allocation40_spill] sm:$0xff] }
 0x474   : > { %v3130_v19 = vpop.f32.mrf.mxu0  ;;  %v3483_v33 = vpop.f32.mrf.mxu1  ;;  %v3829_v48 = vmax.f32 %v3828_v5, %v10173_v53 }
 0x475   : > { %v3891_v36 = vmax.f32 %v3890_v15, %v10172_v22  ;;  %v3955_v52 = vmax.f32 %v3954_v23, %v10174_v24  ;;  %v4018_v59 = vmax.f32 %v4017_v38, %v10175_v62 }
 0x476   : > { %v3132_v46 = vpop.f32.mrf.mxu0  ;;  %v3485_v51 = vpop.f32.mrf.mxu1  ;;  %v3830_v11 = vmax.f32 %v3829_v48, %v10176_v20 }
 0x477   : > { %v3892_v18 = vmax.f32 %v3891_v36, %v9771_v25  ;;  %v3956_v1 = vmax.f32 %v3955_v52, %v10177_v31  ;;  %v4019_v16 = vmax.f32 %v4018_v59, %v10179_v55 }
 0x478   : > { %v3134_v12 = vpop.f32.mrf.mxu0  ;;  %v3487_v7 = vpop.f32.mrf.mxu1  ;;  %v3831_v40 = vmax.f32 %v3830_v11, %v10180_v28 }
 0x479   : > { %v3893_v30 = vmax.f32 %v3892_v18, %v10178_v17  ;;  %v3957_v32 = vmax.f32 %v3956_v1, %v10181_v50  ;;  %v4020_v42 = vmax.f32 %v4019_v16, %v9801_v61 }
 0x47a   : > { %v3136_v39 = vpop.f32.mrf.mxu0  ;;  %v3489_v26 = vpop.f32.mrf.mxu1  ;;  %v3832_v35 = vmax.f32 %v3831_v40, %v9807_v9 }
 0x47b   : > { %v3894_v25 = vmax.f32 %v3893_v30, %v9799_v45  ;;  %v3958_v15 = vmax.f32 %v3957_v32, %v9809_v47  ;;  %v4021_v5 = vmax.f32 %v4020_v42, %v9817_v6 }
 0x47c   : > { %v3140_v58 = vpop.f32.mrf.mxu0  ;;  %v3493_v13 = vpop.f32.mrf.mxu1  ;;  %v3833_v3 = vmax.f32 %v3832_v35, %v9823_v63 }
 0x47d   : > { %v3895_v10 = vmax.f32 %v3894_v25, %v9815_v14  ;;  %v3959_v23 = vmax.f32 %v3958_v15, %v9825_v37  ;;  %v4022_v61 = vmax.f32 %v4021_v5, %v9833_v60 }
 0x47e   : > { %v3142_v54 = vpop.f32.mrf.mxu0  ;;  %v3495_v56 = vpop.f32.mrf.mxu1  ;;  %v3834_v9 = vmax.f32 %v3833_v3, %v9839_v8 }
 0x47f   : > { %v3896_v45 = vmax.f32 %v3895_v10, %v9831_v34  ;;  %v3960_v47 = vmax.f32 %v3959_v23, %v9841_v29  ;;  %v4023_v6 = vmax.f32 %v4022_v61, %v9849_v0 }
 0x480   : > { %v3144_v22 = vpop.f32.mrf.mxu0  ;;  %v3497_v36 = vpop.f32.mrf.mxu1  ;;  %v3835_v63 = vmax.f32 %v3834_v9, %v9855_v57 }
 0x481   : > { %v3897_v14 = vmax.f32 %v3896_v45, %v9847_v21  ;;  %v3961_v37 = vmax.f32 %v3960_v47, %v9857_v44  ;;  %v4024_v60 = vmax.f32 %v4023_v6, %v9865_v27 }
 0x482   : > { %v3146_v38 = vpop.f32.mrf.mxu0  ;;  %v3499_v53 = vpop.f32.mrf.mxu1  ;;  %v3836_v8 = vmax.f32 %v3835_v63, %v9871_v2 }
 0x483   : > { %v3898_v34 = vmax.f32 %v3897_v14, %v9863_v41  ;;  %v3962_v29 = vmax.f32 %v3961_v37, %v9873_v49  ;;  %v4025_v0 = vmax.f32 %v4024_v60, %v9881_v4  ;;  %v9928_v14 = vld [vmem:[%s10082_s8] sm:$0xf] }
 0x484   : > { %v3150_v48 = vpop.f32.mrf.mxu0  ;;  %v3503_v24 = vpop.f32.mrf.mxu1  ;;  %v3837_v62 = vmax.f32 %v3836_v8, %v3130_v19 }
 0x485   : > { %v3899_v21 = vmax.f32 %v3898_v34, %v9879_v43  ;;  %v3963_v57 = vmax.f32 %v3962_v29, %v3483_v33  ;;  %v4026_v11 = vmax.f32 %v4025_v0, %v3485_v51  ;;  %v10182_v29 = vld [vmem:[#allocation20_spill] sm:$0xff] }
 0x486   : > { %v3152_v52 = vpop.f32.mrf.mxu0  ;;  %v3505_v18 = vpop.f32.mrf.mxu1  ;;  %v3838_v31 = vmax.f32 %v3837_v62, %v3134_v12 }
 0x487   : > { %v3900_v20 = vmax.f32 %v3899_v21, %v3132_v46  ;;  %v3964_v41 = vmax.f32 %v3963_v57, %v3487_v7  ;;  %v4027_v2 = vmax.f32 %v4026_v11, %v3489_v26 }
 0x488   : > { %v3154_v59 = vpop.f32.mrf.mxu0  ;;  %v3507_v44 = vpop.f32.mrf.mxu1  ;;  %v3839_v30 = vmax.f32 %v3838_v31, %v3140_v58 }
 0x489   : > { %v3901_v17 = vmax.f32 %v3900_v20, %v3136_v39  ;;  %v3965_v49 = vmax.f32 %v3964_v41, %v3493_v13  ;;  %v4028_v43 = vmax.f32 %v4027_v2, %v3495_v56 }
 0x48a   : > { %v3156_v1 = vpop.f32.mrf.mxu0  ;;  %v3509_v27 = vpop.f32.mrf.mxu1  ;;  %v3840_v40 = vmax.f32 %v3839_v30, %v3144_v22 }
 0x48b   : > { %v3902_v28 = vmax.f32 %v3901_v17, %v3142_v54  ;;  %v3966_v4 = vmax.f32 %v3965_v49, %v3497_v36  ;;  %v4029_v32 = vmax.f32 %v4028_v43, %v3499_v53 }
 0x48c   : > { %v3160_v55 = vpop.f32.mrf.mxu0  ;;  %v3513_v16 = vpop.f32.mrf.mxu1  ;;  %v3841_v46 = vmax.f32 %v3840_v40, %v3150_v48 }
 0x48d   : > { %v3903_v50 = vmax.f32 %v3902_v28, %v3146_v38  ;;  %v3967_v51 = vmax.f32 %v3966_v4, %v3503_v24  ;;  %v4030_v42 = vmax.f32 %v4029_v32, %v3505_v18 }
 0x48e   : > { %v3162_v19 = vpop.f32.mrf.mxu0  ;;  %v3515_v33 = vpop.f32.mrf.mxu1  ;;  %v3842_v39 = vmax.f32 %v3841_v46, %v3154_v59 }
 0x48f   : > { %v3904_v25 = vmax.f32 %v3903_v50, %v3152_v52  ;;  %v3968_v26 = vmax.f32 %v3967_v51, %v3507_v44  ;;  %v4031_v15 = vmax.f32 %v4030_v42, %v3509_v27  ;;  %v5734_v52 = vrot.slane %v9928_v14, %v10182_v29  ;;  %v10183_v44 = vld [vmem:[#allocation19_spill] sm:$0xff] }
 0x490   : > { %v3164_v12 = vpop.f32.mrf.mxu0  ;;  %v3517_v7 = vpop.f32.mrf.mxu1  ;;  %v3843_v54 = vmax.f32 %v3842_v39, %v3160_v55  ;;  %v5738_v20 = vrot.slane %v9928_v14, %v10183_v44  ;;  %v10184_v27 = vld [vmem:[#allocation23_spill] sm:$0xff] }
 0x491   : > { %v3905_v35 = vmax.f32 %v3904_v25, %v3156_v1  ;;  %v3969_v56 = vmax.f32 %v3968_v26, %v3513_v16  ;;  %v4032_v23 = vmax.f32 %v4031_v15, %v3515_v33  ;;  %v4155_v17 = vsub.s32 4, %v10184_v27 }
 0x492   : > { %v3166_v58 = vpop.f32.mrf.mxu0  ;;  %v3519_v13 = vpop.f32.mrf.mxu1  ;;  %v3844_v22 = vmax.f32 %v3843_v54, %v3164_v12  ;;  %v4163_v2 = vsub.s32 6, %v10184_v27  ;;  %v4159_v32 = vsub.s32 5, %v10184_v27  ;;  %v4167_v46 = vsub.s32 7, %v10184_v27  ;;  %v8208_v54 = vld [vmem:[%s10080_s6] sm:$0xff] }
 0x493   : > { %v3906_v3 = vmax.f32 %v3905_v35, %v3162_v19  ;;  %v3970_v36 = vmax.f32 %v3969_v56, %v3517_v7  ;;  %v4033_v47 = vmax.f32 %v4032_v23, %v3519_v13  ;;  %v4156_v56 = vrot.slane %v8208_v54, %v4155_v17  ;;  %v7924_v17 = vld [vmem:[#allocation3 + $0x288] ss:$16 sps:$4 sm:$0xff]  }
 0x494   : > { %v3170_v10 = vpop.f32.mrf.mxu0  ;;  %v3523_v5 = vpop.f32.mrf.mxu1 }
 0x495   : > { %v3907_v9 = vmax.f32 %v3906_v3, %v3166_v58  ;;  %v3845_v38 = vmax.f32 %v3844_v22, %v3170_v10  ;;  %v3971_v53 = vmax.f32 %v3970_v36, %v3523_v5  ;;  %v4164_v10 = vrot.slane %v8208_v54, %v4163_v2  ;;  %v7929_v2 = vld [vmem:[#allocation3 + $0x6c] ss:$16 sps:$4 sm:$0xff]  }
 0x496   : > { %v3172_v45 = vpop.f32.mrf.mxu0  ;;  %v3525_v61 = vpop.f32.mrf.mxu1  ;;  %v4160_v5 = vrot.slane %v8208_v54, %v4159_v32  ;;  %v4168_v3 = vrot.slane %v8208_v54, %v4167_v46  ;;  %v7942_v32 = vld [vmem:[#allocation3 + $0x228] ss:$16 sps:$4 sm:$0xff]   ;;  %v7947_v46 = vld [vmem:[#allocation3 + $0xc] ss:$16 sps:$4 sm:$0xff]  }
 0x497   : > { %v3908_v37 = vmax.f32 %v3907_v9, %v3172_v45  ;;  %v4034_v48 = vmax.f32 %v4033_v47, %v3525_v61  ;;  %v7960_v54 = vld [vmem:[#allocation3 + $0x3c8] ss:$16 sps:$4 sm:$0xff]  }
 0x498   : > { %v3174_v6 = vpop.f32.mrf.mxu0  ;;  %v3527_v63 = vpop.f32.mrf.mxu1 }
 0x499   : > { %v3846_v24 = vmax.f32 %v3845_v38, %v3174_v6  ;;  %v3972_v34 = vmax.f32 %v3971_v53, %v3527_v63 }
 0x49a   : > { %v3176_v60 = vpop.f32.mrf.mxu0  ;;  %v3529_v8 = vpop.f32.mrf.mxu1 }
 0x49b   : > { %v4111_v18 = vrot.slane %v3846_v24, 4  ;;  %v4123_v21 = vrot.slane %v3972_v34, 4  ;;  %v3909_v0 = vmax.f32 %v3908_v37, %v3176_v60  ;;  %v4035_v62 = vmax.f32 %v4034_v48, %v3529_v8  ;;  %v7903_v48 = vld [vmem:[#allocation3 + $0xe8] ss:$16 sps:$4 sm:$0xff]   ;;  %v7911_v8 = vld [vmem:[#allocation3 + $0xcc] ss:$16 sps:$4 sm:$0xff]  }
 0x49c   : > { %v5785_v57 = vpop.f32.mrf.mxu0  ;;  %v5826_v59 = vpop.f32.mrf.mxu1 }
 0x49d   : > { %v4112_v11 = vmax.f32 %v3846_v24, %v4111_v18  ;;  %v4124_v31 = vmax.f32 %v3972_v34, %v4123_v21  ;;  %v4117_v41 = vrot.slane %v3909_v0, 4  ;;  %v4129_v1 = vrot.slane %v4035_v62, 4  ;;  %v7906_v24 = vld [vmem:[#allocation3 + $0x2e8] ss:$16 sps:$4 sm:$0xff]  }
 0x49e   : > { %v5786_v30 = vadd.f32 %v5785_v57, %v5734_v52  ;;  %v5787_v49 = vpop.f32.mrf.mxu0  ;;  %v5828_v55 = vpop.f32.mrf.mxu1  ;;  %v7914_v52 = vld [vmem:[#allocation3 + $0x2cc] ss:$16 sps:$4 sm:$0xff]   ;;  %v7909_v18 = vld [vmem:[#allocation3 + $0xc8] ss:$16 sps:$4 sm:$0xff]  }
 0x49f   : > { %v4113_v16 = vrot.slane %v4112_v11, 2  ;;  %v4125_v28 = vrot.slane %v4124_v31, 2  ;;  %v4118_v43 = vmax.f32 %v3909_v0, %v4117_v41  ;;  %v4130_v40 = vmax.f32 %v4035_v62, %v4129_v1  ;;  %v7912_v21 = vld [vmem:[#allocation3 + $0x2c8] ss:$16 sps:$4 sm:$0xff]   ;;  %v7917_v57 = vld [vmem:[#allocation3 + $0xac] ss:$16 sps:$4 sm:$0xff]  }
 0x4a0   : > { %v9936_v4 = vadd.f32 %v5826_v59, %v5786_v30  ;;  %v5788_v19 = vadd.f32 %v5787_v49, %v5738_v20  ;;  %v5789_v33 = vpop.f32.mrf.mxu0  ;;  %v5830_v50 = vpop.f32.mrf.mxu1  ;;  %v10185_v0 = vld [vmem:[#allocation21_spill] sm:$0xff]  ;;  %v10186_v62 = vld [vmem:[#allocation24_spill] sm:$0xff] }
 0x4a1   : > { %v4114_v51 = vmax.f32 %v4112_v11, %v4113_v16  ;;  %v4126_v12 = vmax.f32 %v4124_v31, %v4125_v28  ;;  %v4119_v7 = vrot.slane %v4118_v43, 2  ;;  %v4131_v25 = vrot.slane %v4130_v40, 2  ;;  %v7920_v59 = vld [vmem:[#allocation3 + $0x2ac] ss:$16 sps:$4 sm:$0xff]   ;;  %v7915_v20 = vld [vmem:[#allocation3 + $0xa8] ss:$16 sps:$4 sm:$0xff]  }
 0x4a2   : > { %v9940_v42 = vadd.f32 %v5828_v55, %v5788_v19  ;;  %v5790_v39 = vpop.f32.mrf.mxu0  ;;  %v5831_v26 = vpop.f32.mrf.mxu1  ;;  %v7918_v11 = vld [vmem:[#allocation3 + $0x2a8] ss:$16 sps:$4 sm:$0xff]   ;;  %v7923_v31 = vld [vmem:[#allocation3 + $0x8c] ss:$16 sps:$4 sm:$0xff]  }
 0x4a3   : > { %v4115_v58 = vrot.slane %v4114_v51, 1  ;;  %v4127_v13 = vrot.slane %v4126_v12, 1  ;;  %v4120_v35 = vmax.f32 %v4118_v43, %v4119_v7  ;;  %v4132_v15 = vmax.f32 %v4130_v40, %v4131_v25  ;;  %v7926_v41 = vld [vmem:[#allocation3 + $0x28c] ss:$16 sps:$4 sm:$0xff]   ;;  %v7921_v1 = vld [vmem:[#allocation3 + $0x88] ss:$16 sps:$4 sm:$0xff]  }
 0x4a4   : > { %v7932_v30 = vld [vmem:[#allocation3 + $0x26c] ss:$16 sps:$4 sm:$0xff]   ;;  %v7927_v49 = vld [vmem:[#allocation3 + $0x68] ss:$16 sps:$4 sm:$0xff]  }
 0x4a5   : > { %v4116_v23 = vmax.f32 %v4114_v51, %v4115_v58  ;;  %v4128_v22 = vmax.f32 %v4126_v12, %v4127_v13  ;;  %v4121_v36 = vrot.slane %v4120_v35, 1  ;;  %v4133_v45 = vrot.slane %v4132_v15, 1  ;;  %v7930_v55 = vld [vmem:[#allocation3 + $0x268] ss:$16 sps:$4 sm:$0xff]   ;;  %v7935_v16 = vld [vmem:[#allocation3 + $0x4c] ss:$16 sps:$4 sm:$0xff]  }
 0x4a6   : > { %v7938_v28 = vld [vmem:[#allocation3 + $0x24c] ss:$16 sps:$4 sm:$0xff]   ;;  %v7933_v43 = vld [vmem:[#allocation3 + $0x48] ss:$16 sps:$4 sm:$0xff]  }
 0x4a7   : > { %v4122_v61 = vmax.f32 %v4120_v35, %v4121_v36  ;;  %v4134_v9 = vmax.f32 %v4132_v15, %v4133_v45  ;;  %v4181_v47 = vadd.f32 %v4156_v56, %v4116_v23  ;;  %v4183_v38 = vadd.f32 %v4164_v10, %v4128_v22  ;;  %v7936_v40 = vld [vmem:[#allocation3 + $0x248] ss:$16 sps:$4 sm:$0xff]   ;;  %v7941_v19 = vld [vmem:[#allocation3 + $0x2c] ss:$16 sps:$4 sm:$0xff]  }
 0x4a8   : > { %v7944_v33 = vld [vmem:[#allocation3 + $0x22c] ss:$16 sps:$4 sm:$0xff]   ;;  %v7939_v50 = vld [vmem:[#allocation3 + $0x28] ss:$16 sps:$4 sm:$0xff]  }
 0x4a9   : > { %v4182_v53 = vadd.f32 %v4160_v5, %v4122_v61  ;;  %v4184_v6 = vadd.f32 %v4168_v3, %v4134_v9  ;;  %v9949_v34 = vpack.c.bf16 %v4181_v47, %v4181_v47  ;;  %v9951_v60 = vpack.c.bf16 %v4183_v38, %v4183_v38  ;;  %v7950_v51 = vld [vmem:[#allocation3 + $0x20c] ss:$16 sps:$4 sm:$0xff]   ;;  %v7945_v12 = vld [vmem:[#allocation3 + $0x8] ss:$16 sps:$4 sm:$0xff]  }
 0x4aa   : > { %v7948_v7 = vld [vmem:[#allocation3 + $0x208] ss:$16 sps:$4 sm:$0xff]   ;;  %v7953_v25 = vld [vmem:[#allocation3 + $0x1ec] ss:$16 sps:$4 sm:$0xff]  }
 0x4ab   : > { %v9945_v63 = vpack.c.bf16 %v4182_v53, %v4182_v53  ;;  %v9947_v37 = vpack.c.bf16 %v4184_v6, %v4184_v6  ;;  %v7956_v39 = vld [vmem:[#allocation3 + $0x3ec] ss:$16 sps:$4 sm:$0xff]   ;;  %v7951_v26 = vld [vmem:[#allocation3 + $0x1e8] ss:$16 sps:$4 sm:$0xff]  }
 0x4ac   : > { %v7954_v58 = vld [vmem:[#allocation3 + $0x3e8] ss:$16 sps:$4 sm:$0xff]   ;;  %v7959_v13 = vld [vmem:[#allocation3 + $0x1cc] ss:$16 sps:$4 sm:$0xff]  }
 0x4ad   : > { %5865 = vmatprep.mubr.bf16.mxu0 %v9945_v63  ;;  %5906 = vmatprep.mubr.bf16.mxu1 %v9947_v37  ;;  %v7962_v35 = vld [vmem:[#allocation3 + $0x3cc] ss:$16 sps:$4 sm:$0xff]   ;;  %v7957_v15 = vld [vmem:[#allocation3 + $0x1c8] ss:$16 sps:$4 sm:$0xff]  }
 0x4ae   : > { %5866 = vmatmul.mubr.bf16.vlgmr.msra.gmra.mxu0 %v9949_v34  ;;  %5907 = vmatmul.mubr.bf16.vlgmr.msra.gmra.mxu1 %v9951_v60  ;;  %v7965_v56 = vld [vmem:[#allocation3 + $0x1ac] ss:$16 sps:$4 sm:$0xff]   ;;  %v7963_v5 = vld [vmem:[#allocation3 + $0x1a8] ss:$16 sps:$4 sm:$0xff]  }
 0x4af   : > { %5916 = vmatpush1.bf16.msra.mxu0 %v7903_v48  ;;  %5957 = vmatpush1.bf16.msra.mxu1 %v7906_v24  ;;  %v7968_v10 = vld [vmem:[#allocation3 + $0x3ac] ss:$16 sps:$4 sm:$0xff]   ;;  %v7966_v3 = vld [vmem:[#allocation3 + $0x3a8] ss:$16 sps:$4 sm:$0xff]  }
 0x4b0   : > { %5947 = vmatprep.mubr.bf16.mxu0 %v10185_v0  ;;  %5988 = vmatprep.mubr.bf16.mxu1 %v10186_v62  ;;  %v7971_v23 = vld [vmem:[#allocation3 + $0x18c] ss:$16 sps:$4 sm:$0xff]   ;;  %v7969_v36 = vld [vmem:[#allocation3 + $0x188] ss:$16 sps:$4 sm:$0xff]  }
 0x4b1   : > { %5917 = vmatprep.subr.bf16.mxu0 %v7911_v8  ;;  %5958 = vmatprep.subr.bf16.mxu1 %v7914_v52  ;;  %v7974_v22 = vld [vmem:[#allocation3 + $0x38c] ss:$16 sps:$4 sm:$0xff]   ;;  %v7972_v45 = vld [vmem:[#allocation3 + $0x388] ss:$16 sps:$4 sm:$0xff]  }
 0x4b2   : > { %v7977_v61 = vld [vmem:[#allocation3 + $0x16c] ss:$16 sps:$4 sm:$0xff]   ;;  %v7975_v47 = vld [vmem:[#allocation3 + $0x168] ss:$16 sps:$4 sm:$0xff]  }
 0x4b3   : > { %5918 = vmatpush1.bf16.msra.mxu0 %v7909_v18  ;;  %5959 = vmatpush1.bf16.msra.mxu1 %v7912_v21  ;;  %v7980_v9 = vld [vmem:[#allocation3 + $0x36c] ss:$16 sps:$4 sm:$0xff]   ;;  %v7978_v38 = vld [vmem:[#allocation3 + $0x368] ss:$16 sps:$4 sm:$0xff]  }
 0x4b4   : > { %5919 = vmatprep.subr.bf16.mxu0 %v7917_v57  ;;  %5960 = vmatprep.subr.bf16.mxu1 %v7920_v59  ;;  %v7983_v53 = vld [vmem:[#allocation3 + $0x14c] ss:$16 sps:$4 sm:$0xff]   ;;  %v7981_v48 = vld [vmem:[#allocation3 + $0x148] ss:$16 sps:$4 sm:$0xff]  }
 0x4b5   : > { %v7986_v6 = vld [vmem:[#allocation3 + $0x34c] ss:$16 sps:$4 sm:$0xff]   ;;  %v7984_v24 = vld [vmem:[#allocation3 + $0x348] ss:$16 sps:$4 sm:$0xff]  }
 0x4b6   : > { %v7989_v8 = vld [vmem:[#allocation3 + $0x12c] ss:$16 sps:$4 sm:$0xff]   ;;  %v7987_v18 = vld [vmem:[#allocation3 + $0x128] ss:$16 sps:$4 sm:$0xff]  }
 0x4b7   : > { %5920 = vmatpush1.bf16.msra.mxu0 %v7915_v20  ;;  %5961 = vmatpush1.bf16.msra.mxu1 %v7918_v11  ;;  %v7992_v52 = vld [vmem:[#allocation3 + $0x32c] ss:$16 sps:$4 sm:$0xff]   ;;  %v7990_v21 = vld [vmem:[#allocation3 + $0x328] ss:$16 sps:$4 sm:$0xff]  }
 0x4b8   : > { %5921 = vmatprep.subr.bf16.mxu0 %v7923_v31  ;;  %5962 = vmatprep.subr.bf16.mxu1 %v7926_v41  ;;  %v7995_v0 = vld [vmem:[#allocation3 + $0x10c] ss:$16 sps:$4 sm:$0xff]   ;;  %v7993_v57 = vld [vmem:[#allocation3 + $0x108] ss:$16 sps:$4 sm:$0xff]  }
 0x4b9   : > { %v7998_v62 = vld [vmem:[#allocation3 + $0x30c] ss:$16 sps:$4 sm:$0xff]   ;;  %v7996_v59 = vld [vmem:[#allocation3 + $0x308] ss:$16 sps:$4 sm:$0xff]  }
 0x4ba   : > { %v8001_v20 = vld [vmem:[#allocation3 + $0x4ec] ss:$16 sps:$4 sm:$0xff]   ;;  %v7999_v31 = vld [vmem:[#allocation3 + $0x4e8] ss:$16 sps:$4 sm:$0xff]  }
 0x4bb   : > { %5922 = vmatpush1.bf16.msra.mxu0 %v7921_v1  ;;  %5963 = vmatpush1.bf16.msra.mxu1 %v7924_v17  ;;  %v8004_v11 = vld [vmem:[#allocation3 + $0x6ec] ss:$16 sps:$4 sm:$0xff]   ;;  %v8002_v41 = vld [vmem:[#allocation3 + $0x6e8] ss:$16 sps:$4 sm:$0xff]  }
 0x4bc   : > { %5923 = vmatprep.subr.bf16.mxu0 %v7929_v2  ;;  %5964 = vmatprep.subr.bf16.mxu1 %v7932_v30  ;;  %v8007_v1 = vld [vmem:[#allocation3 + $0x4cc] ss:$16 sps:$4 sm:$0xff]   ;;  %v10188_v30 = vld [vmem:[#allocation25_spill] sm:$0xff] }
 0x4bd   : > { %v8010_v17 = vld [vmem:[#allocation3 + $0x6cc] ss:$16 sps:$4 sm:$0xff]  }
 0x4be   : > { %v10187_v2 = vld [vmem:[#allocation22_spill] sm:$0xff] }
 0x4bf   : > { %5924 = vmatpush1.bf16.msra.mxu0 %v7927_v49  ;;  %5965 = vmatpush1.bf16.msra.mxu1 %v7930_v55  ;;  %v8005_v49 = vld [vmem:[#allocation3 + $0x4c8] ss:$16 sps:$4 sm:$0xff]  }
 0x4c0   : > { %5925 = vmatprep.subr.bf16.mxu0 %v7935_v16  ;;  %5966 = vmatprep.subr.bf16.mxu1 %v7938_v28  ;;  %v8008_v55 = vld [vmem:[#allocation3 + $0x6c8] ss:$16 sps:$4 sm:$0xff]   ;;  %v8013_v16 = vld [vmem:[#allocation3 + $0x4ac] ss:$16 sps:$4 sm:$0xff]  }
 0x4c1   : > { %v8016_v28 = vld [vmem:[#allocation3 + $0x6ac] ss:$16 sps:$4 sm:$0xff]  }
 0x4c3   : > { %5926 = vmatpush1.bf16.msra.mxu0 %v7933_v43  ;;  %5967 = vmatpush1.bf16.msra.mxu1 %v7936_v40  ;;  %v8011_v43 = vld [vmem:[#allocation3 + $0x4a8] ss:$16 sps:$4 sm:$0xff]  }
 0x4c4   : > { %5927 = vmatprep.subr.bf16.mxu0 %v7941_v19  ;;  %5968 = vmatprep.subr.bf16.mxu1 %v7944_v33  ;;  %v8014_v40 = vld [vmem:[#allocation3 + $0x6a8] ss:$16 sps:$4 sm:$0xff]   ;;  %v8019_v19 = vld [vmem:[#allocation3 + $0x48c] ss:$16 sps:$4 sm:$0xff]  }
 0x4c5   : > { %v8022_v33 = vld [vmem:[#allocation3 + $0x68c] ss:$16 sps:$4 sm:$0xff]  }
 0x4c7   : > { %5928 = vmatpush1.bf16.msra.mxu0 %v7939_v50  ;;  %5969 = vmatpush1.bf16.msra.mxu1 %v7942_v32  ;;  %v8017_v50 = vld [vmem:[#allocation3 + $0x488] ss:$16 sps:$4 sm:$0xff]   ;;  %v8025_v32 = vld [vmem:[#allocation3 + $0x46c] ss:$16 sps:$4 sm:$0xff]  }
 0x4c8   : > { %5929 = vmatprep.subr.bf16.mxu0 %v7947_v46  ;;  %5970 = vmatprep.subr.bf16.mxu1 %v7950_v51  ;;  %v8023_v46 = vld [vmem:[#allocation3 + $0x468] ss:$16 sps:$4 sm:$0xff]  }
 0x4c9   : > { %v8026_v51 = vld [vmem:[#allocation3 + $0x668] ss:$16 sps:$4 sm:$0xff]  }
 0x4cb   : > { %5930 = vmatpush1.bf16.msra.mxu0 %v7945_v12  ;;  %5971 = vmatpush1.bf16.msra.mxu1 %v7948_v7  ;;  %v8031_v12 = vld [vmem:[#allocation3 + $0x44c] ss:$16 sps:$4 sm:$0xff]  }
 0x4cc   : > { %5931 = vmatprep.subr.bf16.mxu0 %v7953_v25  ;;  %5972 = vmatprep.subr.bf16.mxu1 %v7956_v39  ;;  %v8034_v7 = vld [vmem:[#allocation3 + $0x64c] ss:$16 sps:$4 sm:$0xff]   ;;  %v8029_v25 = vld [vmem:[#allocation3 + $0x448] ss:$16 sps:$4 sm:$0xff]  }
 0x4cd   : > { %v8032_v39 = vld [vmem:[#allocation3 + $0x648] ss:$16 sps:$4 sm:$0xff]  }
 0x4cf   : > { %5932 = vmatpush2.bf16.msra.mxu0 %v7951_v26  ;;  %5973 = vmatpush2.bf16.msra.mxu1 %v7954_v58  ;;  %v8037_v26 = vld [vmem:[#allocation3 + $0x42c] ss:$16 sps:$4 sm:$0xff]  }
 0x4d0   : > { %5933 = vmatprep.subr.bf16.mxu0 %v7959_v13  ;;  %5974 = vmatprep.subr.bf16.mxu1 %v7962_v35  ;;  %v8040_v58 = vld [vmem:[#allocation3 + $0x62c] ss:$16 sps:$4 sm:$0xff]   ;;  %v8035_v13 = vld [vmem:[#allocation3 + $0x428] ss:$16 sps:$4 sm:$0xff]  }
 0x4d1   : > { %v8038_v35 = vld [vmem:[#allocation3 + $0x628] ss:$16 sps:$4 sm:$0xff]  }
 0x4d3   : > { %5934 = vmatpush2.bf16.msra.mxu0 %v7957_v15  ;;  %5975 = vmatpush2.bf16.msra.mxu1 %v7960_v54  ;;  %v8043_v15 = vld [vmem:[#allocation3 + $0x40c] ss:$16 sps:$4 sm:$0xff]  }
 0x4d4   : > { %5935 = vmatprep.subr.bf16.mxu0 %v7965_v56  ;;  %5976 = vmatprep.subr.bf16.mxu1 %v7968_v10  ;;  %v8046_v54 = vld [vmem:[#allocation3 + $0x60c] ss:$16 sps:$4 sm:$0xff]   ;;  %v8041_v56 = vld [vmem:[#allocation3 + $0x408] ss:$16 sps:$4 sm:$0xff]  }
 0x4d5   : > { %v8044_v10 = vld [vmem:[#allocation3 + $0x608] ss:$16 sps:$4 sm:$0xff]  }
 0x4d7   : > { %5936 = vmatpush2.bf16.msra.mxu0 %v7963_v5  ;;  %5977 = vmatpush2.bf16.msra.mxu1 %v7966_v3  ;;  %v8049_v5 = vld [vmem:[#allocation3 + $0x5ec] ss:$16 sps:$4 sm:$0xff]  }
 0x4d8   : > { %5937 = vmatprep.subr.bf16.mxu0 %v7971_v23  ;;  %5978 = vmatprep.subr.bf16.mxu1 %v7974_v22  ;;  %v8052_v3 = vld [vmem:[#allocation3 + $0x7ec] ss:$16 sps:$4 sm:$0xff]   ;;  %v8047_v23 = vld [vmem:[#allocation3 + $0x5e8] ss:$16 sps:$4 sm:$0xff]  }
 0x4d9   : > { %v8050_v22 = vld [vmem:[#allocation3 + $0x7e8] ss:$16 sps:$4 sm:$0xff]  }
 0x4db   : > { %5938 = vmatpush2.bf16.msra.mxu0 %v7969_v36  ;;  %5979 = vmatpush2.bf16.msra.mxu1 %v7972_v45  ;;  %v8055_v36 = vld [vmem:[#allocation3 + $0x5cc] ss:$16 sps:$4 sm:$0xff]  }
 0x4dc   : > { %5939 = vmatprep.subr.bf16.mxu0 %v7977_v61  ;;  %5980 = vmatprep.subr.bf16.mxu1 %v7980_v9  ;;  %v8058_v45 = vld [vmem:[#allocation3 + $0x7cc] ss:$16 sps:$4 sm:$0xff]   ;;  %v8053_v61 = vld [vmem:[#allocation3 + $0x5c8] ss:$16 sps:$4 sm:$0xff]  }
 0x4dd   : > { %v8056_v9 = vld [vmem:[#allocation3 + $0x7c8] ss:$16 sps:$4 sm:$0xff]  }
 0x4df   : > { %5940 = vmatpush2.bf16.msra.mxu0 %v7975_v47  ;;  %5981 = vmatpush2.bf16.msra.mxu1 %v7978_v38  ;;  %v8061_v47 = vld [vmem:[#allocation3 + $0x5ac] ss:$16 sps:$4 sm:$0xff]  }
 0x4e0   : > { %5941 = vmatprep.subr.bf16.mxu0 %v7983_v53  ;;  %5982 = vmatprep.subr.bf16.mxu1 %v7986_v6  ;;  %v8064_v38 = vld [vmem:[#allocation3 + $0x7ac] ss:$16 sps:$4 sm:$0xff]   ;;  %v8059_v53 = vld [vmem:[#allocation3 + $0x5a8] ss:$16 sps:$4 sm:$0xff]  }
 0x4e1   : > { %v8062_v6 = vld [vmem:[#allocation3 + $0x7a8] ss:$16 sps:$4 sm:$0xff]  }
 0x4e3   : > { %5942 = vmatpush2.bf16.msra.mxu0 %v7981_v48  ;;  %5983 = vmatpush2.bf16.msra.mxu1 %v7984_v24  ;;  %v8067_v48 = vld [vmem:[#allocation3 + $0x58c] ss:$16 sps:$4 sm:$0xff]  }
 0x4e4   : > { %5943 = vmatprep.subr.bf16.mxu0 %v7989_v8  ;;  %5984 = vmatprep.subr.bf16.mxu1 %v7992_v52  ;;  %v8070_v24 = vld [vmem:[#allocation3 + $0x78c] ss:$16 sps:$4 sm:$0xff]   ;;  %v8065_v8 = vld [vmem:[#allocation3 + $0x588] ss:$16 sps:$4 sm:$0xff]  }
 0x4e5   : > { %v8068_v52 = vld [vmem:[#allocation3 + $0x788] ss:$16 sps:$4 sm:$0xff]  }
 0x4e7   : > { %5944 = vmatpush2.bf16.msra.mxu0 %v7987_v18  ;;  %5985 = vmatpush2.bf16.msra.mxu1 %v7990_v21  ;;  %v8073_v18 = vld [vmem:[#allocation3 + $0x56c] ss:$16 sps:$4 sm:$0xff]  }
 0x4e8   : > { %5945 = vmatprep.subr.bf16.mxu0 %v7995_v0  ;;  %5986 = vmatprep.subr.bf16.mxu1 %v7998_v62  ;;  %v8076_v21 = vld [vmem:[#allocation3 + $0x76c] ss:$16 sps:$4 sm:$0xff]   ;;  %v8071_v0 = vld [vmem:[#allocation3 + $0x568] ss:$16 sps:$4 sm:$0xff]  }
 0x4e9   : > { %v8074_v62 = vld [vmem:[#allocation3 + $0x768] ss:$16 sps:$4 sm:$0xff]  }
 0x4eb   : > { %5946 = vmatpush2.bf16.msra.mxu0 %v7993_v57  ;;  %5987 = vmatpush2.bf16.msra.mxu1 %v7996_v59  ;;  %v8079_v57 = vld [vmem:[#allocation3 + $0x54c] ss:$16 sps:$4 sm:$0xff]  }
 0x4ec   : > { %5997 = vmatprep.subr.bf16.mxu0 %v8001_v20  ;;  %6038 = vmatprep.subr.bf16.mxu1 %v8004_v11  ;;  %v8082_v59 = vld [vmem:[#allocation3 + $0x74c] ss:$16 sps:$4 sm:$0xff]   ;;  %v8077_v20 = vld [vmem:[#allocation3 + $0x548] ss:$16 sps:$4 sm:$0xff]  }
 0x4ed   : > { %v8080_v11 = vld [vmem:[#allocation3 + $0x748] ss:$16 sps:$4 sm:$0xff]  }
 0x4ee   : > { %5948 = vmatmul.mubr.bf16.vlgmr.msra.gmra.mxu0 %v10187_v2  ;;  %5989 = vmatmul.mubr.bf16.vlgmr.msra.gmra.mxu1 %v10188_v30  ;;  %v8091_v2 = vld [vmem:[#allocation3 + $0x50c] ss:$16 sps:$4 sm:$0xff]  }
 0x4ef   : > { %5998 = vmatpush1.bf16.msra.mxu0 %v7999_v31  ;;  %6029 = vmatprep.mubr.bf16.mxu0 %v9945_v63  ;;  %v8020_v63 = vld [vmem:[#allocation3 + $0x688] ss:$16 sps:$4 sm:$0xff]   ;;  %v8085_v31 = vld [vmem:[#allocation3 + $0x52c] ss:$16 sps:$4 sm:$0xff]  }
 0x4f0   : > { %6039 = vmatpush1.bf16.msra.mxu1 %v8002_v41  ;;  %6070 = vmatprep.mubr.bf16.mxu1 %v9947_v37  ;;  %v8028_v37 = vld [vmem:[#allocation3 + $0x66c] ss:$16 sps:$4 sm:$0xff]  }
 0x4f1   : > { %5999 = vmatprep.subr.bf16.mxu0 %v8007_v1  ;;  %6040 = vmatprep.subr.bf16.mxu1 %v8010_v17  ;;  %v8088_v41 = vld [vmem:[#allocation3 + $0x72c] ss:$16 sps:$4 sm:$0xff]   ;;  %v8083_v1 = vld [vmem:[#allocation3 + $0x528] ss:$16 sps:$4 sm:$0xff]  }
 0x4f2   : > { %v8086_v17 = vld [vmem:[#allocation3 + $0x728] ss:$16 sps:$4 sm:$0xff]   ;;  %v8094_v30 = vld [vmem:[#allocation3 + $0x70c] ss:$16 sps:$4 sm:$0xff]  }
 0x4f3   : > { %6000 = vmatpush1.bf16.msra.mxu0 %v8005_v49  ;;  %v8089_v49 = vld [vmem:[#allocation3 + $0x508] ss:$16 sps:$4 sm:$0xff]  }
 0x4f4   : > { %6041 = vmatpush1.bf16.msra.mxu1 %v8008_v55  ;;  %6001 = vmatprep.subr.bf16.mxu0 %v8013_v16  ;;  %v8092_v55 = vld [vmem:[#allocation3 + $0x708] ss:$16 sps:$4 sm:$0xff]   ;;  %v8097_v16 = vld [vmem:[#allocation6 + $0x74] ss:$8 sps:$4 sm:$0xff]  }
 0x4f5   : > { %6042 = vmatprep.subr.bf16.mxu1 %v8016_v28  ;;  %v8095_v28 = vld [vmem:[#allocation6 + $0x70] ss:$8 sps:$4 sm:$0xff]  }
 0x4f7   : > { %6002 = vmatpush1.bf16.msra.mxu0 %v8011_v43  ;;  %v8100_v43 = vld [vmem:[#allocation6 + $0x64] ss:$8 sps:$4 sm:$0xff]  }
 0x4f8   : > { %6043 = vmatpush1.bf16.msra.mxu1 %v8014_v40  ;;  %6003 = vmatprep.subr.bf16.mxu0 %v8019_v19  ;;  %v8098_v40 = vld [vmem:[#allocation6 + $0x60] ss:$8 sps:$4 sm:$0xff]   ;;  %v8103_v19 = vld [vmem:[#allocation6 + $0x54] ss:$8 sps:$4 sm:$0xff]  }
 0x4f9   : > { %6044 = vmatprep.subr.bf16.mxu1 %v8022_v33  ;;  %v8101_v33 = vld [vmem:[#allocation6 + $0x50] ss:$8 sps:$4 sm:$0xff]  }
 0x4fb   : > { %6004 = vmatpush1.bf16.msra.mxu0 %v8017_v50  ;;  %v8106_v50 = vld [vmem:[#allocation6 + $0x44] ss:$8 sps:$4 sm:$0xff]  }
 0x4fc   : > { %6045 = vmatpush1.bf16.msra.mxu1 %v8020_v63  ;;  %6005 = vmatprep.subr.bf16.mxu0 %v8025_v32  ;;  %v8143_v63 = vld [vmem:[#allocation6 + $0x170] ss:$8 sps:$4 sm:$0xff]   ;;  %v8145_v32 = vld [vmem:[#allocation6 + $0x174] ss:$8 sps:$4 sm:$0xff]  }
 0x4fd   : > { %6046 = vmatprep.subr.bf16.mxu1 %v8028_v37  ;;  %v8148_v37 = vld [vmem:[#allocation6 + $0x164] ss:$8 sps:$4 sm:$0xff]  }
 0x4ff   : > { %6006 = vmatpush1.bf16.msra.mxu0 %v8023_v46  ;;  %v8104_v46 = vld [vmem:[#allocation6 + $0x40] ss:$8 sps:$4 sm:$0xff]  }
 0x500   : > { %6047 = vmatpush1.bf16.msra.mxu1 %v8026_v51  ;;  %6007 = vmatprep.subr.bf16.mxu0 %v8031_v12  ;;  %v8146_v51 = vld [vmem:[#allocation6 + $0x160] ss:$8 sps:$4 sm:$0xff]   ;;  %v8107_v12 = vld [vmem:[#allocation6 + $0x30] ss:$8 sps:$4 sm:$0xff]  }
 0x501   : > { %6048 = vmatprep.subr.bf16.mxu1 %v8034_v7  ;;  %v8149_v7 = vld [vmem:[#allocation6 + $0x150] ss:$8 sps:$4 sm:$0xff]  }
 0x503   : > { %6008 = vmatpush1.bf16.msra.mxu0 %v8029_v25  ;;  %v8112_v25 = vld [vmem:[#allocation6 + $0x24] ss:$8 sps:$4 sm:$0xff]  }
 0x504   : > { %6049 = vmatpush1.bf16.msra.mxu1 %v8032_v39  ;;  %6009 = vmatprep.subr.bf16.mxu0 %v8037_v26  ;;  %v8154_v39 = vld [vmem:[#allocation6 + $0x144] ss:$8 sps:$4 sm:$0xff]   ;;  %v8110_v26 = vld [vmem:[#allocation6 + $0x20] ss:$8 sps:$4 sm:$0xff]  }
 0x505   : > { %6050 = vmatprep.subr.bf16.mxu1 %v8040_v58  ;;  %v8152_v58 = vld [vmem:[#allocation6 + $0x140] ss:$8 sps:$4 sm:$0xff]  }
 0x507   : > { %6010 = vmatpush1.bf16.msra.mxu0 %v8035_v13  ;;  %v8115_v13 = vld [vmem:[#allocation6 + $0x14] ss:$8 sps:$4 sm:$0xff]  }
 0x508   : > { %6051 = vmatpush1.bf16.msra.mxu1 %v8038_v35  ;;  %6011 = vmatprep.subr.bf16.mxu0 %v8043_v15  ;;  %v8157_v35 = vld [vmem:[#allocation6 + $0x134] ss:$8 sps:$4 sm:$0xff]   ;;  %v8113_v15 = vld [vmem:[#allocation6 + $0x10] ss:$8 sps:$4 sm:$0xff]  }
 0x509   : > { %6052 = vmatprep.subr.bf16.mxu1 %v8046_v54  ;;  %v8155_v54 = vld [vmem:[#allocation6 + $0x130] ss:$8 sps:$4 sm:$0xff]  }
 0x50b   : > { %6012 = vmatpush1.bf16.msra.mxu0 %v8041_v56  ;;  %v8118_v56 = vld [vmem:[#allocation6 + $0x4] ss:$8 sps:$4 sm:$0xff]  }
 0x50c   : > { %6053 = vmatpush1.bf16.msra.mxu1 %v8044_v10  ;;  %6013 = vmatprep.subr.bf16.mxu0 %v8049_v5  ;;  %v8160_v10 = vld [vmem:[#allocation6 + $0x124] ss:$8 sps:$4 sm:$0xff]   ;;  %v8116_v5 = vld [vmem:[#allocation6] ss:$8 sps:$4 sm:$0xff]  }
 0x50d   : > { %6054 = vmatprep.subr.bf16.mxu1 %v8052_v3  ;;  %v8158_v3 = vld [vmem:[#allocation6 + $0x120] ss:$8 sps:$4 sm:$0xff]  }
 0x50f   : > { %6014 = vmatpush2.bf16.msra.mxu0 %v8047_v23  ;;  %v8121_v23 = vld [vmem:[#allocation6 + $0xf4] ss:$8 sps:$4 sm:$0xff]  }
 0x510   : > { %6055 = vmatpush2.bf16.msra.mxu1 %v8050_v22  ;;  %6015 = vmatprep.subr.bf16.mxu0 %v8055_v36  ;;  %v8163_v22 = vld [vmem:[#allocation6 + $0x114] ss:$8 sps:$4 sm:$0xff]   ;;  %v8119_v36 = vld [vmem:[#allocation6 + $0xf0] ss:$8 sps:$4 sm:$0xff]  }
 0x511   : > { %6056 = vmatprep.subr.bf16.mxu1 %v8058_v45  ;;  %v8161_v45 = vld [vmem:[#allocation6 + $0x110] ss:$8 sps:$4 sm:$0xff]  }
 0x513   : > { %6016 = vmatpush2.bf16.msra.mxu0 %v8053_v61  ;;  %v8124_v61 = vld [vmem:[#allocation6 + $0xe4] ss:$8 sps:$4 sm:$0xff]  }
 0x514   : > { %6057 = vmatpush2.bf16.msra.mxu1 %v8056_v9  ;;  %6017 = vmatprep.subr.bf16.mxu0 %v8061_v47  ;;  %v8166_v9 = vld [vmem:[#allocation6 + $0x104] ss:$8 sps:$4 sm:$0xff]   ;;  %v8122_v47 = vld [vmem:[#allocation6 + $0xe0] ss:$8 sps:$4 sm:$0xff]  }
 0x515   : > { %6058 = vmatprep.subr.bf16.mxu1 %v8064_v38  ;;  %v8164_v38 = vld [vmem:[#allocation6 + $0x100] ss:$8 sps:$4 sm:$0xff]  }
 0x517   : > { %6018 = vmatpush2.bf16.msra.mxu0 %v8059_v53  ;;  %v8127_v53 = vld [vmem:[#allocation6 + $0xd4] ss:$8 sps:$4 sm:$0xff]  }
 0x518   : > { %6059 = vmatpush2.bf16.msra.mxu1 %v8062_v6  ;;  %6019 = vmatprep.subr.bf16.mxu0 %v8067_v48  ;;  %v8169_v6 = vld [vmem:[#allocation6 + $0x1f4] ss:$8 sps:$4 sm:$0xff]   ;;  %v8125_v48 = vld [vmem:[#allocation6 + $0xd0] ss:$8 sps:$4 sm:$0xff]  }
 0x519   : > { %6060 = vmatprep.subr.bf16.mxu1 %v8070_v24  ;;  %v8167_v24 = vld [vmem:[#allocation6 + $0x1f0] ss:$8 sps:$4 sm:$0xff]  }
 0x51b   : > { %6020 = vmatpush2.bf16.msra.mxu0 %v8065_v8  ;;  %v8130_v8 = vld [vmem:[#allocation6 + $0xc4] ss:$8 sps:$4 sm:$0xff]  }
 0x51c   : > { %6061 = vmatpush2.bf16.msra.mxu1 %v8068_v52  ;;  %6021 = vmatprep.subr.bf16.mxu0 %v8073_v18  ;;  %v8172_v52 = vld [vmem:[#allocation6 + $0x1e4] ss:$8 sps:$4 sm:$0xff]   ;;  %v8128_v18 = vld [vmem:[#allocation6 + $0xc0] ss:$8 sps:$4 sm:$0xff]  }
 0x51d   : > { %6062 = vmatprep.subr.bf16.mxu1 %v8076_v21  ;;  %v8170_v21 = vld [vmem:[#allocation6 + $0x1e0] ss:$8 sps:$4 sm:$0xff]  }
 0x51f   : > { %6022 = vmatpush2.bf16.msra.mxu0 %v8071_v0  ;;  %v8133_v0 = vld [vmem:[#allocation6 + $0xb4] ss:$8 sps:$4 sm:$0xff]  }
 0x520   : > { %6063 = vmatpush2.bf16.msra.mxu1 %v8074_v62  ;;  %6023 = vmatprep.subr.bf16.mxu0 %v8079_v57  ;;  %v8175_v62 = vld [vmem:[#allocation6 + $0x1d4] ss:$8 sps:$4 sm:$0xff]   ;;  %v8131_v57 = vld [vmem:[#allocation6 + $0xb0] ss:$8 sps:$4 sm:$0xff]  }
 0x521   : > { %6064 = vmatprep.subr.bf16.mxu1 %v8082_v59  ;;  %v8173_v59 = vld [vmem:[#allocation6 + $0x1d0] ss:$8 sps:$4 sm:$0xff]  }
 0x523   : > { %6024 = vmatpush2.bf16.msra.mxu0 %v8077_v20  ;;  %v8136_v20 = vld [vmem:[#allocation6 + $0xa4] ss:$8 sps:$4 sm:$0xff]  }
 0x524   : > { %6065 = vmatpush2.bf16.msra.mxu1 %v8080_v11  ;;  %6025 = vmatprep.subr.bf16.mxu0 %v8085_v31  ;;  %v8178_v11 = vld [vmem:[#allocation6 + $0x1c4] ss:$8 sps:$4 sm:$0xff]   ;;  %v8134_v31 = vld [vmem:[#allocation6 + $0xa0] ss:$8 sps:$4 sm:$0xff]  }
 0x525   : > { %6066 = vmatprep.subr.bf16.mxu1 %v8088_v41  ;;  %v8176_v41 = vld [vmem:[#allocation6 + $0x1c0] ss:$8 sps:$4 sm:$0xff]  }
 0x527   : > { %6026 = vmatpush2.bf16.msra.mxu0 %v8083_v1  ;;  %v8139_v1 = vld [vmem:[#allocation6 + $0x94] ss:$8 sps:$4 sm:$0xff]  }
 0x528   : > { %6067 = vmatpush2.bf16.msra.mxu1 %v8086_v17  ;;  %6027 = vmatprep.subr.bf16.mxu0 %v8091_v2  ;;  %v8181_v17 = vld [vmem:[#allocation6 + $0x1b4] ss:$8 sps:$4 sm:$0xff]   ;;  %v8137_v2 = vld [vmem:[#allocation6 + $0x90] ss:$8 sps:$4 sm:$0xff]  }
 0x529   : > { %6068 = vmatprep.subr.bf16.mxu1 %v8094_v30  ;;  %v8179_v30 = vld [vmem:[#allocation6 + $0x1b0] ss:$8 sps:$4 sm:$0xff]  }
 0x52b   : > { %6028 = vmatpush2.bf16.msra.mxu0 %v8089_v49  ;;  %v8142_v49 = vld [vmem:[#allocation6 + $0x84] ss:$8 sps:$4 sm:$0xff]  }
 0x52c   : > { %6069 = vmatpush2.bf16.msra.mxu1 %v8092_v55  ;;  %6483 = vmatprep.subr.bf16.mxu0 %v8097_v16  ;;  %v8140_v55 = vld [vmem:[#allocation6 + $0x80] ss:$8 sps:$4 sm:$0xff]   ;;  %v8184_v16 = vld [vmem:[#allocation6 + $0x1a4] ss:$8 sps:$4 sm:$0xff]  }
 0x52d   : > { %6524 = vmatprep.subr.bf16.mxu1 %v8145_v32 }
 0x52e   : > { %6030 = vmatmul.mubr.bf16.vlgmr.msra.gmra.mxu0 %v9949_v34  ;;  %v8109_v34 = vld [vmem:[#allocation6 + $0x34] ss:$8 sps:$4 sm:$0xff]  }
 0x52f   : > { %6071 = vmatmul.mubr.bf16.vlgmr.msra.gmra.mxu1 %v9951_v60  ;;  %6484 = vmatpush1.bf16.msra.mxu0 %v8095_v28  ;;  %v8151_v60 = vld [vmem:[#allocation6 + $0x154] ss:$8 sps:$4 sm:$0xff]  }
 0x530   : > { %6485 = vmatprep.subr.bf16.mxu0 %v8100_v43  ;;  %6525 = vmatpush1.bf16.msra.mxu1 %v8143_v63 }
 0x531   : > { %6526 = vmatprep.subr.bf16.mxu1 %v8148_v37  ;;  %v8187_v37 = vld [vmem:[#allocation6 + $0x194] ss:$8 sps:$4 sm:$0xff]  }
 0x533   : > { %6486 = vmatpush1.bf16.msra.mxu0 %v8098_v40  ;;  %v8182_v40 = vld [vmem:[#allocation6 + $0x1a0] ss:$8 sps:$4 sm:$0xff]  }
 0x534   : > { %6487 = vmatprep.subr.bf16.mxu0 %v8103_v19  ;;  %6527 = vmatpush1.bf16.msra.mxu1 %v8146_v51 }
 0x535   : > { %6528 = vmatprep.subr.bf16.mxu1 %v8151_v60 }
 0x537   : > { %6488 = vmatpush1.bf16.msra.mxu0 %v8101_v33 }
 0x538   : > { %6489 = vmatprep.subr.bf16.mxu0 %v8106_v50  ;;  %6529 = vmatpush1.bf16.msra.mxu1 %v8149_v7 }
 0x539   : > { %6530 = vmatprep.subr.bf16.mxu1 %v8154_v39 }
 0x53b   : > { %6490 = vmatpush1.bf16.msra.mxu0 %v8104_v46 }
 0x53c   : > { %6491 = vmatprep.subr.bf16.mxu0 %v8109_v34  ;;  %6531 = vmatpush1.bf16.msra.mxu1 %v8152_v58  ;;  %v8185_v34 = vld [vmem:[#allocation6 + $0x190] ss:$8 sps:$4 sm:$0xff]  }
 0x53d   : > { %6532 = vmatprep.subr.bf16.mxu1 %v8157_v35 }
 0x53f   : > { %6492 = vmatpush1.bf16.msra.mxu0 %v8107_v12 }
 0x540   : > { %6493 = vmatprep.subr.bf16.mxu0 %v8112_v25  ;;  %6533 = vmatpush1.bf16.msra.mxu1 %v8155_v54 }
 0x541   : > { %6534 = vmatprep.subr.bf16.mxu1 %v8160_v10 }
 0x543   : > { %6494 = vmatpush1.bf16.msra.mxu0 %v8110_v26  ;;  %v8190_v26 = vld [vmem:[#allocation6 + $0x184] ss:$8 sps:$4 sm:$0xff]  }
 0x544   : > { %6495 = vmatprep.subr.bf16.mxu0 %v8115_v13  ;;  %6535 = vmatpush1.bf16.msra.mxu1 %v8158_v3 }
 0x545   : > { %6536 = vmatprep.subr.bf16.mxu1 %v8163_v22  ;;  %v8192_v22 = vld [vmem:[%s10085_s11 + $0x38] sm:$0xff]  }
 0x547   : > { %6496 = vmatpush1.bf16.msra.mxu0 %v8113_v15 }
 0x548   : > { %6497 = vmatprep.subr.bf16.mxu0 %v8118_v56  ;;  %6537 = vmatpush1.bf16.msra.mxu1 %v8161_v45  ;;  %v8194_v45 = vld [vmem:[%s10085_s11 + $0x30] sm:$0xff]  }
 0x549   : > { %6538 = vmatprep.subr.bf16.mxu1 %v8166_v9  ;;  %v8196_v9 = vld [vmem:[%s10085_s11 + $0x28] sm:$0xff]  }
 0x54b   : > { %6498 = vmatpush1.bf16.msra.mxu0 %v8116_v5 }
 0x54c   : > { %6499 = vmatprep.subr.bf16.mxu0 %v8121_v23  ;;  %6539 = vmatpush1.bf16.msra.mxu1 %v8164_v38  ;;  %v8191_v23 = vld [vmem:[%s10085_s11 + $0x78] sm:$0xff]   ;;  %v8198_v38 = vld [vmem:[%s10085_s11 + $0x20] sm:$0xff]  }
 0x54d   : > { %6540 = vmatprep.subr.bf16.mxu1 %v8169_v6  ;;  %v8200_v6 = vld [vmem:[%s10085_s11 + $0x18] sm:$0xff]  }
 0x54f   : > { %6500 = vmatpush2.bf16.msra.mxu0 %v8119_v36  ;;  %v8193_v36 = vld [vmem:[%s10085_s11 + $0x70] sm:$0xff]  }
 0x550   : > { %6501 = vmatprep.subr.bf16.mxu0 %v8124_v61  ;;  %6541 = vmatpush2.bf16.msra.mxu1 %v8167_v24  ;;  %v8195_v61 = vld [vmem:[%s10085_s11 + $0x68] sm:$0xff]   ;;  %v8202_v24 = vld [vmem:[%s10085_s11 + $0x10] sm:$0xff]  }
 0x551   : > { %6542 = vmatprep.subr.bf16.mxu1 %v8172_v52 }
 0x553   : > { %6502 = vmatpush2.bf16.msra.mxu0 %v8122_v47  ;;  %v8197_v47 = vld [vmem:[%s10085_s11 + $0x60] sm:$0xff]  }
 0x554   : > { %6503 = vmatprep.subr.bf16.mxu0 %v8127_v53  ;;  %6543 = vmatpush2.bf16.msra.mxu1 %v8170_v21  ;;  %v8199_v53 = vld [vmem:[%s10085_s11 + $0x58] sm:$0xff]  }
 0x555   : > { %6544 = vmatprep.subr.bf16.mxu1 %v8175_v62 }
 0x557   : > { %6504 = vmatpush2.bf16.msra.mxu0 %v8125_v48  ;;  %v8201_v48 = vld [vmem:[%s10085_s11 + $0x50] sm:$0xff]  }
 0x558   : > { %6505 = vmatprep.subr.bf16.mxu0 %v8130_v8  ;;  %6545 = vmatpush2.bf16.msra.mxu1 %v8173_v59  ;;  %v10189_v8 = vsub.s32 2, %v10184_v27 }
 0x559   : > { %6546 = vmatprep.subr.bf16.mxu1 %v8178_v11 }
 0x55a   : > { %v5742_v52 = vrot.slane %v9928_v14, %v10189_v8 }
 0x55b   : > { %6506 = vmatpush2.bf16.msra.mxu0 %v8128_v18  ;;  %v10190_v18 = vsub.s32 3, %v10184_v27 }
 0x55c   : > { %6507 = vmatprep.subr.bf16.mxu0 %v8133_v0  ;;  %6547 = vmatpush2.bf16.msra.mxu1 %v8176_v41 }
 0x55d   : > { %6548 = vmatprep.subr.bf16.mxu1 %v8181_v17  ;;  %v5746_v21 = vrot.slane %v9928_v14, %v10190_v18 }
 0x55f   : > { %6508 = vmatpush2.bf16.msra.mxu0 %v8131_v57 }
 0x560   : > { %6509 = vmatprep.subr.bf16.mxu0 %v8136_v20  ;;  %6549 = vmatpush2.bf16.msra.mxu1 %v8179_v30 }
 0x561   : > { %6550 = vmatprep.subr.bf16.mxu1 %v8184_v16 }
 0x563   : > { %6510 = vmatpush2.bf16.msra.mxu0 %v8134_v31 }
 0x564   : > { %6511 = vmatprep.subr.bf16.mxu0 %v8139_v1  ;;  %6551 = vmatpush2.bf16.msra.mxu1 %v8182_v40 }
 0x565   : > { %6552 = vmatprep.subr.bf16.mxu1 %v8187_v37  ;;  %v8205_v37 = vld [vmem:[%s10085_s11 + $0x40] sm:$0xff]  }
 0x567   : > { %6512 = vmatpush2.bf16.msra.mxu0 %v8137_v2 }
 0x568   : > { %6513 = vmatprep.subr.bf16.mxu0 %v8142_v49  ;;  %6553 = vmatpush2.bf16.msra.mxu1 %v8185_v34  ;;  %v6151_v34 = vld [vmem:[%s10084_s10] sm:$0x3] }
 0x569   : > { %6554 = vmatprep.subr.bf16.mxu1 %v8190_v26 }
 0x56b   : > { %6514 = vmatpush2.bf16.msra.mxu0 %v8140_v55 }
 0x56c   : > { %7430 = vmatprep.subr.bf16.mxu0 %v8191_v23 }
 0x56e   : > { %v5867_v28 = vpop.f32.mrf.mxu0  ;;  %v5908_v43 = vpop.f32.mrf.mxu1 }
 0x56f   : > { %v5868_v19 = vadd.f32 %v5867_v28, %v9936_v4  ;;  %v8188_v4 = vld [vmem:[#allocation6 + $0x180] ss:$8 sps:$4 sm:$0xff]  }
 0x570   : > { %v5869_v33 = vpop.f32.mrf.mxu0  ;;  %v5910_v50 = vpop.f32.mrf.mxu1  ;;  %6555 = vmatpush2.bf16.msra.mxu1 %v8188_v4 }
 0x571   : > { %v5909_v63 = vadd.f32 %v5908_v43, %v5868_v19  ;;  %v5870_v32 = vadd.f32 %v5869_v33, %v9940_v42  ;;  %v8203_v33 = vld [vmem:[%s10085_s11 + $0x48] sm:$0xff]  }
 0x572   : > { %v5871_v46 = vpop.f32.mrf.mxu0  ;;  %v5912_v51 = vpop.f32.mrf.mxu1 }
 0x573   : > { %v5911_v60 = vadd.f32 %v5910_v50, %v5870_v32  ;;  %v6079_v12 = vmax.f32 %v5909_v63, 0.0  ;;  %v8204_v63 = vld [vmem:[%s10085_s11 + $0x8] sm:$0xff]   ;;  %v8206_v51 = vld [vmem:[%s10085_s11] sm:$0xff]  }
 0x574   : > { %v5872_v7 = vpop.f32.mrf.mxu0  ;;  %v5913_v25 = vpop.f32.mrf.mxu1 }
 0x575   : > { %v6080_v39 = vmax.f32 %v5911_v60, 0.0  ;;  %v6083_v13 = vpack.c.bf16 %v6079_v12, %v6079_v12  ;;  %v6476_v60 = vrot.slane %v6151_v34, %v10182_v29  ;;  %v6480_v12 = vrot.slane %v6151_v34, %v10183_v44  ;;  %v6601_v44 = vld [vmem:[%s10086_s12] sm:$0x1] }
 0x577   : > { %v6084_v58 = vpack.c.bf16 %v6080_v39, %v6080_v39 }
 0x579   : > { %6515 = vmatprep.mubr.bf16.mxu0 %v6084_v58 }
 0x57a   : > { %6516 = vmatmul.mubr.bf16.vlgmr.msra.gmra.mxu0 %v6083_v13 }
 0x57b   : > { %7431 = vmatpush3.bf16.msra.mxu0 %v8192_v22 }
 0x57c   : > { %7432 = vmatprep.subr.bf16.mxu0 %v8193_v36 }
 0x57f   : > { %7433 = vmatpush3.bf16.msra.mxu0 %v8194_v45 }
 0x580   : > { %7434 = vmatprep.subr.bf16.mxu0 %v8195_v61 }
 0x583   : > { %7435 = vmatpush3.bf16.msra.mxu0 %v8196_v9 }
 0x584   : > { %7436 = vmatprep.subr.bf16.mxu0 %v8197_v47 }
 0x587   : > { %7437 = vmatpush3.bf16.msra.mxu0 %v8198_v38 }
 0x588   : > { %7438 = vmatprep.subr.bf16.mxu0 %v8199_v53 }
 0x58b   : > { %7439 = vmatpush3.bf16.msra.mxu0 %v8200_v6 }
 0x58c   : > { %7440 = vmatprep.subr.bf16.mxu0 %v8201_v48 }
 0x58f   : > { %7441 = vmatpush3.bf16.msra.mxu0 %v8202_v24 }
 0x590   : > { %7442 = vmatprep.subr.bf16.mxu0 %v8203_v33 }
 0x593   : > { %7443 = vmatpush3.bf16.msra.mxu0 %v8204_v63 }
 0x594   : > { %7444 = vmatprep.subr.bf16.mxu0 %v8205_v37 }
 0x597   : > { %7445 = vmatpush3.bf16.msra.mxu0 %v8206_v51 }
 0x5ae   : > { %v5949_v42 = vpop.f32.mrf.mxu0  ;;  %v5990_v35 = vpop.f32.mrf.mxu1 }
 0x5af   : > { %v5950_v0 = vadd.f32 %v5949_v42, %v5742_v52 }
 0x5b0   : > { %v5951_v15 = vpop.f32.mrf.mxu0  ;;  %v5992_v54 = vpop.f32.mrf.mxu1 }
 0x5b1   : > { %v5952_v62 = vadd.f32 %v5951_v15, %v5746_v21  ;;  %v5991_v57 = vadd.f32 %v5990_v35, %v5950_v0 }
 0x5b2   : > { %v5953_v56 = vpop.f32.mrf.mxu0  ;;  %v5994_v10 = vpop.f32.mrf.mxu1 }
 0x5b3   : > { %v5993_v20 = vadd.f32 %v5992_v54, %v5952_v62 }
 0x5b4   : > { %v5954_v5 = vpop.f32.mrf.mxu0  ;;  %v5995_v3 = vpop.f32.mrf.mxu1 }
 0x5ee   : > { %v6031_v59 = vpop.f32.mrf.mxu0 }
 0x5ef   : > { %v6032_v11 = vadd.f32 %v6031_v59, %v5991_v57  ;;  %v6072_v31 = vpop.f32.mrf.mxu1 }
 0x5f0   : > { %v6033_v41 = vpop.f32.mrf.mxu0 }
 0x5f1   : > { %v6073_v1 = vadd.f32 %v6072_v31, %v6032_v11  ;;  %v6034_v17 = vadd.f32 %v6033_v41, %v5993_v20  ;;  %v6074_v2 = vpop.f32.mrf.mxu1 }
 0x5f2   : > { %v6035_v30 = vpop.f32.mrf.mxu0 }
 0x5f3   : > { %v6075_v49 = vadd.f32 %v6074_v2, %v6034_v17  ;;  %v6076_v55 = vpop.f32.mrf.mxu1  ;;  %v6081_v16 = vmax.f32 %v6073_v1, 0.0 }
 0x5f4   : > { %v6036_v28 = vpop.f32.mrf.mxu0 }
 0x5f5   : > { %v6082_v43 = vmax.f32 %v6075_v49, 0.0  ;;  %v6077_v27 = vpop.f32.mrf.mxu1  ;;  %v6085_v14 = vpack.c.bf16 %v6081_v16, %v6081_v16 }
 0x5f7   : > { %v6086_v40 = vpack.c.bf16 %v6082_v43, %v6082_v43 }
 0x5f9   : > { %6556 = vmatprep.mubr.bf16.mxu1 %v6086_v40 }
 0x5fa   : > { %6557 = vmatmul.mubr.bf16.vlgmr.msra.gmra.mxu1 %v6085_v14 }
 0x63a   : > { %v6517_v19 = vpop.f32.mrf.mxu0 }
 0x63b   : > { %v6518_v7 = vadd.f32 %v6517_v19, %v6476_v60 }
 0x63c   : > { %v6519_v50 = vpop.f32.mrf.mxu0 }
 0x63d   : > { %v6520_v39 = vadd.f32 %v6519_v50, %v6480_v12 }
 0x63e   : > { %v6521_v32 = vpop.f32.mrf.mxu0 }
 0x640   : > { %v6522_v46 = vpop.f32.mrf.mxu0 }
 0x6ba   : > { %v6558_v25 = vpop.f32.mrf.mxu1 }
 0x6bb   : > { %v6559_v26 = vadd.f32 %v6558_v25, %v6518_v7 }
 0x6bc   : > { %v6560_v4 = vpop.f32.mrf.mxu1 }
 0x6bd   : > { %v6561_v58 = vadd.f32 %v6560_v4, %v6520_v39  ;;  %v6565_v13 = vmax.f32 %v6559_v26, 0.0 }
 0x6be   : > { %v6562_v42 = vpop.f32.mrf.mxu1 }
 0x6bf   : > { %v6566_v35 = vmax.f32 %v6561_v58, 0.0  ;;  %v6567_v56 = vpack.c.bf16 %v6565_v13, %v6565_v13 }
 0x6c0   : > { %v6563_v15 = vpop.f32.mrf.mxu1 }
 0x6c1   : > { %v6568_v54 = vpack.c.bf16 %v6566_v35, %v6566_v35 }
 0x6c3   : > { %6730 = vmatprep.mubr.bf16.mxu0 %v6568_v54 }
 0x6c4   : > { %6731 = vmatmul.mubr.bf16.vlgmr.msra.gmra.mxu0 %v6567_v56 }
 0x784   : > { %v7446_v29 = vpop.f32.mrf.mxu0 }
 0x786   : > { %v7447_v10 = vpop.f32.mrf.mxu0 }
 0x787   : > { %v7448_v5 = vadd.f32 %v7447_v10, %v7446_v29 }
 0x788   : > { %v7449_v3 = vpop.f32.mrf.mxu0 }
 0x789   : > { %v6733_v23 = vadd.f32 %v7448_v5, %v6601_v44 }
 0x78a   : > { %v7450_v22 = vpop.f32.mrf.mxu0 }
 0x78b   : > { %6739 = vst.msk [vmem:[%s485_s24] sm:$0x1] %vm6738_vm3, %v6733_v23 }
 0x78c   : > { %8274 = shalt.err (!%p8271_p9)
}
 0x78d   : > { %s8275_s21 = scalar_lea.hbm %s10034_s27, 16  ;;  %s8279_s15 = scalar_lea.hbm %s10087_s13, 32 }
 0x78e   : > { %p8276_p12 = scmp.ne.s32.totalorder %s10034_s27, %s8275_s21  ;;  %p8280_p5 = scmp.lt.s32.totalorder %s10034_s27, %s10087_s13 }
 0x78f   : > { %p8281_p3 = scmp.lt.s32.totalorder %s8279_s15, %s8275_s21 }
 0x790   : > { %p8277_p1 = pnand %p8276_p12, %p10191_p10 }
 0x791   : > { %p8282_p4 = por %p8281_p3, %p8280_p5 }
 0x792   : > { %p8278_p2 = pneg %p8277_p1 }
 0x794   : > { %p8283_p8 = pnand %p8282_p4, %p8278_p2 }
 0x796   : > { %8286 = shalt.err (!%p8283_p8)
}
 0x797   : > { %7602 = dma.vmem_to_hbm [thread:$0]  (%p10191_p10), %s6754_s17, 16, %s10034_s27, %s6741_s29  }
 0x798 PF: > { %s10192_s14 = sld [smem:[#allocation15_spill]] }
 0x799   : > { %s10193_s25 = sld [smem:[#allocation12_spill]] }
 0x79a   : > { %s10194_s30 = sld [smem:[#allocation17_spill]] }
 0x79e   : > { %p7619_p11 = scmp.ge.s32.totalorder %s10192_s14, 2 }
 0x79f   : > { %s6765_s28 = sand.u32 1, %s10193_s25  }
 0x7a0   : > { %p10195_p13 = scmp.ne.s32.totalorder %s10194_s30, 0  ;;  %s6766_s20 = scalar_lea.sflag [#allocation5], %s6765_s28 }
 0x7a2   : > { %p7612_p0 = pnand %p7619_p11, %p10195_p13 }
 0x7a4   : > { %p7613_p6 = pneg %p7612_p0 }
 0x7a6   : > { %8320 = dma.done.wait (%p7613_p6), %s6766_s20, 16  }
 0x7a7   : > { %8322 = vsyncadd (%p7613_p6), %s6766_s20, 4294967280  ;;  %s28_s30 = sadd.s32 1, %s10192_s14   ;;  %s10196_s16 = sld [smem:[#allocation13_spill]] }
 0x7a8   : > { %p25_p7 = scmp.ge.s32.totalorder %s28_s30, 4   ;;  %s10197_s27 = sld [smem:[#allocation18_spill]] }
 0x7a9   : > { %s10198_s28 = sld [smem:[#allocation14_spill]]  ;;  %s10200_s25 = smov %s8329_s26 }
 0x7aa   : > { %s10199_s29 = sld [smem:[#allocation16_spill]]  ;;  %27 = sbr.rel (!%p25_p7) target bundleno = 6 (0x6), region = 128 }
 0x7ad   : > { %s10201_s26 = smov %s10196_s16 }
 0x7af   :  { %6770 = vsyncpa [#allocation4], 1 }
 0x7b0   :  { %6772 = vsyncpa [#allocation4 + $0x1], 1 }
 0x7b1   :  { %6773 = vsyncpa [#allocation7], 1 }
 0x7b2   :  { %6774 = vsyncpa [#allocation5], 1 }
 0x7b3   :  { %6776 = vsyncpa [#allocation5 + $0x1], 1 }

</bundles_post_ra>
